<compile_context>
chip_gen: v6e
topology: v6e:2x2x1
jax: 0.10.0
libtpu: 0.0.40
codegen_flags: <defaults>
</compile_context>

<pallas_src>
import jax
import jax.numpy as jnp
from jax.experimental import pallas as pl
from jax.experimental.pallas import tpu as pltpu


# ----------------------- trace-time constant builders -----------------------

def _conv_toeplitz(w, in_w, out_w):
    """Banded (Toeplitz) weight matrix so the conv kw-contraction runs on the MXU.

    w: (Cout, Cin, KH, KW) f32, layer scale already folded in.
    Returns T of shape (KH, Cin*in_w, Cout*out_w) with
      T[kh, ci*in_w + j, co*out_w + x] = w[co, ci, kh, j - x]  if 0 <= j-x < KW else 0
    so acc += slab_kh @ T[kh], slab_kh[h, ci*in_w + j] = x_padded[ci, h+kh, j],
    accumulates the direct convolution for every output channel at once.
    """
    cout, cin, kh, kw = w.shape
    j = jnp.arange(in_w)[:, None]
    x = jnp.arange(out_w)[None, :]
    d = j - x
    valid = ((d >= 0) & (d < kw)).astype(w.dtype)
    dc = jnp.clip(d, 0, kw - 1)
    wt = jnp.transpose(w, (2, 1, 0, 3))            # (KH, Cin, Cout, KW)
    band = wt[..., dc] * valid                     # (KH, Cin, Cout, in_w, out_w)
    band = jnp.transpose(band, (0, 1, 3, 2, 4))    # (KH, Cin, in_w, Cout, out_w)
    return band.reshape(kh, cin * in_w, cout * out_w)


def _pool_row_sel(n_in, pad_top, pad_bot, parity):
    """(pad_top + n_in//2 + pad_bot, n_in) 0/1 matrix: left-multiplying a
    (n_in, C*W) slab selects input row 2*i+parity into output row pad_top+i;
    pad rows are zero (== the next stage's ZeroPad2d rows)."""
    n_out = n_in // 2
    rows = pad_top + n_out + pad_bot
    i = jnp.arange(rows)[:, None]
    r = jnp.arange(n_in)[None, :]
    ok = (i >= pad_top) & (i < pad_top + n_out) & (r == 2 * (i - pad_top) + parity)
    return ok.astype(jnp.float32)


def _pool_col_sel(n_in, pad_left, pad_right, parity, num_chan):
    """Block-diagonal (C*n_in, C*(pad_left+n_in//2+pad_right)) column selector
    for channel-lane-stacked activations (column analogue of _pool_row_sel)."""
    n_out = n_in // 2
    cols = pad_left + n_out + pad_right
    r = jnp.arange(n_in)[:, None]
    j = jnp.arange(cols)[None, :]
    ok = (j >= pad_left) & (j < pad_left + n_out) & (r == 2 * (j - pad_left) + parity)
    blk = ok.astype(jnp.float32)                       # (n_in, cols)
    eye = jnp.eye(num_chan, dtype=jnp.float32)
    return jnp.einsum('ab,rj->arbj', eye, blk).reshape(num_chan * n_in,
                                                       num_chan * cols)


# ------------------------------ full forward ------------------------------

def cnn_forward(params, x):
    f32 = jnp.float32
    C = params['conv1_w'].shape[0]            # num_conv
    H = params['linear_w'].shape[0]           # num_hidd
    N = x.shape[0]

    # ---- fold layer scales into conv / linear weights (free at trace time) ----
    w1s = params['conv1_w'] * params['lsconv1'][:, None, None, None]
    w2s = params['conv2_w'] * params['lsconv2'][:, None, None, None]
    w3s = params['conv3_w'] * params['lsconv3'][:, None, None, None]
    b1row = jnp.repeat(params['conv1_b'] * params['lsconv1'], 72)[None, :]   # (1, C*72)
    b2row = jnp.repeat(params['conv2_b'] * params['lsconv2'], 36)[None, :]   # (1, C*36)
    b3row = jnp.repeat(params['conv3_b'] * params['lsconv3'], 18)[None, :]   # (1, C*18)

    # ---- conv kw-contractions as banded Toeplitz matrices (MXU operands) ----
    t1 = _conv_toeplitz(w1s, 79, 72)          # (4, 6*79=474, C*72)
    t2 = _conv_toeplitz(w2s, 39, 36)          # (2, C*39,     C*36)
    t3 = _conv_toeplitz(w3s, 21, 18)          # (2, C*21,     C*18)

    # ---- pool(2x2) + next-stage ZeroPad2d fused as 0/1 selection matmuls ----
    a1r0, a1r1 = _pool_row_sel(24, 0, 1, 0), _pool_row_sel(24, 0, 1, 1)   # (13, 24)
    c1s0 = _pool_col_sel(72, 1, 2, 0, C)                                  # (C*72, C*39)
    c1s1 = _pool_col_sel(72, 1, 2, 1, C)
    a2r0, a2r1 = _pool_row_sel(12, 0, 1, 0), _pool_row_sel(12, 0, 1, 1)   # (7, 12)
    c2s0 = _pool_col_sel(36, 1, 2, 0, C)                                  # (C*36, C*21)
    c2s1 = _pool_col_sel(36, 1, 2, 1, C)

    # ---- spatial scales, channel-lane stacked ----
    ss1s = jnp.tile(params['ssconv1'], (1, C))     # (24, C*72)
    ss2s = jnp.tile(params['ssconv2'], (1, C))     # (12, C*36)
    ss3s = jnp.tile(params['ssconv3'], (1, C))     # (6,  C*18)

    # ---- MLP weights: gammalinear folded in; torch (c,h,w) flatten order and
    #      the channel-lane-stacked act3 layout absorbed into the weight layout.
    v = params['linear_w'] * params['gammalinear'][:, None]       # (H, C*6*18)
    v = v.reshape(H, C, 6, 18).transpose(2, 1, 3, 0)              # (6, C, 18, H)
    v = v.reshape(6, C * 18, H)                                   # (6, C*18, H)
    bl = (params['gammalinear'] * params['linear_b']).reshape(1, H)
    wo = params['output_w'].T                                     # (H, 1)
    bo = params['output_b'].reshape(1, 1)

    # ---- stage-1 ZeroPad2d((3,4,1,2)) + channel-lane stacking, host side ----
    xp = jnp.pad(x, ((0, 0), (0, 0), (1, 2), (3, 4)))             # (N, 6, 27, 79)
    xs = jnp.transpose(xp, (0, 2, 1, 3)).reshape(N, 27, 6 * 79)   # (N, 27, 474)

    def kernel(x_ref, t1_ref, b1_ref, ss1_ref, a1r0_ref, a1r1_ref, c1s0_ref, c1s1_ref,
               t2_ref, b2_ref, ss2_ref, a2r0_ref, a2r1_ref, c2s0_ref, c2s1_ref,
               t3_ref, b3_ref, ss3_ref, v_ref, bl_ref, wo_ref, bo_ref, out_ref):
        dot = lambda a, b: jnp.dot(a, b, preferred_element_type=jnp.float32)

        # ---- stage 1: conv1 (6->C, k=4x8) on MXU + ss*ls + tanh --------------
        acc = dot(x_ref[0, 0:24, :], t1_ref[0])
        acc = acc + dot(x_ref[0, 1:25, :], t1_ref[1])
        acc = acc + dot(x_ref[0, 2:26, :], t1_ref[2])
        acc = acc + dot(x_ref[0, 3:27, :], t1_ref[3])
        y1 = jnp.tanh((acc + b1_ref[...]) * ss1_ref[...])          # (24, C*72)

        # ---- maxpool 2x2 + ZeroPad2d((1,2,0,1)) via selection matmuls --------
        tr = jnp.maximum(dot(a1r0_ref[...], y1), dot(a1r1_ref[...], y1))   # (13, C*72)
        xp2 = jnp.maximum(dot(tr, c1s0_ref[...]), dot(tr, c1s1_ref[...]))  # (13, C*39)

        # ---- stage 2: conv2 (C->C, k=2x4) + ss*ls + tanh ---------------------
        acc = dot(xp2[0:12, :], t2_ref[0]) + dot(xp2[1:13, :], t2_ref[1])
        y2 = jnp.tanh((acc + b2_ref[...]) * ss2_ref[...])          # (12, C*36)

        # ---- maxpool 2x2 + ZeroPad2d((1,2,0,1)) ------------------------------
        tr = jnp.maximum(dot(a2r0_ref[...], y2), dot(a2r1_ref[...], y2))   # (7, C*36)
        xp3 = jnp.maximum(dot(tr, c2s0_ref[...]), dot(tr, c2s1_ref[...]))  # (7, C*21)

        # ---- stage 3: conv3 (C->C, k=2x4) + ss*ls + tanh ---------------------
        acc = dot(xp3[0:6, :], t3_ref[0]) + dot(xp3[1:7, :], t3_ref[1])
        act3 = jnp.tanh((acc + b3_ref[...]) * ss3_ref[...])        # (6, C*18)

        # ---- MLP: linear (gamma folded) + tanh + output head -----------------
        # 6 independent (1, C*18) @ (C*18, H) dots (flatten absorbed in v layout).
        hidden = bl_ref[...]                                       # (1, H)
        for h in range(6):
            hidden = hidden + dot(act3[h:h + 1, :], v_ref[h])
        hidden = jnp.tanh(hidden)
        out_ref[0] = dot(hidden, wo_ref[...]) + bo_ref[...]        # (1, 1)
        # TODO(synk): the reference forward's print()/numpy saturation
        # diagnostics are host-side logging only and are not reproduced.

    def _const(arr):
        shape = arr.shape
        return pl.BlockSpec(shape, lambda n, _s=shape: (0,) * len(_s))

    out = pl.pallas_call(
        kernel,
        out_shape=jax.ShapeDtypeStruct((N, 1, 1), f32),
        grid=(N,),
        in_specs=[
            pl.BlockSpec((1, 27, 6 * 79), lambda n: (n, 0, 0)),    # padded input
            _const(t1), _const(b1row), _const(ss1s),
            _const(a1r0), _const(a1r1), _const(c1s0), _const(c1s1),
            _const(t2), _const(b2row), _const(ss2s),
            _const(a2r0), _const(a2r1), _const(c2s0), _const(c2s1),
            _const(t3), _const(b3row), _const(ss3s),
            _const(v), _const(bl), _const(wo), _const(bo),
        ],
        out_specs=pl.BlockSpec((1, 1, 1), lambda n: (n, 0, 0)),
        compiler_params=pltpu.CompilerParams(
            dimension_semantics=("parallel",)),
    )(xs, t1, b1row, ss1s, a1r0, a1r1, c1s0, c1s1,
      t2, b2row, ss2s, a2r0, a2r1, c2s0, c2s1,
      t3, b3row, ss3s, v, bl, wo, bo)
    return out[:, 0, 0]                                            # squeeze(-1)


# ------------------------------ parameters ------------------------------

def init_params(key, num_conv, num_hidd, layer_scale_init=0.5, spatial_scale_init=0.5):
    ks = jax.random.split(key, 5)

    def trunc(k, shape, std=0.2):
        # nn.init.trunc_normal_(std=0.2): truncated N(0, std) on [-2, 2]
        return std * jax.random.truncated_normal(k, -2.0, 2.0, shape, jnp.float32)

    return dict(
        conv1_w=trunc(ks[0], (num_conv, 6, 4, 8)),
        conv1_b=jnp.zeros((num_conv,), jnp.float32),
        conv2_w=trunc(ks[1], (num_conv, num_conv, 2, 4)),
        conv2_b=jnp.zeros((num_conv,), jnp.float32),
        conv3_w=trunc(ks[2], (num_conv, num_conv, 2, 4)),
        conv3_b=jnp.zeros((num_conv,), jnp.float32),
        linear_w=trunc(ks[3], (num_hidd, num_conv * 6 * 18)),
        linear_b=jnp.zeros((num_hidd,), jnp.float32),
        output_w=trunc(ks[4], (1, num_hidd)),
        output_b=jnp.zeros((1,), jnp.float32),
        ssconv1=spatial_scale_init * jnp.ones((24, 72), jnp.float32),
        ssconv2=spatial_scale_init * jnp.ones((12, 36), jnp.float32),
        ssconv3=spatial_scale_init * jnp.ones((6, 18), jnp.float32),
        lsconv1=layer_scale_init * jnp.ones((num_conv,), jnp.float32),
        lsconv2=layer_scale_init * jnp.ones((num_conv,), jnp.float32),
        lsconv3=layer_scale_init * jnp.ones((num_conv,), jnp.float32),
        gammalinear=layer_scale_init * jnp.ones((num_hidd,), jnp.float32),
    )


if __name__ == "__main__":
    num_conv, num_hidd = 4, 32
    key = jax.random.PRNGKey(0)
    k_param, k_x = jax.random.split(key)
    params = init_params(k_param, num_conv, num_hidd)
    # Architecture fixes the spatial size to 24x72 (ssconv1 / linear dims); batch=2.
    x = jax.random.normal(k_x, (2, 6, 24, 72), dtype=jnp.float32)

    out = jax.jit(cnn_forward)(params, x)
    out = jax.block_until_ready(out)
    assert out.shape == (2,)
    print("KERNEL_OK")
</pallas_src>

<mosaic_0001>
module attributes {stable_mosaic.version = 11 : i64} {
  func.func @kernel(%arg0: i32, %arg1: memref<1x27x474xf32, #tpu.memory_space<vmem>>, %arg2: memref<4x474x288xf32, #tpu.memory_space<vmem>>, %arg3: memref<1x288xf32, #tpu.memory_space<vmem>>, %arg4: memref<24x288xf32, #tpu.memory_space<vmem>>, %arg5: memref<13x24xf32, #tpu.memory_space<vmem>>, %arg6: memref<13x24xf32, #tpu.memory_space<vmem>>, %arg7: memref<288x156xf32, #tpu.memory_space<vmem>>, %arg8: memref<288x156xf32, #tpu.memory_space<vmem>>, %arg9: memref<2x156x144xf32, #tpu.memory_space<vmem>>, %arg10: memref<1x144xf32, #tpu.memory_space<vmem>>, %arg11: memref<12x144xf32, #tpu.memory_space<vmem>>, %arg12: memref<7x12xf32, #tpu.memory_space<vmem>>, %arg13: memref<7x12xf32, #tpu.memory_space<vmem>>, %arg14: memref<144x84xf32, #tpu.memory_space<vmem>>, %arg15: memref<144x84xf32, #tpu.memory_space<vmem>>, %arg16: memref<2x84x72xf32, #tpu.memory_space<vmem>>, %arg17: memref<1x72xf32, #tpu.memory_space<vmem>>, %arg18: memref<6x72xf32, #tpu.memory_space<vmem>>, %arg19: memref<6x72x32xf32, #tpu.memory_space<vmem>>, %arg20: memref<1x32xf32, #tpu.memory_space<vmem>>, %arg21: memref<32x1xf32, #tpu.memory_space<vmem>>, %arg22: memref<1x1xf32, #tpu.memory_space<vmem>>, %arg23: memref<1x1x1xf32, #tpu.memory_space<vmem>>) attributes {dimension_semantics = [#tpu.dimension_semantics<parallel>], iteration_bounds = array<i64: 2>, scalar_prefetch = 0 : i64, scratch_operands = 0 : i64, tpu.core_type = #tpu.core_type<tc>, window_params = [{transform_indices = @transform_0, window_bounds = array<i64: 1, 27, 474>}, {pipeline_mode = #tpu.pipeline_mode<synchronous>, transform_indices = @transform_1, window_bounds = array<i64: 4, 474, 288>}, {pipeline_mode = #tpu.pipeline_mode<synchronous>, transform_indices = @transform_2, window_bounds = array<i64: 1, 288>}, {pipeline_mode = #tpu.pipeline_mode<synchronous>, transform_indices = @transform_3, window_bounds = array<i64: 24, 288>}, {pipeline_mode = #tpu.pipeline_mode<synchronous>, transform_indices = @transform_4, window_bounds = array<i64: 13, 24>}, {pipeline_mode = #tpu.pipeline_mode<synchronous>, transform_indices = @transform_5, window_bounds = array<i64: 13, 24>}, {pipeline_mode = #tpu.pipeline_mode<synchronous>, transform_indices = @transform_6, window_bounds = array<i64: 288, 156>}, {pipeline_mode = #tpu.pipeline_mode<synchronous>, transform_indices = @transform_7, window_bounds = array<i64: 288, 156>}, {pipeline_mode = #tpu.pipeline_mode<synchronous>, transform_indices = @transform_8, window_bounds = array<i64: 2, 156, 144>}, {pipeline_mode = #tpu.pipeline_mode<synchronous>, transform_indices = @transform_9, window_bounds = array<i64: 1, 144>}, {pipeline_mode = #tpu.pipeline_mode<synchronous>, transform_indices = @transform_10, window_bounds = array<i64: 12, 144>}, {pipeline_mode = #tpu.pipeline_mode<synchronous>, transform_indices = @transform_11, window_bounds = array<i64: 7, 12>}, {pipeline_mode = #tpu.pipeline_mode<synchronous>, transform_indices = @transform_12, window_bounds = array<i64: 7, 12>}, {pipeline_mode = #tpu.pipeline_mode<synchronous>, transform_indices = @transform_13, window_bounds = array<i64: 144, 84>}, {pipeline_mode = #tpu.pipeline_mode<synchronous>, transform_indices = @transform_14, window_bounds = array<i64: 144, 84>}, {pipeline_mode = #tpu.pipeline_mode<synchronous>, transform_indices = @transform_15, window_bounds = array<i64: 2, 84, 72>}, {pipeline_mode = #tpu.pipeline_mode<synchronous>, transform_indices = @transform_16, window_bounds = array<i64: 1, 72>}, {pipeline_mode = #tpu.pipeline_mode<synchronous>, transform_indices = @transform_17, window_bounds = array<i64: 6, 72>}, {pipeline_mode = #tpu.pipeline_mode<synchronous>, transform_indices = @transform_18, window_bounds = array<i64: 6, 72, 32>}, {pipeline_mode = #tpu.pipeline_mode<synchronous>, transform_indices = @transform_19, window_bounds = array<i64: 1, 32>}, {pipeline_mode = #tpu.pipeline_mode<synchronous>, transform_indices = @transform_20, window_bounds = array<i64: 32, 1>}, {pipeline_mode = #tpu.pipeline_mode<synchronous>, transform_indices = @transform_21, window_bounds = array<i64: 1, 1>}, {transform_indices = @transform_22, window_bounds = array<i64: 1, 1, 1>}]} {
    %c0 = arith.constant 0 : index
    %c0_0 = arith.constant 0 : index
    %c0_1 = arith.constant 0 : index
    %0 = vector.load %arg1[%c0, %c0_0, %c0_1] : memref<1x27x474xf32, #tpu.memory_space<vmem>>, vector<1x24x474xf32>
    %1 = vector.shape_cast %0 : vector<1x24x474xf32> to vector<24x474xf32>
    %c0_2 = arith.constant 0 : index
    %c0_3 = arith.constant 0 : index
    %c0_4 = arith.constant 0 : index
    %2 = vector.load %arg2[%c0_2, %c0_3, %c0_4] : memref<4x474x288xf32, #tpu.memory_space<vmem>>, vector<1x474x288xf32>
    %3 = vector.shape_cast %2 : vector<1x474x288xf32> to vector<474x288xf32>
    %cst = arith.constant dense<0.000000e+00> : vector<24x288xf32>
    %4 = tpu.matmul %1, %3, %cst {dimension_numbers = #tpu.dot_dimension_numbers<[1], [0], [0], [1], [0, 0, 1, 1], [], []>} : vector<24x474xf32>, vector<474x288xf32>, vector<24x288xf32> -> vector<24x288xf32>
    %c0_5 = arith.constant 0 : index
    %c1 = arith.constant 1 : index
    %c0_6 = arith.constant 0 : index
    %5 = vector.load %arg1[%c0_5, %c1, %c0_6] : memref<1x27x474xf32, #tpu.memory_space<vmem>>, vector<1x24x474xf32>
    %6 = vector.shape_cast %5 : vector<1x24x474xf32> to vector<24x474xf32>
    %c1_7 = arith.constant 1 : index
    %c0_8 = arith.constant 0 : index
    %c0_9 = arith.constant 0 : index
    %7 = vector.load %arg2[%c1_7, %c0_8, %c0_9] : memref<4x474x288xf32, #tpu.memory_space<vmem>>, vector<1x474x288xf32>
    %8 = vector.shape_cast %7 : vector<1x474x288xf32> to vector<474x288xf32>
    %cst_10 = arith.constant dense<0.000000e+00> : vector<24x288xf32>
    %9 = tpu.matmul %6, %8, %cst_10 {dimension_numbers = #tpu.dot_dimension_numbers<[1], [0], [0], [1], [0, 0, 1, 1], [], []>} : vector<24x474xf32>, vector<474x288xf32>, vector<24x288xf32> -> vector<24x288xf32>
    %10 = arith.addf %4, %9 : vector<24x288xf32>
    %c0_11 = arith.constant 0 : index
    %c2 = arith.constant 2 : index
    %c0_12 = arith.constant 0 : index
    %11 = vector.load %arg1[%c0_11, %c2, %c0_12] : memref<1x27x474xf32, #tpu.memory_space<vmem>>, vector<1x24x474xf32>
    %12 = vector.shape_cast %11 : vector<1x24x474xf32> to vector<24x474xf32>
    %c2_13 = arith.constant 2 : index
    %c0_14 = arith.constant 0 : index
    %c0_15 = arith.constant 0 : index
    %13 = vector.load %arg2[%c2_13, %c0_14, %c0_15] : memref<4x474x288xf32, #tpu.memory_space<vmem>>, vector<1x474x288xf32>
    %14 = vector.shape_cast %13 : vector<1x474x288xf32> to vector<474x288xf32>
    %cst_16 = arith.constant dense<0.000000e+00> : vector<24x288xf32>
    %15 = tpu.matmul %12, %14, %cst_16 {dimension_numbers = #tpu.dot_dimension_numbers<[1], [0], [0], [1], [0, 0, 1, 1], [], []>} : vector<24x474xf32>, vector<474x288xf32>, vector<24x288xf32> -> vector<24x288xf32>
    %16 = arith.addf %10, %15 : vector<24x288xf32>
    %c0_17 = arith.constant 0 : index
    %c3 = arith.constant 3 : index
    %c0_18 = arith.constant 0 : index
    %17 = vector.load %arg1[%c0_17, %c3, %c0_18] : memref<1x27x474xf32, #tpu.memory_space<vmem>>, vector<1x24x474xf32>
    %18 = vector.shape_cast %17 : vector<1x24x474xf32> to vector<24x474xf32>
    %c3_19 = arith.constant 3 : index
    %c0_20 = arith.constant 0 : index
    %c0_21 = arith.constant 0 : index
    %19 = vector.load %arg2[%c3_19, %c0_20, %c0_21] : memref<4x474x288xf32, #tpu.memory_space<vmem>>, vector<1x474x288xf32>
    %20 = vector.shape_cast %19 : vector<1x474x288xf32> to vector<474x288xf32>
    %cst_22 = arith.constant dense<0.000000e+00> : vector<24x288xf32>
    %21 = tpu.matmul %18, %20, %cst_22 {dimension_numbers = #tpu.dot_dimension_numbers<[1], [0], [0], [1], [0, 0, 1, 1], [], []>} : vector<24x474xf32>, vector<474x288xf32>, vector<24x288xf32> -> vector<24x288xf32>
    %22 = arith.addf %16, %21 : vector<24x288xf32>
    %c0_23 = arith.constant 0 : index
    %c0_24 = arith.constant 0 : index
    %23 = vector.load %arg3[%c0_23, %c0_24] : memref<1x288xf32, #tpu.memory_space<vmem>>, vector<1x288xf32>
    %24 = vector.broadcast %23 : vector<1x288xf32> to vector<24x288xf32>
    %25 = arith.addf %22, %24 : vector<24x288xf32>
    %c0_25 = arith.constant 0 : index
    %c0_26 = arith.constant 0 : index
    %26 = vector.load %arg4[%c0_25, %c0_26] : memref<24x288xf32, #tpu.memory_space<vmem>>, vector<24x288xf32>
    %27 = arith.mulf %25, %26 : vector<24x288xf32>
    %28 = math.tanh %27 : vector<24x288xf32>
    %c0_27 = arith.constant 0 : index
    %c0_28 = arith.constant 0 : index
    %29 = vector.load %arg5[%c0_27, %c0_28] : memref<13x24xf32, #tpu.memory_space<vmem>>, vector<13x24xf32>
    %cst_29 = arith.constant dense<0.000000e+00> : vector<13x288xf32>
    %30 = tpu.matmul %29, %28, %cst_29 {dimension_numbers = #tpu.dot_dimension_numbers<[1], [0], [0], [1], [0, 0, 1, 1], [], []>} : vector<13x24xf32>, vector<24x288xf32>, vector<13x288xf32> -> vector<13x288xf32>
    %c0_30 = arith.constant 0 : index
    %c0_31 = arith.constant 0 : index
    %31 = vector.load %arg6[%c0_30, %c0_31] : memref<13x24xf32, #tpu.memory_space<vmem>>, vector<13x24xf32>
    %cst_32 = arith.constant dense<0.000000e+00> : vector<13x288xf32>
    %32 = tpu.matmul %31, %28, %cst_32 {dimension_numbers = #tpu.dot_dimension_numbers<[1], [0], [0], [1], [0, 0, 1, 1], [], []>} : vector<13x24xf32>, vector<24x288xf32>, vector<13x288xf32> -> vector<13x288xf32>
    %33 = arith.maximumf %30, %32 : vector<13x288xf32>
    %c0_33 = arith.constant 0 : index
    %c0_34 = arith.constant 0 : index
    %34 = vector.load %arg7[%c0_33, %c0_34] : memref<288x156xf32, #tpu.memory_space<vmem>>, vector<288x156xf32>
    %cst_35 = arith.constant dense<0.000000e+00> : vector<13x156xf32>
    %35 = tpu.matmul %33, %34, %cst_35 {dimension_numbers = #tpu.dot_dimension_numbers<[1], [0], [0], [1], [0, 0, 1, 1], [], []>} : vector<13x288xf32>, vector<288x156xf32>, vector<13x156xf32> -> vector<13x156xf32>
    %c0_36 = arith.constant 0 : index
    %c0_37 = arith.constant 0 : index
    %36 = vector.load %arg8[%c0_36, %c0_37] : memref<288x156xf32, #tpu.memory_space<vmem>>, vector<288x156xf32>
    %cst_38 = arith.constant dense<0.000000e+00> : vector<13x156xf32>
    %37 = tpu.matmul %33, %36, %cst_38 {dimension_numbers = #tpu.dot_dimension_numbers<[1], [0], [0], [1], [0, 0, 1, 1], [], []>} : vector<13x288xf32>, vector<288x156xf32>, vector<13x156xf32> -> vector<13x156xf32>
    %38 = arith.maximumf %35, %37 : vector<13x156xf32>
    %39 = vector.extract_strided_slice %38 {offsets = [0, 0], sizes = [12, 156], strides = [1, 1]} : vector<13x156xf32> to vector<12x156xf32>
    %c0_39 = arith.constant 0 : index
    %c0_40 = arith.constant 0 : index
    %c0_41 = arith.constant 0 : index
    %40 = vector.load %arg9[%c0_39, %c0_40, %c0_41] : memref<2x156x144xf32, #tpu.memory_space<vmem>>, vector<1x156x144xf32>
    %41 = vector.shape_cast %40 : vector<1x156x144xf32> to vector<156x144xf32>
    %cst_42 = arith.constant dense<0.000000e+00> : vector<12x144xf32>
    %42 = tpu.matmul %39, %41, %cst_42 {dimension_numbers = #tpu.dot_dimension_numbers<[1], [0], [0], [1], [0, 0, 1, 1], [], []>} : vector<12x156xf32>, vector<156x144xf32>, vector<12x144xf32> -> vector<12x144xf32>
    %43 = vector.extract_strided_slice %38 {offsets = [1, 0], sizes = [12, 156], strides = [1, 1]} : vector<13x156xf32> to vector<12x156xf32>
    %c1_43 = arith.constant 1 : index
    %c0_44 = arith.constant 0 : index
    %c0_45 = arith.constant 0 : index
    %44 = vector.load %arg9[%c1_43, %c0_44, %c0_45] : memref<2x156x144xf32, #tpu.memory_space<vmem>>, vector<1x156x144xf32>
    %45 = vector.shape_cast %44 : vector<1x156x144xf32> to vector<156x144xf32>
    %cst_46 = arith.constant dense<0.000000e+00> : vector<12x144xf32>
    %46 = tpu.matmul %43, %45, %cst_46 {dimension_numbers = #tpu.dot_dimension_numbers<[1], [0], [0], [1], [0, 0, 1, 1], [], []>} : vector<12x156xf32>, vector<156x144xf32>, vector<12x144xf32> -> vector<12x144xf32>
    %47 = arith.addf %42, %46 : vector<12x144xf32>
    %c0_47 = arith.constant 0 : index
    %c0_48 = arith.constant 0 : index
    %48 = vector.load %arg10[%c0_47, %c0_48] : memref<1x144xf32, #tpu.memory_space<vmem>>, vector<1x144xf32>
    %49 = vector.broadcast %48 : vector<1x144xf32> to vector<12x144xf32>
    %50 = arith.addf %47, %49 : vector<12x144xf32>
    %c0_49 = arith.constant 0 : index
    %c0_50 = arith.constant 0 : index
    %51 = vector.load %arg11[%c0_49, %c0_50] : memref<12x144xf32, #tpu.memory_space<vmem>>, vector<12x144xf32>
    %52 = arith.mulf %50, %51 : vector<12x144xf32>
    %53 = math.tanh %52 : vector<12x144xf32>
    %c0_51 = arith.constant 0 : index
    %c0_52 = arith.constant 0 : index
    %54 = vector.load %arg12[%c0_51, %c0_52] : memref<7x12xf32, #tpu.memory_space<vmem>>, vector<7x12xf32>
    %cst_53 = arith.constant dense<0.000000e+00> : vector<7x144xf32>
    %55 = tpu.matmul %54, %53, %cst_53 {dimension_numbers = #tpu.dot_dimension_numbers<[1], [0], [0], [1], [0, 0, 1, 1], [], []>} : vector<7x12xf32>, vector<12x144xf32>, vector<7x144xf32> -> vector<7x144xf32>
    %c0_54 = arith.constant 0 : index
    %c0_55 = arith.constant 0 : index
    %56 = vector.load %arg13[%c0_54, %c0_55] : memref<7x12xf32, #tpu.memory_space<vmem>>, vector<7x12xf32>
    %cst_56 = arith.constant dense<0.000000e+00> : vector<7x144xf32>
    %57 = tpu.matmul %56, %53, %cst_56 {dimension_numbers = #tpu.dot_dimension_numbers<[1], [0], [0], [1], [0, 0, 1, 1], [], []>} : vector<7x12xf32>, vector<12x144xf32>, vector<7x144xf32> -> vector<7x144xf32>
    %58 = arith.maximumf %55, %57 : vector<7x144xf32>
    %c0_57 = arith.constant 0 : index
    %c0_58 = arith.constant 0 : index
    %59 = vector.load %arg14[%c0_57, %c0_58] : memref<144x84xf32, #tpu.memory_space<vmem>>, vector<144x84xf32>
    %cst_59 = arith.constant dense<0.000000e+00> : vector<7x84xf32>
    %60 = tpu.matmul %58, %59, %cst_59 {dimension_numbers = #tpu.dot_dimension_numbers<[1], [0], [0], [1], [0, 0, 1, 1], [], []>} : vector<7x144xf32>, vector<144x84xf32>, vector<7x84xf32> -> vector<7x84xf32>
    %c0_60 = arith.constant 0 : index
    %c0_61 = arith.constant 0 : index
    %61 = vector.load %arg15[%c0_60, %c0_61] : memref<144x84xf32, #tpu.memory_space<vmem>>, vector<144x84xf32>
    %cst_62 = arith.constant dense<0.000000e+00> : vector<7x84xf32>
    %62 = tpu.matmul %58, %61, %cst_62 {dimension_numbers = #tpu.dot_dimension_numbers<[1], [0], [0], [1], [0, 0, 1, 1], [], []>} : vector<7x144xf32>, vector<144x84xf32>, vector<7x84xf32> -> vector<7x84xf32>
    %63 = arith.maximumf %60, %62 : vector<7x84xf32>
    %64 = vector.extract_strided_slice %63 {offsets = [0, 0], sizes = [6, 84], strides = [1, 1]} : vector<7x84xf32> to vector<6x84xf32>
    %c0_63 = arith.constant 0 : index
    %c0_64 = arith.constant 0 : index
    %c0_65 = arith.constant 0 : index
    %65 = vector.load %arg16[%c0_63, %c0_64, %c0_65] : memref<2x84x72xf32, #tpu.memory_space<vmem>>, vector<1x84x72xf32>
    %66 = vector.shape_cast %65 : vector<1x84x72xf32> to vector<84x72xf32>
    %cst_66 = arith.constant dense<0.000000e+00> : vector<6x72xf32>
    %67 = tpu.matmul %64, %66, %cst_66 {dimension_numbers = #tpu.dot_dimension_numbers<[1], [0], [0], [1], [0, 0, 1, 1], [], []>} : vector<6x84xf32>, vector<84x72xf32>, vector<6x72xf32> -> vector<6x72xf32>
    %68 = vector.extract_strided_slice %63 {offsets = [1, 0], sizes = [6, 84], strides = [1, 1]} : vector<7x84xf32> to vector<6x84xf32>
    %c1_67 = arith.constant 1 : index
    %c0_68 = arith.constant 0 : index
    %c0_69 = arith.constant 0 : index
    %69 = vector.load %arg16[%c1_67, %c0_68, %c0_69] : memref<2x84x72xf32, #tpu.memory_space<vmem>>, vector<1x84x72xf32>
    %70 = vector.shape_cast %69 : vector<1x84x72xf32> to vector<84x72xf32>
    %cst_70 = arith.constant dense<0.000000e+00> : vector<6x72xf32>
    %71 = tpu.matmul %68, %70, %cst_70 {dimension_numbers = #tpu.dot_dimension_numbers<[1], [0], [0], [1], [0, 0, 1, 1], [], []>} : vector<6x84xf32>, vector<84x72xf32>, vector<6x72xf32> -> vector<6x72xf32>
    %72 = arith.addf %67, %71 : vector<6x72xf32>
    %c0_71 = arith.constant 0 : index
    %c0_72 = arith.constant 0 : index
    %73 = vector.load %arg17[%c0_71, %c0_72] : memref<1x72xf32, #tpu.memory_space<vmem>>, vector<1x72xf32>
    %74 = vector.broadcast %73 : vector<1x72xf32> to vector<6x72xf32>
    %75 = arith.addf %72, %74 : vector<6x72xf32>
    %c0_73 = arith.constant 0 : index
    %c0_74 = arith.constant 0 : index
    %76 = vector.load %arg18[%c0_73, %c0_74] : memref<6x72xf32, #tpu.memory_space<vmem>>, vector<6x72xf32>
    %77 = arith.mulf %75, %76 : vector<6x72xf32>
    %78 = math.tanh %77 : vector<6x72xf32>
    %c0_75 = arith.constant 0 : index
    %c0_76 = arith.constant 0 : index
    %79 = vector.load %arg20[%c0_75, %c0_76] : memref<1x32xf32, #tpu.memory_space<vmem>>, vector<1x32xf32>
    %80 = vector.extract_strided_slice %78 {offsets = [0, 0], sizes = [1, 72], strides = [1, 1]} : vector<6x72xf32> to vector<1x72xf32>
    %c0_77 = arith.constant 0 : index
    %c0_78 = arith.constant 0 : index
    %c0_79 = arith.constant 0 : index
    %81 = vector.load %arg19[%c0_77, %c0_78, %c0_79] : memref<6x72x32xf32, #tpu.memory_space<vmem>>, vector<1x72x32xf32>
    %82 = vector.shape_cast %81 : vector<1x72x32xf32> to vector<72x32xf32>
    %cst_80 = arith.constant dense<0.000000e+00> : vector<1x32xf32>
    %83 = tpu.matmul %80, %82, %cst_80 {dimension_numbers = #tpu.dot_dimension_numbers<[1], [0], [0], [1], [0, 0, 1, 1], [], []>} : vector<1x72xf32>, vector<72x32xf32>, vector<1x32xf32> -> vector<1x32xf32>
    %84 = arith.addf %79, %83 : vector<1x32xf32>
    %85 = vector.extract_strided_slice %78 {offsets = [1, 0], sizes = [1, 72], strides = [1, 1]} : vector<6x72xf32> to vector<1x72xf32>
    %c1_81 = arith.constant 1 : index
    %c0_82 = arith.constant 0 : index
    %c0_83 = arith.constant 0 : index
    %86 = vector.load %arg19[%c1_81, %c0_82, %c0_83] : memref<6x72x32xf32, #tpu.memory_space<vmem>>, vector<1x72x32xf32>
    %87 = vector.shape_cast %86 : vector<1x72x32xf32> to vector<72x32xf32>
    %cst_84 = arith.constant dense<0.000000e+00> : vector<1x32xf32>
    %88 = tpu.matmul %85, %87, %cst_84 {dimension_numbers = #tpu.dot_dimension_numbers<[1], [0], [0], [1], [0, 0, 1, 1], [], []>} : vector<1x72xf32>, vector<72x32xf32>, vector<1x32xf32> -> vector<1x32xf32>
    %89 = arith.addf %84, %88 : vector<1x32xf32>
    %90 = vector.extract_strided_slice %78 {offsets = [2, 0], sizes = [1, 72], strides = [1, 1]} : vector<6x72xf32> to vector<1x72xf32>
    %c2_85 = arith.constant 2 : index
    %c0_86 = arith.constant 0 : index
    %c0_87 = arith.constant 0 : index
    %91 = vector.load %arg19[%c2_85, %c0_86, %c0_87] : memref<6x72x32xf32, #tpu.memory_space<vmem>>, vector<1x72x32xf32>
    %92 = vector.shape_cast %91 : vector<1x72x32xf32> to vector<72x32xf32>
    %cst_88 = arith.constant dense<0.000000e+00> : vector<1x32xf32>
    %93 = tpu.matmul %90, %92, %cst_88 {dimension_numbers = #tpu.dot_dimension_numbers<[1], [0], [0], [1], [0, 0, 1, 1], [], []>} : vector<1x72xf32>, vector<72x32xf32>, vector<1x32xf32> -> vector<1x32xf32>
    %94 = arith.addf %89, %93 : vector<1x32xf32>
    %95 = vector.extract_strided_slice %78 {offsets = [3, 0], sizes = [1, 72], strides = [1, 1]} : vector<6x72xf32> to vector<1x72xf32>
    %c3_89 = arith.constant 3 : index
    %c0_90 = arith.constant 0 : index
    %c0_91 = arith.constant 0 : index
    %96 = vector.load %arg19[%c3_89, %c0_90, %c0_91] : memref<6x72x32xf32, #tpu.memory_space<vmem>>, vector<1x72x32xf32>
    %97 = vector.shape_cast %96 : vector<1x72x32xf32> to vector<72x32xf32>
    %cst_92 = arith.constant dense<0.000000e+00> : vector<1x32xf32>
    %98 = tpu.matmul %95, %97, %cst_92 {dimension_numbers = #tpu.dot_dimension_numbers<[1], [0], [0], [1], [0, 0, 1, 1], [], []>} : vector<1x72xf32>, vector<72x32xf32>, vector<1x32xf32> -> vector<1x32xf32>
    %99 = arith.addf %94, %98 : vector<1x32xf32>
    %100 = vector.extract_strided_slice %78 {offsets = [4, 0], sizes = [1, 72], strides = [1, 1]} : vector<6x72xf32> to vector<1x72xf32>
    %c4 = arith.constant 4 : index
    %c0_93 = arith.constant 0 : index
    %c0_94 = arith.constant 0 : index
    %101 = vector.load %arg19[%c4, %c0_93, %c0_94] : memref<6x72x32xf32, #tpu.memory_space<vmem>>, vector<1x72x32xf32>
    %102 = vector.shape_cast %101 : vector<1x72x32xf32> to vector<72x32xf32>
    %cst_95 = arith.constant dense<0.000000e+00> : vector<1x32xf32>
    %103 = tpu.matmul %100, %102, %cst_95 {dimension_numbers = #tpu.dot_dimension_numbers<[1], [0], [0], [1], [0, 0, 1, 1], [], []>} : vector<1x72xf32>, vector<72x32xf32>, vector<1x32xf32> -> vector<1x32xf32>
    %104 = arith.addf %99, %103 : vector<1x32xf32>
    %105 = vector.extract_strided_slice %78 {offsets = [5, 0], sizes = [1, 72], strides = [1, 1]} : vector<6x72xf32> to vector<1x72xf32>
    %c5 = arith.constant 5 : index
    %c0_96 = arith.constant 0 : index
    %c0_97 = arith.constant 0 : index
    %106 = vector.load %arg19[%c5, %c0_96, %c0_97] : memref<6x72x32xf32, #tpu.memory_space<vmem>>, vector<1x72x32xf32>
    %107 = vector.shape_cast %106 : vector<1x72x32xf32> to vector<72x32xf32>
    %cst_98 = arith.constant dense<0.000000e+00> : vector<1x32xf32>
    %108 = tpu.matmul %105, %107, %cst_98 {dimension_numbers = #tpu.dot_dimension_numbers<[1], [0], [0], [1], [0, 0, 1, 1], [], []>} : vector<1x72xf32>, vector<72x32xf32>, vector<1x32xf32> -> vector<1x32xf32>
    %109 = arith.addf %104, %108 : vector<1x32xf32>
    %110 = math.tanh %109 : vector<1x32xf32>
    %c0_99 = arith.constant 0 : index
    %c0_100 = arith.constant 0 : index
    %111 = vector.load %arg21[%c0_99, %c0_100] : memref<32x1xf32, #tpu.memory_space<vmem>>, vector<32x1xf32>
    %cst_101 = arith.constant dense<0.000000e+00> : vector<1x1xf32>
    %112 = tpu.matmul %110, %111, %cst_101 {dimension_numbers = #tpu.dot_dimension_numbers<[1], [0], [0], [1], [0, 0, 1, 1], [], []>} : vector<1x32xf32>, vector<32x1xf32>, vector<1x1xf32> -> vector<1x1xf32>
    %c0_102 = arith.constant 0 : index
    %c0_103 = arith.constant 0 : index
    %113 = vector.load %arg22[%c0_102, %c0_103] : memref<1x1xf32, #tpu.memory_space<vmem>>, vector<1x1xf32>
    %114 = arith.addf %112, %113 : vector<1x1xf32>
    %c0_104 = arith.constant 0 : index
    %c0_105 = arith.constant 0 : index
    %c0_106 = arith.constant 0 : index
    %115 = vector.load %arg23[%c0_104, %c0_105, %c0_106] : memref<1x1x1xf32, #tpu.memory_space<vmem>>, vector<1x1x1xf32>
    %116 = vector.shape_cast %115 : vector<1x1x1xf32> to vector<1x1xf32>
    %117 = vector.shape_cast %114 : vector<1x1xf32> to vector<1x1x1xf32>
    tpu.vector_store %arg23[%c0_104, %c0_105, %c0_106], %117 {strides = array<i32>} : memref<1x1x1xf32, #tpu.memory_space<vmem>>, vector<1x1x1xf32>,
    return
  }
  func.func @transform_0(%arg0: i32) -> (i32, i32, i32) {
    %c0_i32 = arith.constant 0 : i32
    %c0_i32_0 = arith.constant 0 : i32
    %c0_i32_1 = arith.constant 0 : i32
    return %arg0, %c0_i32, %c0_i32_0 : i32, i32, i32
  }
  func.func @transform_1(%arg0: i32) -> (i32, i32, i32) {
    %c0_i32 = arith.constant 0 : i32
    %c0_i32_0 = arith.constant 0 : i32
    %c0_i32_1 = arith.constant 0 : i32
    %c0_i32_2 = arith.constant 0 : i32
    return %c0_i32, %c0_i32_0, %c0_i32_1 : i32, i32, i32
  }
  func.func @transform_2(%arg0: i32) -> (i32, i32) {
    %c0_i32 = arith.constant 0 : i32
    %c0_i32_0 = arith.constant 0 : i32
    %c0_i32_1 = arith.constant 0 : i32
    return %c0_i32, %c0_i32_0 : i32, i32
  }
  func.func @transform_3(%arg0: i32) -> (i32, i32) {
    %c0_i32 = arith.constant 0 : i32
    %c0_i32_0 = arith.constant 0 : i32
    %c0_i32_1 = arith.constant 0 : i32
    return %c0_i32, %c0_i32_0 : i32, i32
  }
  func.func @transform_4(%arg0: i32) -> (i32, i32) {
    %c0_i32 = arith.constant 0 : i32
    %c0_i32_0 = arith.constant 0 : i32
    %c0_i32_1 = arith.constant 0 : i32
    return %c0_i32, %c0_i32_0 : i32, i32
  }
  func.func @transform_5(%arg0: i32) -> (i32, i32) {
    %c0_i32 = arith.constant 0 : i32
    %c0_i32_0 = arith.constant 0 : i32
    %c0_i32_1 = arith.constant 0 : i32
    return %c0_i32, %c0_i32_0 : i32, i32
  }
  func.func @transform_6(%arg0: i32) -> (i32, i32) {
    %c0_i32 = arith.constant 0 : i32
    %c0_i32_0 = arith.constant 0 : i32
    %c0_i32_1 = arith.constant 0 : i32
    return %c0_i32, %c0_i32_0 : i32, i32
  }
  func.func @transform_7(%arg0: i32) -> (i32, i32) {
    %c0_i32 = arith.constant 0 : i32
    %c0_i32_0 = arith.constant 0 : i32
    %c0_i32_1 = arith.constant 0 : i32
    return %c0_i32, %c0_i32_0 : i32, i32
  }
  func.func @transform_8(%arg0: i32) -> (i32, i32, i32) {
    %c0_i32 = arith.constant 0 : i32
    %c0_i32_0 = arith.constant 0 : i32
    %c0_i32_1 = arith.constant 0 : i32
    %c0_i32_2 = arith.constant 0 : i32
    return %c0_i32, %c0_i32_0, %c0_i32_1 : i32, i32, i32
  }
  func.func @transform_9(%arg0: i32) -> (i32, i32) {
    %c0_i32 = arith.constant 0 : i32
    %c0_i32_0 = arith.constant 0 : i32
    %c0_i32_1 = arith.constant 0 : i32
    return %c0_i32, %c0_i32_0 : i32, i32
  }
  func.func @transform_10(%arg0: i32) -> (i32, i32) {
    %c0_i32 = arith.constant 0 : i32
    %c0_i32_0 = arith.constant 0 : i32
    %c0_i32_1 = arith.constant 0 : i32
    return %c0_i32, %c0_i32_0 : i32, i32
  }
  func.func @transform_11(%arg0: i32) -> (i32, i32) {
    %c0_i32 = arith.constant 0 : i32
    %c0_i32_0 = arith.constant 0 : i32
    %c0_i32_1 = arith.constant 0 : i32
    return %c0_i32, %c0_i32_0 : i32, i32
  }
  func.func @transform_12(%arg0: i32) -> (i32, i32) {
    %c0_i32 = arith.constant 0 : i32
    %c0_i32_0 = arith.constant 0 : i32
    %c0_i32_1 = arith.constant 0 : i32
    return %c0_i32, %c0_i32_0 : i32, i32
  }
  func.func @transform_13(%arg0: i32) -> (i32, i32) {
    %c0_i32 = arith.constant 0 : i32
    %c0_i32_0 = arith.constant 0 : i32
    %c0_i32_1 = arith.constant 0 : i32
    return %c0_i32, %c0_i32_0 : i32, i32
  }
  func.func @transform_14(%arg0: i32) -> (i32, i32) {
    %c0_i32 = arith.constant 0 : i32
    %c0_i32_0 = arith.constant 0 : i32
    %c0_i32_1 = arith.constant 0 : i32
    return %c0_i32, %c0_i32_0 : i32, i32
  }
  func.func @transform_15(%arg0: i32) -> (i32, i32, i32) {
    %c0_i32 = arith.constant 0 : i32
    %c0_i32_0 = arith.constant 0 : i32
    %c0_i32_1 = arith.constant 0 : i32
    %c0_i32_2 = arith.constant 0 : i32
    return %c0_i32, %c0_i32_0, %c0_i32_1 : i32, i32, i32
  }
  func.func @transform_16(%arg0: i32) -> (i32, i32) {
    %c0_i32 = arith.constant 0 : i32
    %c0_i32_0 = arith.constant 0 : i32
    %c0_i32_1 = arith.constant 0 : i32
    return %c0_i32, %c0_i32_0 : i32, i32
  }
  func.func @transform_17(%arg0: i32) -> (i32, i32) {
    %c0_i32 = arith.constant 0 : i32
    %c0_i32_0 = arith.constant 0 : i32
    %c0_i32_1 = arith.constant 0 : i32
    return %c0_i32, %c0_i32_0 : i32, i32
  }
  func.func @transform_18(%arg0: i32) -> (i32, i32, i32) {
    %c0_i32 = arith.constant 0 : i32
    %c0_i32_0 = arith.constant 0 : i32
    %c0_i32_1 = arith.constant 0 : i32
    %c0_i32_2 = arith.constant 0 : i32
    return %c0_i32, %c0_i32_0, %c0_i32_1 : i32, i32, i32
  }
  func.func @transform_19(%arg0: i32) -> (i32, i32) {
    %c0_i32 = arith.constant 0 : i32
    %c0_i32_0 = arith.constant 0 : i32
    %c0_i32_1 = arith.constant 0 : i32
    return %c0_i32, %c0_i32_0 : i32, i32
  }
  func.func @transform_20(%arg0: i32) -> (i32, i32) {
    %c0_i32 = arith.constant 0 : i32
    %c0_i32_0 = arith.constant 0 : i32
    %c0_i32_1 = arith.constant 0 : i32
    return %c0_i32, %c0_i32_0 : i32, i32
  }
  func.func @transform_21(%arg0: i32) -> (i32, i32) {
    %c0_i32 = arith.constant 0 : i32
    %c0_i32_0 = arith.constant 0 : i32
    %c0_i32_1 = arith.constant 0 : i32
    return %c0_i32, %c0_i32_0 : i32, i32
  }
  func.func @transform_22(%arg0: i32) -> (i32, i32, i32) {
    %c0_i32 = arith.constant 0 : i32
    %c0_i32_0 = arith.constant 0 : i32
    %c0_i32_1 = arith.constant 0 : i32
    return %arg0, %c0_i32, %c0_i32_0 : i32, i32, i32
  }
}

</mosaic_0001>

<bundles_post_ra>
// kernel: mul.52
= control target key start
LH: loop header
LB: loop body
LE: loop exit
PB: predicated region body
PF: predicated region fallthrough
CT: control target
= control target key end

     0   :  { %s34_s0 = inlined_call_operand.vmem [shape: f32[4], index: 0, kind: input, shape index: {}]   ;;  %s35_s1 = inlined_call_operand.vmem [shape: f32[4], index: 1, kind: input, shape index: {}]   ;;  %s36_s2 = inlined_call_operand.vmem [shape: f32[4], index: 2, kind: output, shape index: {}]  }
   0x1   :  { %v3_v0 = vld [vmem:[%s34_s0] sm:$0x1] }
   0x2   :  { %v4_v1 = vld [vmem:[%s35_s1] sm:$0x1] }
   0x3   :  { %v7_v2 = vmul.f32 %v4_v1, %v3_v0 }
   0x5   :  { %9 = vst [vmem:[%s36_s2] sm:$0x1] %v7_v2 }

// kernel: tile.19
= control target key start
LH: loop header
LB: loop body
LE: loop exit
PB: predicated region body
PF: predicated region fallthrough
CT: control target
= control target key end

     0   :  { %vm123_vm0 = vcmask 1047556   ;;  %vm157_vm1 = vcmask 326656   ;;  %vm223_vm2 = vcmask 457728   ;;  %s374_s25 = smov 72   ;;  %vm125_vm3 = vcmask 588800   ;;  %s375_s28 = smov 16   ;;  %s539_s0 = inlined_call_operand.vmem [shape: f32[24,4,72], index: 0, kind: input, shape index: {}]   ;;  %s540_s1 = inlined_call_operand.vmem [shape: f32[24,288], index: 1, kind: output, shape index: {}]  }
   0x1   :  { %v331_v0 = vld [vmem:[%s539_s0 + $0x5c] sm:$0xf]  ;;  %v332_v1 = vld [vmem:[%s539_s0 + $0x58] sm:$0xf]  ;;  %v333_v2 = vld [vmem:[%s539_s0 + $0x54] sm:$0xf] }
   0x2   :  { %9 = vst [vmem:[#allocation0 + $0xb8] sm:$0xf] %v331_v0  ;;  %14 = vst [vmem:[#allocation0 + $0xb0] sm:$0xf] %v332_v1  ;;  %v334_v3 = vld [vmem:[%s539_s0 + $0x50] sm:$0xf] }
   0x3   :  { %19 = vst [vmem:[#allocation0 + $0xa8] sm:$0xf] %v333_v2  ;;  %v335_v4 = vld [vmem:[%s539_s0 + $0x4c] sm:$0xf]  ;;  %v336_v5 = vld [vmem:[%s539_s0 + $0x48] sm:$0xf] }
   0x4   :  { %24 = vst [vmem:[#allocation0 + $0xa0] sm:$0xf] %v334_v3  ;;  %29 = vst [vmem:[#allocation0 + $0x98] sm:$0xf] %v335_v4  ;;  %v337_v6 = vld [vmem:[%s539_s0 + $0x44] sm:$0xf] }
   0x5   :  { %34 = vst [vmem:[#allocation0 + $0x90] sm:$0xf] %v336_v5  ;;  %v338_v7 = vld [vmem:[%s539_s0 + $0x40] sm:$0xf]  ;;  %v339_v8 = vld [vmem:[%s539_s0 + $0x3c] sm:$0xf] }
   0x6   :  { %39 = vst [vmem:[#allocation0 + $0x88] sm:$0xf] %v337_v6  ;;  %44 = vst [vmem:[#allocation0 + $0x80] sm:$0xf] %v338_v7  ;;  %v340_v9 = vld [vmem:[%s539_s0 + $0x38] sm:$0xf] }
   0x7   :  { %49 = vst [vmem:[#allocation0 + $0x78] sm:$0xf] %v339_v8  ;;  %v341_v10 = vld [vmem:[%s539_s0 + $0x34] sm:$0xf]  ;;  %v342_v11 = vld [vmem:[%s539_s0 + $0x30] sm:$0xf] }
   0x8   :  { %54 = vst [vmem:[#allocation0 + $0x70] sm:$0xf] %v340_v9  ;;  %59 = vst [vmem:[#allocation0 + $0x68] sm:$0xf] %v341_v10  ;;  %v343_v12 = vld [vmem:[%s539_s0 + $0x2c] sm:$0xf] }
   0x9   :  { %64 = vst [vmem:[#allocation0 + $0x60] sm:$0xf] %v342_v11  ;;  %v344_v13 = vld [vmem:[%s539_s0 + $0x28] sm:$0xf]  ;;  %v345_v14 = vld [vmem:[%s539_s0 + $0x24] sm:$0xf] }
   0xa   :  { %69 = vst [vmem:[#allocation0 + $0x58] sm:$0xf] %v343_v12  ;;  %74 = vst [vmem:[#allocation0 + $0x50] sm:$0xf] %v344_v13  ;;  %v346_v15 = vld [vmem:[%s539_s0 + $0x20] sm:$0xf] }
   0xb   :  { %79 = vst [vmem:[#allocation0 + $0x48] sm:$0xf] %v345_v14  ;;  %84 = vst [vmem:[#allocation0 + $0x40] sm:$0xf] %v346_v15  ;;  %v347_v16 = vld [vmem:[%s539_s0 + $0x1c] sm:$0xf] }
   0xc   :  { %v348_v17 = vld [vmem:[%s539_s0 + $0x18] sm:$0xf]  ;;  %v349_v18 = vld [vmem:[%s539_s0 + $0x14] sm:$0xf]  ;;  %89 = vst [vmem:[#allocation0 + $0x38] sm:$0xf] %v347_v16 }
   0xd   :  { %94 = vst [vmem:[#allocation0 + $0x30] sm:$0xf] %v348_v17  ;;  %99 = vst [vmem:[#allocation0 + $0x28] sm:$0xf] %v349_v18  ;;  %v350_v19 = vld [vmem:[%s539_s0 + $0x10] sm:$0xf] }
   0xe   :  { %v351_v20 = vld [vmem:[%s539_s0 + $0xc] sm:$0xf]  ;;  %v352_v21 = vld [vmem:[%s539_s0 + $0x8] sm:$0xf]  ;;  %104 = vst [vmem:[#allocation0 + $0x20] sm:$0xf] %v350_v19 }
   0xf   :  { %109 = vst [vmem:[#allocation0 + $0x18] sm:$0xf] %v351_v20  ;;  %114 = vst [vmem:[#allocation0 + $0x10] sm:$0xf] %v352_v21  ;;  %v353_v22 = vld [vmem:[%s539_s0 + $0x4] sm:$0xf] }
  0x10   :  { %v119_v23 = vld [vmem:[%s539_s0] sm:$0xf]  ;;  %118 = vst [vmem:[#allocation0 + $0x8] sm:$0xf] %v353_v22  ;;  %s373_s0 = smov 88   ;;  %vm161_vm4 = vcmask 261120  }
  0x11   :  { %v148_v24 = vld [vmem:[#allocation0 + $0x83] ss:$8 sm:$0xf0]   ;;  %120 = vst [vmem:[#allocation0] sm:$0xf] %v119_v23  ;;  %vm164_vm5 = vcmask 1048256  }
  0x12   :  { %v146_v25 = vld [vmem:[#allocation0 + $0x83] ss:$8 sm:$0xf]   ;;  %v214_v31 = vld [vmem:[#allocation0 + $0x41] ss:$8 sm:$0xf0]  }
  0x13   :  { %v198_v26 = vld [vmem:[#allocation0 + $0x83] ss:$8 sm:$0xf0]   ;;  %v150_v29 = vsel %vm123_vm0, %v148_v24, %v146_v25  ;;  %v239_v34 = vld [vmem:[#allocation0 + $0x81] ss:$8 sm:$0xf]  }
  0x14   :  { %v154_v27 = vld [vmem:[#allocation0 + $0x43] ss:$8 sm:$0xf0]   ;;  %v212_v36 = vld [vmem:[#allocation0 + $0x41] ss:$8 sm:$0xf]  }
  0x15   :  { %v196_v28 = vld [vmem:[#allocation0 + $0x83] ss:$8 sm:$0xf]   ;;  %v241_v37 = vld [vmem:[#allocation0 + $0x81] ss:$8 sm:$0xf0]   ;;  %v216_v47 = vsel %vm123_vm0, %v214_v31, %v212_v36 }
  0x16   :  { %v170_v30 = vld [vmem:[#allocation0 + $0x43] ss:$8 sm:$0xf0]   ;;  %v200_v40 = vsel %vm123_vm0, %v198_v26, %v196_v28  ;;  %v220_v49 = vld [vmem:[#allocation0 + $0x1] ss:$8 sm:$0xf0]   ;;  %v243_v55 = vsel %vm123_vm0, %v241_v37, %v239_v34 }
  0x17   :  { %v152_v32 = vld [vmem:[#allocation0 + $0x43] ss:$8 sm:$0xf]   ;;  %v235_v54 = vld [vmem:[#allocation0 + $0x1] ss:$8 sm:$0xf0]  }
  0x18   :  { %v168_v33 = vld [vmem:[#allocation0 + $0x43] ss:$8 sm:$0xf]   ;;  %v156_v35 = vsel %vm123_vm0, %v154_v27, %v152_v32  ;;  %v218_v48 = vld [vmem:[#allocation0 + $0x1] ss:$8 sm:$0xf]  }
  0x19   :  { %v158_v38 = vsel %vm157_vm1, %v156_v35, %v150_v29  ;;  %v192_v39 = vld [vmem:[#allocation0 + $0x3] ss:$8 sm:$0xf0]   ;;  %v172_v41 = vsel %vm123_vm0, %v170_v30, %v168_v33  ;;  %v222_v52 = vsel %vm123_vm0, %v220_v49, %v218_v48  ;;  %v233_v53 = vld [vmem:[#allocation0 + $0x1] ss:$8 sm:$0xf]  }
  0x1a   :  { %v176_v42 = vld [vmem:[#allocation0 + $0x3] ss:$8 sm:$0xf0]   ;;  %159 = vrot.lane.b32.xlu0 %v158_v38, %s373_s0  ;;  %v237_v56 = vsel %vm123_vm0, %v235_v54, %v233_v53  ;;  %v255_v57 = vld [vmem:[#allocation0 + $0x81] ss:$8 sm:$0xf]   ;;  %v224_v59 = vsel %vm223_vm2, %v222_v52, %v216_v47 }
  0x1b   :  { %v190_v43 = vld [vmem:[#allocation0 + $0x3] ss:$8 sm:$0xf]   ;;  %v257_v58 = vld [vmem:[#allocation0 + $0x81] ss:$8 sm:$0xf0]   ;;  %v245_v62 = vsel %vm223_vm2, %v243_v55, %v237_v56 }
  0x1c   :  { %v174_v44 = vld [vmem:[#allocation0 + $0x3] ss:$8 sm:$0xf]   ;;  %v194_v45 = vsel %vm123_vm0, %v192_v39, %v190_v43  ;;  %v261_v60 = vld [vmem:[#allocation0 + $0x41] ss:$8 sm:$0xf]   ;;  %v259_v63 = vsel %vm123_vm0, %v257_v58, %v255_v57 }
  0x1d   :  { %v178_v46 = vsel %vm123_vm0, %v176_v42, %v174_v44  ;;  %v202_v50 = vsel %vm157_vm1, %v200_v40, %v194_v45  ;;  %v263_v61 = vld [vmem:[#allocation0 + $0x41] ss:$8 sm:$0xf0]   ;;  %v277_v1 = vld [vmem:[#allocation0 + $0x42] ss:$8 sm:$0xf]  }
  0x1e   :  { %v180_v51 = vsel %vm157_vm1, %v178_v46, %v172_v41  ;;  %203 = vrot.lane.b32.xlu1 %v202_v50, %s373_s0  ;;  %v265_v0 = vsel %vm123_vm0, %v263_v61, %v261_v60  ;;  %v279_v2 = vld [vmem:[#allocation0 + $0x42] ss:$8 sm:$0xf0]   ;;  %v121_v7 = vld [vmem:[#allocation0] ss:$8 sm:$0xf]  }
  0x1f   :  { %181 = vrot.lane.b32.xlu0 %v180_v51, %s373_s0  ;;  %v288_v3 = vld [vmem:[#allocation0 + $0x2] ss:$8 sm:$0xf]   ;;  %v267_v5 = vsel %vm223_vm2, %v265_v0, %v259_v63  ;;  %v281_v8 = vsel %vm123_vm0, %v279_v2, %v277_v1  ;;  %v122_v10 = vld [vmem:[#allocation0] ss:$8 sm:$0xf0]  }
  0x20   :  { %v290_v4 = vld [vmem:[#allocation0 + $0x2] ss:$8 sm:$0xf0]   ;;  %v124_v11 = vsel %vm123_vm0, %v122_v10, %v121_v7  ;;  %v137_v12 = vld [vmem:[#allocation0 + $0x80] ss:$8 sm:$0xf]  }
  0x21   :  { %v299_v6 = vld [vmem:[#allocation0 + $0x82] ss:$8 sm:$0xf]   ;;  %v139_v13 = vld [vmem:[#allocation0 + $0x80] ss:$8 sm:$0xf0]   ;;  %v292_v17 = vsel %vm123_vm0, %v290_v4, %v288_v3 }
  0x22   :  { %225 = vrot.lane.b32.xlu1 %v224_v59, %s374_s25  ;;  %v301_v9 = vld [vmem:[#allocation0 + $0x82] ss:$8 sm:$0xf0]   ;;  %126 = vst.msk [vmem:[%s540_s1] sm:$0xff] %vm125_vm3, %v124_v11   ;;  %v141_v14 = vsel %vm123_vm0, %v139_v13, %v137_v12  ;;  %vm227_vm6 = vcmask 130048   ;;  %vm230_vm7 = vcmask 1048128  }
  0x23   :  { %246 = vrot.lane.b32.xlu0 %v245_v62, %s374_s25  ;;  %v128_v15 = vld [vmem:[#allocation0 + $0x40] ss:$8 sm:$0xf]   ;;  %355 = vst.msk [vmem:[%s540_s1 + $0x30] sm:$0xff] %vm125_vm3, %v141_v14   ;;  %v303_v19 = vsel %vm123_vm0, %v301_v9, %v299_v6  ;;  %vm284_vm8 = vcmask 720000  }
  0x24   :  { %v130_v16 = vld [vmem:[#allocation0 + $0x40] ss:$8 sm:$0xf0]  }
  0x25   :  { %v132_v18 = vsel %vm123_vm0, %v130_v16, %v128_v15 }
  0x26   :  { %268 = vrot.lane.b32.xlu1 %v267_v5, %s374_s25  ;;  %354 = vst.msk [vmem:[%s540_s1 + $0x18] sm:$0xff] %vm125_vm3, %v132_v18  }
  0x27   :  { %282 = vrot.lane.b32.xlu0 %v281_v8, %s375_s28 }
  0x2a   :  { %293 = vrot.lane.b32.xlu1 %v292_v17, %s375_s28 }
  0x2b   :  { %304 = vrot.lane.b32.xlu0 %v303_v19, %s375_s28 }
  0x8c   :  { %v160_v20 = vpop.permute.xlu0 %159  }
  0x8d   :  { %356 = vst.msk [vmem:[%s540_s1 + $0x40] sm:$0xff] %vm161_vm4, %v160_v20  }
  0x8e   :  { %357 = vst.msk [vmem:[%s540_s1 + $0x20] sm:$0xff] %vm164_vm5, %v160_v20  }
  0x90   :  { %v204_v21 = vpop.permute.xlu1 %203  }
  0x91   :  { %360 = vst.msk [vmem:[%s540_s1 + $0x10] sm:$0xff] %vm161_vm4, %v204_v21   ;;  %v182_v22 = vpop.permute.xlu0 %181  }
  0x92   :  { %361 = vst.msk [vmem:[%s540_s1 + $0x38] sm:$0xff] %vm164_vm5, %v204_v21   ;;  %359 = vst.msk [vmem:[%s540_s1 + $0x8] sm:$0xff] %vm164_vm5, %v182_v22  }
  0x93   :  { %358 = vst.msk [vmem:[%s540_s1 + $0x28] sm:$0xff] %vm161_vm4, %v182_v22  }
  0x94   :  { %v226_v23 = vpop.permute.xlu1 %225  }
  0x95   :  { %362 = vst.msk [vmem:[%s540_s1 + $0x20] sm:$0xff] %vm227_vm6, %v226_v23   ;;  %v247_v24 = vpop.permute.xlu0 %246  }
  0x96   :  { %231 = vst.msk [vmem:[%s540_s1] sm:$0xff] %vm230_vm7, %v226_v23   ;;  %364 = vst.msk [vmem:[%s540_s1 + $0x30] sm:$0xff] %vm230_vm7, %v247_v24  }
  0x97   :  { %363 = vst.msk [vmem:[%s540_s1 + $0x8] sm:$0xff] %vm227_vm6, %v247_v24  }
  0x98   :  { %v269_v25 = vpop.permute.xlu1 %268  }
  0x99   :  { %365 = vst.msk [vmem:[%s540_s1 + $0x38] sm:$0xff] %vm227_vm6, %v269_v25   ;;  %v283_v26 = vpop.permute.xlu0 %282  }
  0x9a   :  { %366 = vst.msk [vmem:[%s540_s1 + $0x18] sm:$0xff] %vm230_vm7, %v269_v25  }
  0x9b   :  { %367 = vst.msk [vmem:[%s540_s1 + $0x20] sm:$0xff] %vm284_vm8, %v283_v26  }
  0x9c   :  { %v294_v27 = vpop.permute.xlu1 %293  }
  0x9d   :  { %368 = vst.msk [vmem:[%s540_s1 + $0x8] sm:$0xff] %vm284_vm8, %v294_v27   ;;  %v305_v28 = vpop.permute.xlu0 %304  }
  0x9e   :  { %369 = vst.msk [vmem:[%s540_s1 + $0x38] sm:$0xff] %vm284_vm8, %v305_v28  }

// kernel: tile.24
= control target key start
LH: loop header
LB: loop body
LE: loop exit
PB: predicated region body
PF: predicated region fallthrough
CT: control target
= control target key end

     0   :  { %vm84_vm0 = vcmask 162816   ;;  %vm63_vm1 = vcmask 1047556   ;;  %vm65_vm2 = vcmask 293888   ;;  %s172_s30 = smov 108   ;;  %s173_s4 = smov 36   ;;  %vm88_vm3 = vcmask 130048   ;;  %s259_s0 = inlined_call_operand.vmem [shape: f32[12,4,36], index: 0, kind: input, shape index: {}]   ;;  %s260_s1 = inlined_call_operand.vmem [shape: f32[12,144], index: 1, kind: output, shape index: {}]  }
   0x1   :  { %v151_v0 = vld [vmem:[%s259_s0 + $0x2c] sm:$0xf]  ;;  %v152_v1 = vld [vmem:[%s259_s0 + $0x28] sm:$0xf]  ;;  %v153_v2 = vld [vmem:[%s259_s0 + $0x24] sm:$0xf] }
   0x2   :  { %9 = vst [vmem:[#allocation0 + $0x58] sm:$0xf] %v151_v0  ;;  %14 = vst [vmem:[#allocation0 + $0x50] sm:$0xf] %v152_v1  ;;  %v154_v3 = vld [vmem:[%s259_s0 + $0x20] sm:$0xf] }
   0x3   :  { %19 = vst [vmem:[#allocation0 + $0x48] sm:$0xf] %v153_v2  ;;  %24 = vst [vmem:[#allocation0 + $0x40] sm:$0xf] %v154_v3  ;;  %v155_v4 = vld [vmem:[%s259_s0 + $0x1c] sm:$0xf] }
   0x4   :  { %v156_v5 = vld [vmem:[%s259_s0 + $0x18] sm:$0xf]  ;;  %v157_v6 = vld [vmem:[%s259_s0 + $0x14] sm:$0xf]  ;;  %29 = vst [vmem:[#allocation0 + $0x38] sm:$0xf] %v155_v4 }
   0x5   :  { %34 = vst [vmem:[#allocation0 + $0x30] sm:$0xf] %v156_v5  ;;  %39 = vst [vmem:[#allocation0 + $0x28] sm:$0xf] %v157_v6  ;;  %v158_v7 = vld [vmem:[%s259_s0 + $0x10] sm:$0xf] }
   0x6   :  { %v159_v8 = vld [vmem:[%s259_s0 + $0xc] sm:$0xf]  ;;  %v160_v9 = vld [vmem:[%s259_s0 + $0x8] sm:$0xf]  ;;  %44 = vst [vmem:[#allocation0 + $0x20] sm:$0xf] %v158_v7 }
   0x7   :  { %49 = vst [vmem:[#allocation0 + $0x18] sm:$0xf] %v159_v8  ;;  %54 = vst [vmem:[#allocation0 + $0x10] sm:$0xf] %v160_v9  ;;  %v161_v10 = vld [vmem:[%s259_s0 + $0x4] sm:$0xf] }
   0x8   :  { %v59_v11 = vld [vmem:[%s259_s0] sm:$0xf]  ;;  %58 = vst [vmem:[#allocation0 + $0x8] sm:$0xf] %v161_v10  ;;  %s171_s0 = smov 72   ;;  %vm91_vm4 = vcmask 1048416  }
   0x9   :  { %60 = vst [vmem:[#allocation0] sm:$0xf] %v59_v11  ;;  %vm115_vm5 = vcmask 884288   ;;  %vm132_vm6 = vcmask 589088  }
   0xa   :  { %v118_v12 = vld [vmem:[#allocation0 + $0x42] ss:$8 sm:$0xf]   ;;  %v94_v13 = vld [vmem:[#allocation0 + $0x43] ss:$8 sm:$0xf]  }
   0xb   :  { %119 = vrot.lane.b32.xlu1 %v118_v12, %s171_s0  ;;  %v96_v14 = vld [vmem:[#allocation0 + $0x43] ss:$8 sm:$0xf]   ;;  %v135_v24 = vld [vmem:[#allocation0 + $0x41] ss:$8 sm:$0xf]  }
   0xc   :  { %v98_v15 = vsel %vm84_vm0, %v96_v14, %v94_v13  ;;  %v68_v29 = vld [vmem:[#allocation0 + $0x40] ss:$8 sm:$0xf]  }
   0xd   :  { %v110_v16 = vld [vmem:[#allocation0 + $0x2] ss:$8 sm:$0xf0]   ;;  %v75_v17 = vld [vmem:[#allocation0 + $0x3] ss:$8 sm:$0xf0]   ;;  %99 = vrot.lane.b32.xlu0 %v98_v15, %s172_s30 }
   0xe   :  { %v81_v23 = vld [vmem:[#allocation0 + $0x3] ss:$8 sm:$0xf0]   ;;  %v127_v27 = vld [vmem:[#allocation0 + $0x1] ss:$8 sm:$0xf0]  }
   0xf   :  { %162 = vst.msk [vmem:[%s260_s1 + $0x10] sm:$0xf] %vm65_vm2, %v68_v29   ;;  %v62_v31 = vld [vmem:[#allocation0] ss:$8 sm:$0xf0]  }
  0x10   :  { %v108_v18 = vld [vmem:[#allocation0 + $0x2] ss:$8 sm:$0xf]   ;;  %v73_v19 = vld [vmem:[#allocation0 + $0x3] ss:$8 sm:$0xf]  }
  0x11   :  { %v112_v20 = vsel %vm63_vm1, %v110_v16, %v108_v18  ;;  %v77_v21 = vsel %vm63_vm1, %v75_v17, %v73_v19  ;;  %v79_v22 = vld [vmem:[#allocation0 + $0x3] ss:$8 sm:$0xf]   ;;  %v125_v26 = vld [vmem:[#allocation0 + $0x1] ss:$8 sm:$0xf]  }
  0x12   :  { %113 = vrot.lane.b32.xlu1 %v112_v20, %s171_s0  ;;  %v83_v25 = vsel %vm63_vm1, %v81_v23, %v79_v22  ;;  %v61_v30 = vld [vmem:[#allocation0] ss:$8 sm:$0xf]   ;;  %v129_v32 = vsel %vm63_vm1, %v127_v27, %v125_v26 }
  0x13   :  { %v85_v28 = vsel %vm84_vm0, %v83_v25, %v77_v21  ;;  %v64_v33 = vsel %vm63_vm1, %v62_v31, %v61_v30 }
  0x14   :  { %86 = vrot.lane.b32.xlu0 %v85_v28, %s172_s30  ;;  %66 = vst.msk [vmem:[%s260_s1] sm:$0xff] %vm65_vm2, %v64_v33  }
  0x16   :  { %136 = vrot.lane.b32.xlu1 %v135_v24, %s173_s4 }
  0x18   :  { %130 = vrot.lane.b32.xlu0 %v129_v32, %s173_s4 }
  0x7d   :  { %v120_v34 = vpop.permute.xlu1 %119  }
  0x7f   :  { %v100_v35 = vpop.permute.xlu0 %99  }
  0x80   :  { %164 = vst.msk [vmem:[%s260_s1 + $0x18] sm:$0xf] %vm88_vm3, %v100_v35  }
  0x81   :  { %165 = vst.msk [vmem:[%s260_s1 + $0x10] sm:$0xf] %vm91_vm4, %v100_v35  }
  0x82   :  { %166 = vst.msk [vmem:[%s260_s1 + $0x10] sm:$0xf] %vm115_vm5, %v120_v34  }
  0x84   :  { %v114_v36 = vpop.permute.xlu1 %113  }
  0x86   :  { %v87_v37 = vpop.permute.xlu0 %86  }
  0x87   :  { %163 = vst.msk [vmem:[%s260_s1 + $0x8] sm:$0xff] %vm88_vm3, %v87_v37  }
  0x88   :  { %92 = vst.msk [vmem:[%s260_s1] sm:$0xff] %vm91_vm4, %v87_v37   ;;  %v137_v38 = vpop.permute.xlu1 %136  }
  0x89   :  { %116 = vst.msk [vmem:[%s260_s1] sm:$0xff] %vm115_vm5, %v114_v36  }
  0x8a   :  { %167 = vst.msk [vmem:[%s260_s1 + $0x10] sm:$0xf] %vm132_vm6, %v137_v38   ;;  %v131_v39 = vpop.permute.xlu0 %130  }
  0x8b   :  { %133 = vst.msk [vmem:[%s260_s1] sm:$0xff] %vm132_vm6, %v131_v39  }

// kernel: tile.29
= control target key start
LH: loop header
LB: loop body
LE: loop exit
PB: predicated region body
PF: predicated region fallthrough
CT: control target
= control target key end

     0   :  { %vm34_vm0 = vcmask 1045508   ;;  %s52_s18 = smov 48  ;;  %s63_s19 = smov 48  ;;  %vm36_vm1 = vcmask 146432   ;;  %vm47_vm2 = vcmask 589232   ;;  %vm58_vm3 = vcmask 441632   ;;  %s130_s0 = inlined_call_operand.vmem [shape: f32[6,4,18], index: 0, kind: input, shape index: {}]   ;;  %s131_s1 = inlined_call_operand.vmem [shape: f32[6,72], index: 1, kind: output, shape index: {}]  }
   0x1   :  { %v75_v0 = vld [vmem:[%s130_s0 + $0x14] sm:$0xf]  ;;  %v76_v1 = vld [vmem:[%s130_s0 + $0x10] sm:$0xf]  ;;  %v77_v2 = vld [vmem:[%s130_s0 + $0xc] sm:$0xf] }
   0x2   :  { %9 = vst [vmem:[#allocation0 + $0x28] sm:$0xf] %v75_v0  ;;  %14 = vst [vmem:[#allocation0 + $0x20] sm:$0xf] %v76_v1  ;;  %v78_v3 = vld [vmem:[%s130_s0 + $0x8] sm:$0xf] }
   0x3   :  { %19 = vst [vmem:[#allocation0 + $0x18] sm:$0xf] %v77_v2  ;;  %v79_v4 = vld [vmem:[%s130_s0 + $0x4] sm:$0xf]  ;;  %v29_v5 = vld [vmem:[%s130_s0] sm:$0xf] }
   0x4   :  { %24 = vst [vmem:[#allocation0 + $0x10] sm:$0xf] %v78_v3  ;;  %28 = vst [vmem:[#allocation0 + $0x8] sm:$0xf] %v79_v4  ;;  %s41_s0 = smov 48  ;;  %s32_s20 = smov 48 }
   0x5   :  { %30 = vst [vmem:[#allocation0] sm:$0xf] %v29_v5  ;;  %s83_s21 = smov 54   ;;  %s84_s22 = smov 18   ;;  %vm69_vm4 = vcmask 294032  }
   0x6   :  { %s85_s25 = smov 36  }
   0xc   :  { %v39_v6 = vld [vmem:[#allocation0 + $0x3] ss:$8 sm:$0xf]   ;;  %v50_v9 = vld [vmem:[#allocation0 + $0x2] ss:$8 sm:$0xf]  }
   0xd   :  { %v42_v7 = vld [vmem:[#allocation0 + $0x3] ss:$8 sm:%s41_s0]   ;;  %v53_v10 = vld [vmem:[#allocation0 + $0x2] ss:$8 sm:%s52_s18]   ;;  %v64_v12 = vld [vmem:[#allocation0 + $0x1] ss:$8 sm:%s63_s19]  }
   0xe   :  { %v44_v8 = vsel %vm34_vm0, %v42_v7, %v39_v6  ;;  %v61_v11 = vld [vmem:[#allocation0 + $0x1] ss:$8 sm:$0xf]   ;;  %v55_v13 = vsel %vm34_vm0, %v53_v10, %v50_v9  ;;  %v31_v15 = vld [vmem:[#allocation0] ss:$8 sm:$0xf]  }
   0xf   :  { %45 = vrot.lane.b32.xlu0 %v44_v8, %s83_s21  ;;  %v66_v14 = vsel %vm34_vm0, %v64_v12, %v61_v11  ;;  %v33_v16 = vld [vmem:[#allocation0] ss:$8 sm:%s32_s20]  }
  0x10   :  { %67 = vrot.lane.b32.xlu1 %v66_v14, %s84_s22  ;;  %v35_v17 = vsel %vm34_vm0, %v33_v16, %v31_v15 }
  0x11   :  { %37 = vst.msk [vmem:[%s131_s1] sm:$0x3f] %vm36_vm1, %v35_v17  }
  0x13   :  { %56 = vrot.lane.b32.xlu0 %v55_v13, %s85_s25 }
  0x81   :  { %v46_v18 = vpop.permute.xlu0 %45  }
  0x82   :  { %48 = vst.msk [vmem:[%s131_s1] sm:$0x3f] %vm47_vm2, %v46_v18   ;;  %v68_v19 = vpop.permute.xlu1 %67  }
  0x85   :  { %v57_v20 = vpop.permute.xlu0 %56  }
  0x86   :  { %59 = vst.msk [vmem:[%s131_s1] sm:$0x3f] %vm58_vm3, %v57_v20  }
  0x87   :  { %70 = vst.msk [vmem:[%s131_s1] sm:$0x3f] %vm69_vm4, %v68_v19  }

// kernel: cnn_forward.1
= control target key start
LH: loop header
LB: loop body
LE: loop exit
PB: predicated region body
PF: predicated region fallthrough
CT: control target
= control target key end

     0   :  { %s6644_s29 = smov 0   ;;  %s10755_s0 = inlined_call_operand.vmem [shape: f32[2,27,474], index: 0, kind: input, shape index: {}]   ;;  %s10756_s1 = inlined_call_operand.vmem [shape: f32[4,474,288], index: 1, kind: input, shape index: {}]   ;;  %s10757_s2 = inlined_call_operand.vmem [shape: f32[1,288], index: 2, kind: input, shape index: {}]   ;;  %s10758_s3 = inlined_call_operand.vmem [shape: f32[24,288], index: 3, kind: input, shape index: {}]   ;;  %s10759_s4 = inlined_call_operand.vmem [shape: f32[13,24], index: 4, kind: input, shape index: {}]   ;;  %s10760_s5 = inlined_call_operand.vmem [shape: f32[13,24], index: 5, kind: input, shape index: {}]   ;;  %s10761_s6 = inlined_call_operand.vmem [shape: f32[288,156], index: 6, kind: input, shape index: {}]   ;;  %s10762_s7 = inlined_call_operand.vmem [shape: f32[288,156], index: 7, kind: input, shape index: {}]   ;;  %s10763_s8 = inlined_call_operand.vmem [shape: f32[2,156,144], index: 8, kind: input, shape index: {}]   ;;  %s10764_s9 = inlined_call_operand.vmem [shape: f32[1,144], index: 9, kind: input, shape index: {}]   ;;  %s10765_s10 = inlined_call_operand.vmem [shape: f32[12,144], index: 10, kind: input, shape index: {}]   ;;  %s10766_s11 = inlined_call_operand.vmem [shape: f32[7,12], index: 11, kind: input, shape index: {}]   ;;  %s10767_s12 = inlined_call_operand.vmem [shape: f32[7,12], index: 12, kind: input, shape index: {}]   ;;  %s10768_s13 = inlined_call_operand.vmem [shape: f32[144,84], index: 13, kind: input, shape index: {}]   ;;  %s10769_s14 = inlined_call_operand.vmem [shape: f32[144,84], index: 14, kind: input, shape index: {}]   ;;  %s10770_s15 = inlined_call_operand.vmem [shape: f32[2,84,72], index: 15, kind: input, shape index: {}]   ;;  %s10771_s16 = inlined_call_operand.vmem [shape: f32[1,72], index: 16, kind: input, shape index: {}]   ;;  %s10772_s17 = inlined_call_operand.vmem [shape: f32[6,72], index: 17, kind: input, shape index: {}]   ;;  %s10773_s18 = inlined_call_operand.vmem [shape: f32[6,72,32], index: 18, kind: input, shape index: {}]   ;;  %s10774_s19 = inlined_call_operand.vmem [shape: f32[1,32], index: 19, kind: input, shape index: {}]   ;;  %s10775_s20 = inlined_call_operand.vmem [shape: f32[32,1], index: 20, kind: input, shape index: {}]   ;;  %s10776_s21 = inlined_call_operand.<no memory space> [shape: f32[1,1], index: 21, kind: input, shape index: {}]   ;;  %s10777_s22 = inlined_call_operand.vmem [shape: f32[2,1,1], index: 22, kind: output, shape index: {}]  }
   0x1   :  { %10784 = sst [smem:[#allocation3_spill]] %s10755_s0  ;;  %v27_v0 = vstv %s10776_s21 }
   0x2   :  { %10785 = sst [smem:[#allocation4_spill]] %s10756_s1  ;;  %28 = vst [vmem:[#allocation2] sm:$0x1] %v27_v0 }
   0x3   :  { %10786 = sst [smem:[#allocation5_spill]] %s10757_s2 }
   0x4   :  { %10787 = sst [smem:[#allocation6_spill]] %s10758_s3 }
   0x5   :  { %10788 = sst [smem:[#allocation7_spill]] %s10759_s4 }
   0x6   :  { %10789 = sst [smem:[#allocation8_spill]] %s10760_s5 }
   0x7   :  { %10790 = sst [smem:[#allocation9_spill]] %s10761_s6 }
   0x8 LB: > { %s5272_s30 = sadd.s32 4294967295, %s6522_s29   ;;  %p5276_p0 = scmp.ge.s32.totalorder %s6522_s29, 1  ;;  %s6522_s29 = sphi %s6644_s29, %s34_s29  }
   0x9   : > { %p614_p1 = scmp.lt.s32.totalorder %s6522_s29, 3 }
   0xb   : > { %p615_p2 = pnand %p5276_p0, %p614_p1 }
   0xc   : > { %s10791_s23 = sld [smem:[#allocation4_spill]] (!%p615_p2)  ;;  %p6871_p3 = scmp.lt.s32.totalorder (!%p615_p2), %s5272_s30, 1 }
   0xd   : > { %618 = sbr.rel (%p615_p2) target bundleno = 2492 (0x9bc), region = 108  ;;  %s10793_s0 = sld [smem:[#allocation3_spill]] (!%p615_p2) }
   0xe   : > { %s10794_s1 = sld [smem:[#allocation5_spill]] (!%p615_p2) }
   0xf   : > { %s10795_s6 = sld [smem:[#allocation6_spill]] (!%p615_p2) }
  0x10   : > { %s10797_s24 = sld [smem:[#allocation8_spill]] (!%p615_p2) }
  0x11   : > { %s10798_s3 = sld [smem:[#allocation9_spill]] (!%p615_p2) }
  0x12   : > { %v5325_v1 = vld [vmem:[%s10791_s23 + $0x710] sm:$0xff]  ;;  %v5324_v3 = vld [vmem:[%s10791_s23 + $0x708] sm:$0xff]  ;;  %v5322_v5 = vld [vmem:[%s10791_s23 + $0x6f8] sm:$0xff]  ;;  %vm1124_vm0 = vcmask 1041408   ;;  %s10800_s30 = smov (!%p6871_p3, %s5272_s30), 1  ;;  %vm1079_vm1 = vcmask 1046528  }
  0x13   : > { %v5421_v2 = vld [vmem:[%s10791_s23 + $0xa10] sm:$0xff]  ;;  %1134 = vmatprep.subr.mxu0 %v5325_v1  ;;  %v5420_v4 = vld [vmem:[%s10791_s23 + $0xa08] sm:$0xff]  ;;  %v5418_v6 = vld [vmem:[%s10791_s23 + $0x9f8] sm:$0xff]  ;;  %s5993_s2 = sshll.u32 %s10800_s30, 7  ;;  %vm1117_vm2 = vcmask 736256   ;;  %vm1999_vm3 = vcmask 1045504  }
  0x14   : > { %1217 = vmatprep.subr.mxu1 %v5421_v2  ;;  %1135 = vmatpush1.msra.mxu0 %v5324_v3  ;;  %v5321_v7 = vld [vmem:[%s10791_s23 + $0x6f0] sm:$0xff]  ;;  %v5319_v9 = vld [vmem:[%s10791_s23 + $0x6e0] sm:$0xff]  ;;  %v5318_v11 = vld [vmem:[%s10791_s23 + $0x6d8] sm:$0xff]  ;;  %s6952_s28 = scalar_lea.vmem %s10793_s0, %s5993_s2  ;;  %vm2584_vm4 = vcmask 1044480   ;;  %s10796_s2 = sld [smem:[#allocation7_spill]]  ;;  %vm3027_vm5 = vcmask 195584  }
  0x15   : > { %1218 = vmatpush1.msra.mxu1 %v5420_v4  ;;  %v5417_v8 = vld [vmem:[%s10791_s23 + $0x9f0] sm:$0xff]  ;;  %1136 = vmatprep.subr.mxu0 %v5322_v5  ;;  %v5415_v10 = vld [vmem:[%s10791_s23 + $0x9e0] sm:$0xff]  ;;  %v5414_v12 = vld [vmem:[%s10791_s23 + $0x9d8] sm:$0xff]  ;;  %vm3424_vm6 = vcmask 261120   ;;  %vm3913_vm7 = vcmask 1043456   ;;  %vm3908_vm8 = vcmask 228352   ;;  %s681_s0 = scalar_lea.vmem %s10777_s22, %s10800_s30 }
  0x16   : > { %1219 = vmatprep.subr.mxu1 %v5418_v6  ;;  %1137 = vmatpush1.msra.mxu0 %v5321_v7  ;;  %v5316_v13 = vld [vmem:[%s10791_s23 + $0x6c8] sm:$0xff]  ;;  %v5315_v15 = vld [vmem:[%s10791_s23 + $0x6c0] sm:$0xff]  ;;  %v5313_v17 = vld [vmem:[%s10791_s23 + $0x6b0] sm:$0xff]  ;;  %vm4113_vm9 = vcmask 97280   ;;  %vm4289_vm10 = vcmask 130048   ;;  %vm6525_vm11 = vmmov 0  }
  0x17   : > { %1220 = vmatpush1.msra.mxu1 %v5417_v8  ;;  %v5412_v14 = vld [vmem:[%s10791_s23 + $0x9c8] sm:$0xff]  ;;  %1138 = vmatprep.subr.mxu0 %v5319_v9  ;;  %v5411_v16 = vld [vmem:[%s10791_s23 + $0x9c0] sm:$0xff]  ;;  %v5409_v18 = vld [vmem:[%s10791_s23 + $0x9b0] sm:$0xff]  ;;  %vm4477_vm12 = vcmask 687104   ;;  %vm4649_vm13 = vcmask 588800   ;;  %vm5223_vm14 = vcmask 0  }
  0x18   : > { %1221 = vmatprep.subr.mxu1 %v5415_v10  ;;  %1139 = vmatpush1.msra.mxu0 %v5318_v11  ;;  %v5312_v19 = vld [vmem:[%s10791_s23 + $0x6a8] sm:$0xff]  ;;  %v5310_v21 = vld [vmem:[%s10791_s23 + $0x698] sm:$0xff]  ;;  %v5309_v23 = vld [vmem:[%s10791_s23 + $0x690] sm:$0xff] }
  0x19   : > { %1222 = vmatpush1.msra.mxu1 %v5414_v12  ;;  %1140 = vmatprep.subr.mxu0 %v5316_v13  ;;  %v5408_v20 = vld [vmem:[%s10791_s23 + $0x9a8] sm:$0xff]  ;;  %v5406_v22 = vld [vmem:[%s10791_s23 + $0x998] sm:$0xff]  ;;  %v5405_v24 = vld [vmem:[%s10791_s23 + $0x990] sm:$0xff] }
  0x1a   : > { %1223 = vmatprep.subr.mxu1 %v5412_v14  ;;  %1141 = vmatpush1.msra.mxu0 %v5315_v15  ;;  %v5307_v25 = vld [vmem:[%s10791_s23 + $0x680] sm:$0xff]  ;;  %v5306_v27 = vld [vmem:[%s10791_s23 + $0x678] sm:$0xff]  ;;  %v5304_v29 = vld [vmem:[%s10791_s23 + $0x668] sm:$0xff] }
  0x1b   : > { %1224 = vmatpush1.msra.mxu1 %v5411_v16  ;;  %1142 = vmatprep.subr.mxu0 %v5313_v17  ;;  %v5403_v26 = vld [vmem:[%s10791_s23 + $0x980] sm:$0xff]  ;;  %v5402_v28 = vld [vmem:[%s10791_s23 + $0x978] sm:$0xff]  ;;  %v5400_v30 = vld [vmem:[%s10791_s23 + $0x968] sm:$0xff] }
  0x1c   : > { %1225 = vmatprep.subr.mxu1 %v5409_v18  ;;  %1143 = vmatpush1.msra.mxu0 %v5312_v19  ;;  %v5303_v31 = vld [vmem:[%s10791_s23 + $0x660] sm:$0xff]  ;;  %v5301_v33 = vld [vmem:[%s10791_s23 + $0x650] sm:$0xff]  ;;  %v5300_v35 = vld [vmem:[%s10791_s23 + $0x648] sm:$0xff] }
  0x1d   : > { %1226 = vmatpush1.msra.mxu1 %v5408_v20  ;;  %1144 = vmatprep.subr.mxu0 %v5310_v21  ;;  %v5399_v32 = vld [vmem:[%s10791_s23 + $0x960] sm:$0xff]  ;;  %v5397_v34 = vld [vmem:[%s10791_s23 + $0x950] sm:$0xff]  ;;  %v5396_v36 = vld [vmem:[%s10791_s23 + $0x948] sm:$0xff] }
  0x1e   : > { %1227 = vmatprep.subr.mxu1 %v5406_v22  ;;  %1145 = vmatpush1.msra.mxu0 %v5309_v23  ;;  %v5298_v37 = vld [vmem:[%s10791_s23 + $0x638] sm:$0xff]  ;;  %v5297_v39 = vld [vmem:[%s10791_s23 + $0x630] sm:$0xff]  ;;  %v5295_v41 = vld [vmem:[%s10791_s23 + $0x620] sm:$0xff] }
  0x1f   : > { %1228 = vmatpush1.msra.mxu1 %v5405_v24  ;;  %1146 = vmatprep.subr.mxu0 %v5307_v25  ;;  %v5394_v38 = vld [vmem:[%s10791_s23 + $0x938] sm:$0xff]  ;;  %v5393_v40 = vld [vmem:[%s10791_s23 + $0x930] sm:$0xff]  ;;  %v5391_v42 = vld [vmem:[%s10791_s23 + $0x920] sm:$0xff] }
  0x20   : > { %1229 = vmatprep.subr.mxu1 %v5403_v26  ;;  %1147 = vmatpush1.msra.mxu0 %v5306_v27  ;;  %v5294_v43 = vld [vmem:[%s10791_s23 + $0x618] sm:$0xff]  ;;  %v5292_v45 = vld [vmem:[%s10791_s23 + $0x608] sm:$0xff]  ;;  %v5291_v47 = vld [vmem:[%s10791_s23 + $0x600] sm:$0xff] }
  0x21   : > { %1230 = vmatpush1.msra.mxu1 %v5402_v28  ;;  %1148 = vmatprep.subr.mxu0 %v5304_v29  ;;  %v5390_v44 = vld [vmem:[%s10791_s23 + $0x918] sm:$0xff]  ;;  %v5388_v46 = vld [vmem:[%s10791_s23 + $0x908] sm:$0xff]  ;;  %v5387_v48 = vld [vmem:[%s10791_s23 + $0x900] sm:$0xff] }
  0x22   : > { %1231 = vmatprep.subr.mxu1 %v5400_v30  ;;  %1149 = vmatpush1.msra.mxu0 %v5303_v31  ;;  %v5289_v49 = vld [vmem:[%s10791_s23 + $0x5f0] sm:$0xff]  ;;  %v5288_v51 = vld [vmem:[%s10791_s23 + $0x5e8] sm:$0xff]  ;;  %v5286_v53 = vld [vmem:[%s10791_s23 + $0x5d8] sm:$0xff] }
  0x23   : > { %1232 = vmatpush1.msra.mxu1 %v5399_v32  ;;  %1150 = vmatprep.subr.mxu0 %v5301_v33  ;;  %v5385_v50 = vld [vmem:[%s10791_s23 + $0x8f0] sm:$0xff]  ;;  %v5384_v52 = vld [vmem:[%s10791_s23 + $0x8e8] sm:$0xff]  ;;  %v5382_v54 = vld [vmem:[%s10791_s23 + $0x8d8] sm:$0xff] }
  0x24   : > { %1233 = vmatprep.subr.mxu1 %v5397_v34  ;;  %1151 = vmatpush1.msra.mxu0 %v5300_v35  ;;  %v5285_v55 = vld [vmem:[%s10791_s23 + $0x5d0] sm:$0xff]  ;;  %v5283_v57 = vld [vmem:[%s10791_s23 + $0x5c0] sm:$0xff]  ;;  %v5282_v59 = vld [vmem:[%s10791_s23 + $0x5b8] sm:$0xff] }
  0x25   : > { %1234 = vmatpush1.msra.mxu1 %v5396_v36  ;;  %1152 = vmatprep.subr.mxu0 %v5298_v37  ;;  %v5381_v56 = vld [vmem:[%s10791_s23 + $0x8d0] sm:$0xff]  ;;  %v5379_v58 = vld [vmem:[%s10791_s23 + $0x8c0] sm:$0xff]  ;;  %v5378_v60 = vld [vmem:[%s10791_s23 + $0x8b8] sm:$0xff] }
  0x26   : > { %1235 = vmatprep.subr.mxu1 %v5394_v38  ;;  %1153 = vmatpush1.msra.mxu0 %v5297_v39  ;;  %v5280_v61 = vld [vmem:[%s10791_s23 + $0x5a8] sm:$0xff]  ;;  %v5279_v63 = vld [vmem:[%s10791_s23 + $0x5a0] sm:$0xff]  ;;  %v5373_v1 = vld [vmem:[%s10791_s23 + $0x890] sm:$0xff] }
  0x27   : > { %1236 = vmatpush1.msra.mxu1 %v5393_v40  ;;  %1154 = vmatprep.subr.mxu0 %v5295_v41  ;;  %v5376_v62 = vld [vmem:[%s10791_s23 + $0x8a8] sm:$0xff]  ;;  %v5375_v0 = vld [vmem:[%s10791_s23 + $0x8a0] sm:$0xff]  ;;  %v5457_v2 = vld [vmem:[%s10791_s23 + $0xb30] sm:$0x3] }
  0x28   : > { %1237 = vmatprep.subr.mxu1 %v5391_v42  ;;  %1155 = vmatpush1.msra.mxu0 %v5294_v43  ;;  %v5372_v3 = vld [vmem:[%s10791_s23 + $0x888] sm:$0xff]  ;;  %v5370_v5 = vld [vmem:[%s10791_s23 + $0x878] sm:$0xff]  ;;  %v5369_v7 = vld [vmem:[%s10791_s23 + $0x870] sm:$0xff] }
  0x29   : > { %1238 = vmatpush1.msra.mxu1 %v5390_v44  ;;  %1156 = vmatprep.subr.mxu0 %v5292_v45  ;;  %v5456_v4 = vld [vmem:[%s10791_s23 + $0xb28] sm:$0x3]  ;;  %v5454_v6 = vld [vmem:[%s10791_s23 + $0xb18] sm:$0xff]  ;;  %v5453_v8 = vld [vmem:[%s10791_s23 + $0xb10] sm:$0xff] }
  0x2a   : > { %1239 = vmatprep.subr.mxu1 %v5388_v46  ;;  %1157 = vmatpush1.msra.mxu0 %v5291_v47  ;;  %v5367_v9 = vld [vmem:[%s10791_s23 + $0x860] sm:$0xff]  ;;  %v5366_v11 = vld [vmem:[%s10791_s23 + $0x858] sm:$0xff]  ;;  %v5364_v13 = vld [vmem:[%s10791_s23 + $0x848] sm:$0xff] }
  0x2b   : > { %1240 = vmatpush1.msra.mxu1 %v5387_v48  ;;  %1158 = vmatprep.subr.mxu0 %v5289_v49  ;;  %v5451_v10 = vld [vmem:[%s10791_s23 + $0xb00] sm:$0xff]  ;;  %v5450_v12 = vld [vmem:[%s10791_s23 + $0xaf8] sm:$0xff]  ;;  %v5448_v14 = vld [vmem:[%s10791_s23 + $0xae8] sm:$0xff] }
  0x2c   : > { %1241 = vmatprep.subr.mxu1 %v5385_v50  ;;  %1159 = vmatpush1.msra.mxu0 %v5288_v51  ;;  %v5363_v15 = vld [vmem:[%s10791_s23 + $0x840] sm:$0xff]  ;;  %v5361_v17 = vld [vmem:[%s10791_s23 + $0x830] sm:$0xff]  ;;  %v5360_v19 = vld [vmem:[%s10791_s23 + $0x828] sm:$0xff] }
  0x2d   : > { %1242 = vmatpush1.msra.mxu1 %v5384_v52  ;;  %1160 = vmatprep.subr.mxu0 %v5286_v53  ;;  %v5447_v16 = vld [vmem:[%s10791_s23 + $0xae0] sm:$0xff]  ;;  %v5445_v18 = vld [vmem:[%s10791_s23 + $0xad0] sm:$0xff]  ;;  %v5444_v20 = vld [vmem:[%s10791_s23 + $0xac8] sm:$0xff] }
  0x2e   : > { %1243 = vmatprep.subr.mxu1 %v5382_v54  ;;  %1161 = vmatpush1.msra.mxu0 %v5285_v55  ;;  %v5358_v21 = vld [vmem:[%s10791_s23 + $0x818] sm:$0xff]  ;;  %v5357_v23 = vld [vmem:[%s10791_s23 + $0x810] sm:$0xff]  ;;  %v5355_v25 = vld [vmem:[%s10791_s23 + $0x800] sm:$0xff] }
  0x2f   : > { %1244 = vmatpush1.msra.mxu1 %v5381_v56  ;;  %1162 = vmatprep.subr.mxu0 %v5283_v57  ;;  %v5442_v22 = vld [vmem:[%s10791_s23 + $0xab8] sm:$0xff]  ;;  %v5441_v24 = vld [vmem:[%s10791_s23 + $0xab0] sm:$0xff]  ;;  %v5439_v26 = vld [vmem:[%s10791_s23 + $0xaa0] sm:$0xff] }
  0x30   : > { %1245 = vmatprep.subr.mxu1 %v5379_v58  ;;  %1163 = vmatpush1.msra.mxu0 %v5282_v59  ;;  %v5354_v27 = vld [vmem:[%s10791_s23 + $0x7f8] sm:$0xff]  ;;  %v5352_v29 = vld [vmem:[%s10791_s23 + $0x7e8] sm:$0xff]  ;;  %v5351_v31 = vld [vmem:[%s10791_s23 + $0x7e0] sm:$0xff] }
  0x31   : > { %1246 = vmatpush1.msra.mxu1 %v5378_v60  ;;  %1164 = vmatprep.subr.mxu0 %v5280_v61  ;;  %v5438_v28 = vld [vmem:[%s10791_s23 + $0xa98] sm:$0xff]  ;;  %v5436_v30 = vld [vmem:[%s10791_s23 + $0xa88] sm:$0xff]  ;;  %v5435_v32 = vld [vmem:[%s10791_s23 + $0xa80] sm:$0xff] }
  0x32   : > { %1247 = vmatprep.subr.mxu1 %v5376_v62  ;;  %1165 = vmatpush1.msra.mxu0 %v5279_v63  ;;  %v5349_v33 = vld [vmem:[%s10791_s23 + $0x7d0] sm:$0xff]  ;;  %v5348_v35 = vld [vmem:[%s10791_s23 + $0x7c8] sm:$0xff]  ;;  %v6973_v37 = vld [vmem:[%s6952_s28 + $0x38] sm:$0xff] }
  0x33   : > { %1248 = vmatpush1.msra.mxu1 %v5375_v0  ;;  %1166 = vmatprep.subr.mxu0 %v5373_v1  ;;  %v5433_v34 = vld [vmem:[%s10791_s23 + $0xa70] sm:$0xff]  ;;  %v5432_v36 = vld [vmem:[%s10791_s23 + $0xa68] sm:$0xff]  ;;  %v877_v38 = vld [vmem:[%s6952_s28 + $0x18] sm:$0xfe]  ;;  %v1090_v48 = vrot.slane %v6973_v37, 1 }
  0x34   : > { %5459 = vmatprep.subr.msk.mxu1 %vm1124_vm0, %v5457_v2  ;;  %1167 = vmatpush2.msra.mxu0 %v5372_v3  ;;  %v5346_v39 = vld [vmem:[%s10791_s23 + $0x7b8] sm:$0xff]  ;;  %v5345_v41 = vld [vmem:[%s10791_s23 + $0x7b0] sm:$0xff]  ;;  %v5343_v45 = vld [vmem:[%s10791_s23 + $0x7a0] sm:$0xff]  ;;  %v1089_v47 = vrot.slane %v877_v38, 1 }
  0x35   : > { %5460 = vmatpush2.msk.msra.mxu1 %vm1124_vm0, %v5456_v4  ;;  %1168 = vmatprep.subr.mxu0 %v5370_v5  ;;  %v5430_v40 = vld [vmem:[%s10791_s23 + $0xa58] sm:$0xff]  ;;  %v5429_v42 = vld [vmem:[%s10791_s23 + $0xa50] sm:$0xff]  ;;  %v5427_v46 = vld [vmem:[%s10791_s23 + $0xa40] sm:$0xff] }
  0x36   : > { %1259 = vmatprep.subr.mxu1 %v5454_v6  ;;  %1169 = vmatpush2.msra.mxu0 %v5369_v7  ;;  %v6989_v43 = vld [vmem:[%s6952_s28 + $0x30] sm:$0xff]  ;;  %v5342_v49 = vld [vmem:[%s10791_s23 + $0x798] sm:$0xff]  ;;  %v5340_v51 = vld [vmem:[%s10791_s23 + $0x788] sm:$0xff]  ;;  %v7024_v58 = vsel %vm1079_vm1, %v1089_v47, %v1090_v48 }
  0x37   : > { %1260 = vmatpush2.msra.mxu1 %v5453_v8  ;;  %1170 = vmatprep.subr.mxu0 %v5367_v9  ;;  %v876_v44 = vld [vmem:[%s6952_s28 + $0x10] sm:$0xfe]  ;;  %v5426_v50 = vld [vmem:[%s10791_s23 + $0xa38] sm:$0xff]  ;;  %v5424_v52 = vld [vmem:[%s10791_s23 + $0xa28] sm:$0xff]  ;;  %v1087_v54 = vrot.slane %v6989_v43, 1 }
  0x38   : > { %1261 = vmatprep.subr.mxu1 %v5451_v10  ;;  %1171 = vmatpush2.msra.mxu0 %v5366_v11  ;;  %v1086_v53 = vrot.slane %v876_v44, 1  ;;  %v5339_v55 = vld [vmem:[%s10791_s23 + $0x780] sm:$0xff]  ;;  %v5337_v57 = vld [vmem:[%s10791_s23 + $0x770] sm:$0xff]  ;;  %v5374_v59 = vld [vmem:[%s10791_s23 + $0x898] sm:$0xff] }
  0x39   : > { %1262 = vmatpush2.msra.mxu1 %v5450_v12  ;;  %1172 = vmatprep.subr.mxu0 %v5364_v13  ;;  %v5423_v56 = vld [vmem:[%s10791_s23 + $0xa20] sm:$0xff]  ;;  %v5336_v60 = vld [vmem:[%s10791_s23 + $0x768] sm:$0xff]  ;;  %v5334_v0 = vld [vmem:[%s10791_s23 + $0x758] sm:$0xff] }
  0x3a   : > { %1263 = vmatprep.subr.mxu1 %v5448_v14  ;;  %1173 = vmatpush2.msra.mxu0 %v5363_v15  ;;  %v7033_v61 = vld [vmem:[%s6952_s28 + $0x28] sm:$0xff]  ;;  %v7039_v63 = vsel %vm1079_vm1, %v1086_v53, %v1087_v54  ;;  %v7045_v1 = vld [vmem:[%s6952_s28 + $0x20] sm:$0xff]  ;;  %v5326_v3 = vld [vmem:[%s10791_s23 + $0x718] sm:$0xff] }
  0x3b   : > { %1264 = vmatpush2.msra.mxu1 %v5447_v16  ;;  %1174 = vmatprep.subr.mxu0 %v5361_v17  ;;  %v875_v62 = vld [vmem:[%s6952_s28 + $0x8] sm:$0xfe]  ;;  %v874_v2 = vld [vmem:[%s6952_s28] sm:$0xfe]  ;;  %v5333_v4 = vld [vmem:[%s10791_s23 + $0x750] sm:$0xff]  ;;  %v1084_v8 = vrot.slane %v7033_v61, 1 }
  0x3c   : > { %1265 = vmatprep.subr.mxu1 %v5445_v18  ;;  %1175 = vmatpush2.msra.mxu0 %v5360_v19  ;;  %v5371_v5 = vld [vmem:[%s10791_s23 + $0x880] sm:$0xff]  ;;  %v1083_v7 = vrot.slane %v875_v62, 1  ;;  %v5330_v10 = vld [vmem:[%s10791_s23 + $0x738] sm:$0xff]  ;;  %v1080_v11 = vrot.slane %v874_v2, 1  ;;  %v1081_v12 = vrot.slane %v7045_v1, 1  ;;  %v5368_v13 = vld [vmem:[%s10791_s23 + $0x868] sm:$0xff] }
  0x3d   : > { %1266 = vmatpush2.msra.mxu1 %v5444_v20  ;;  %1176 = vmatprep.subr.mxu0 %v5358_v21  ;;  %v5331_v6 = vld [vmem:[%s10791_s23 + $0x740] sm:$0xff]  ;;  %v5328_v14 = vld [vmem:[%s10791_s23 + $0x728] sm:$0xff]  ;;  %v5365_v17 = vld [vmem:[%s10791_s23 + $0x850] sm:$0xff] }
  0x3e   : > { %1267 = vmatprep.subr.mxu1 %v5442_v22  ;;  %1177 = vmatpush2.msra.mxu0 %v5357_v23  ;;  %v5323_v9 = vld [vmem:[%s10791_s23 + $0x700] sm:$0xff]  ;;  %v5320_v15 = vld [vmem:[%s10791_s23 + $0x6e8] sm:$0xff]  ;;  %v7089_v18 = vsel %vm1079_vm1, %v1083_v7, %v1084_v8  ;;  %v5317_v19 = vld [vmem:[%s10791_s23 + $0x6d0] sm:$0xff]  ;;  %v7097_v20 = vsel %vm1079_vm1, %v1080_v11, %v1081_v12 }
  0x3f   : > { %1268 = vmatpush2.msra.mxu1 %v5441_v24  ;;  %1178 = vmatprep.subr.mxu0 %v5355_v25  ;;  %v5327_v16 = vld [vmem:[%s10791_s23 + $0x720] sm:$0xff]  ;;  %v5362_v21 = vld [vmem:[%s10791_s23 + $0x838] sm:$0xff]  ;;  %v6524_v25 = vmov 0.0   ;;  %v5344_v44 = vld [vmem:[%s10791_s23 + $0x7a8] sm:$0xff] }
  0x40   : > { %1269 = vmatprep.subr.mxu1 %v5439_v26  ;;  %1179 = vmatpush2.msra.mxu0 %v5354_v27  ;;  %v5314_v22 = vld [vmem:[%s10791_s23 + $0x6b8] sm:$0xff]  ;;  %v5359_v24 = vld [vmem:[%s10791_s23 + $0x820] sm:$0xff]  ;;  %v5404_v47 = vld [vmem:[%s10791_s23 + $0x988] sm:$0xff] }
  0x41   : > { %1270 = vmatpush2.msra.mxu1 %v5438_v28  ;;  %1180 = vmatprep.subr.mxu0 %v5352_v29  ;;  %v5422_v23 = vld [vmem:[%s10791_s23 + $0xa18] sm:$0xff]  ;;  %v5311_v26 = vld [vmem:[%s10791_s23 + $0x6a0] sm:$0xff]  ;;  %v5356_v28 = vld [vmem:[%s10791_s23 + $0x808] sm:$0xff] }
  0x42   : > { %1271 = vmatprep.subr.mxu1 %v5436_v30  ;;  %1181 = vmatpush2.msra.mxu0 %v5351_v31  ;;  %v5419_v27 = vld [vmem:[%s10791_s23 + $0xa00] sm:$0xff]  ;;  %v5308_v29 = vld [vmem:[%s10791_s23 + $0x688] sm:$0xff]  ;;  %v5353_v31 = vld [vmem:[%s10791_s23 + $0x7f0] sm:$0xff] }
  0x43   : > { %1272 = vmatpush2.msra.mxu1 %v5435_v32  ;;  %1182 = vmatprep.subr.mxu0 %v5349_v33  ;;  %v5416_v30 = vld [vmem:[%s10791_s23 + $0x9e8] sm:$0xff]  ;;  %v5305_v32 = vld [vmem:[%s10791_s23 + $0x670] sm:$0xff]  ;;  %v7151_v38 = vld [vmem:[%s6952_s28 + $0x58] sm:$0xff] }
  0x44   : > { %1273 = vmatprep.subr.mxu1 %v5433_v34  ;;  %1183 = vmatpush2.msra.mxu0 %v5348_v35  ;;  %v5413_v33 = vld [vmem:[%s10791_s23 + $0x9d0] sm:$0xff]  ;;  %v5350_v34 = vld [vmem:[%s10791_s23 + $0x7d8] sm:$0xff]  ;;  %v5335_v43 = vld [vmem:[%s10791_s23 + $0x760] sm:$0xff] }
  0x45   : > { %1274 = vmatpush2.msra.mxu1 %v5432_v36  ;;  %1184 = vmatprep.subr.mxu0 %v5346_v39  ;;  %v5302_v35 = vld [vmem:[%s10791_s23 + $0x658] sm:$0xff]  ;;  %v5347_v39 = vld [vmem:[%s10791_s23 + $0x7c0] sm:$0xff]  ;;  %v5401_v53 = vld [vmem:[%s10791_s23 + $0x970] sm:$0xff] }
  0x46   : > { %1275 = vmatprep.subr.mxu1 %v5430_v40  ;;  %1185 = vmatpush2.msra.mxu0 %v5345_v41  ;;  %v5410_v36 = vld [vmem:[%s10791_s23 + $0x9b8] sm:$0xff]  ;;  %v7157_v40 = vld [vmem:[%s6952_s28 + $0x50] sm:$0xff]  ;;  %v5299_v41 = vld [vmem:[%s10791_s23 + $0x640] sm:$0xff] }
  0x47   : > { %1276 = vmatpush2.msra.mxu1 %v5429_v42  ;;  %1186 = vmatprep.subr.mxu0 %v5343_v45  ;;  %v5407_v42 = vld [vmem:[%s10791_s23 + $0x9a0] sm:$0xff]  ;;  %v1098_v45 = vrot.slane %v7151_v38, 1  ;;  %v5290_v37 = vld [vmem:[%s10791_s23 + $0x5f8] sm:$0xff]  ;;  %v5329_v7 = vld [vmem:[%s10791_s23 + $0x730] sm:$0xff] }
  0x48   : > { %1277 = vmatprep.subr.mxu1 %v5427_v46  ;;  %1187 = vmatpush2.msra.mxu0 %v5342_v49  ;;  %v5296_v46 = vld [vmem:[%s10791_s23 + $0x628] sm:$0xff]  ;;  %v1096_v49 = vrot.slane %v7157_v40, 1  ;;  %v740_v11 = vld [vmem:[%s10791_s23 + $0x170] sm:$0xff] }
  0x49   : > { %1278 = vmatpush2.msra.mxu1 %v5426_v50  ;;  %1188 = vmatprep.subr.mxu0 %v5340_v51  ;;  %v5341_v50 = vld [vmem:[%s10791_s23 + $0x790] sm:$0xff]  ;;  %v881_v51 = vld [vmem:[%s6952_s28 + $0x78] sm:$0x1] }
  0x4a   : > { %1279 = vmatprep.subr.mxu1 %v5424_v52  ;;  %1189 = vmatpush2.msra.mxu0 %v5339_v55  ;;  %v5293_v52 = vld [vmem:[%s10791_s23 + $0x610] sm:$0xff] }
  0x4b   : > { %1280 = vmatpush2.msra.mxu1 %v5423_v56  ;;  %1190 = vmatprep.subr.mxu0 %v5337_v57  ;;  %v880_v55 = vld [vmem:[%s6952_s28 + $0x70] sm:$0x1]  ;;  %v7193_v56 = vsel %vm1079_vm1, %v1090_v48, %v1098_v45  ;;  %v5338_v57 = vld [vmem:[%s10791_s23 + $0x778] sm:$0xff] }
  0x4c   : > { %5461 = vmatprep.mubr.msk.f32.mxu1 %vm1117_vm2, %v7024_v58  ;;  %5994 = vmatprep.subr.mxu1 %v5374_v59  ;;  %v7202_v59 = vsel %vm1079_vm1, %v1087_v54, %v1096_v49  ;;  %v5398_v48 = vld [vmem:[%s10791_s23 + $0x958] sm:$0xff]  ;;  %v1104_v62 = vrot.slane %v880_v55, 1  ;;  %v5287_v54 = vld [vmem:[%s10791_s23 + $0x5e0] sm:$0xff]  ;;  %v5440_v55 = vld [vmem:[%s10791_s23 + $0xaa8] sm:$0xff] }
  0x4d   : > { %1191 = vmatpush2.msra.mxu0 %v5336_v60  ;;  %1282 = vmatmul.mubr.f32.vlgmr.msra.gmra.mxu1 %v7039_v63  ;;  %v1106_v60 = vrot.slane %v881_v51, 1 }
  0x4e   : > { %1192 = vmatprep.subr.mxu0 %v5334_v0  ;;  %5995 = vmatpush3.msra.mxu1 %v5326_v3  ;;  %v5395_v0 = vld [vmem:[%s10791_s23 + $0x940] sm:$0xff]  ;;  %v5332_v3 = vld [vmem:[%s10791_s23 + $0x748] sm:$0xff] }
  0x4f   : > { %1193 = vmatpush2.msra.mxu0 %v5333_v4  ;;  %5996 = vmatprep.subr.mxu1 %v5371_v5  ;;  %v7224_v2 = vsel %vm1079_vm1, %v1098_v45, %v1106_v60  ;;  %v7231_v4 = vsel %vm1079_vm1, %v1096_v49, %v1104_v62  ;;  %v5284_v5 = vld [vmem:[%s10791_s23 + $0x5c8] sm:$0xff]  ;;  %v5443_v49 = vld [vmem:[%s10791_s23 + $0xac0] sm:$0xff] }
  0x50   : > { %1194 = vmatprep.subr.mxu0 %v5331_v6  ;;  %5997 = vmatpush3.msra.mxu1 %v5323_v9  ;;  %v5392_v6 = vld [vmem:[%s10791_s23 + $0x928] sm:$0xff]  ;;  %v5281_v9 = vld [vmem:[%s10791_s23 + $0x5b0] sm:$0xff]  ;;  %v878_v60 = vld [vmem:[%s6952_s28 + $0x60] sm:$0x1] }
  0x51   : > { %1195 = vmatpush2.msra.mxu0 %v5330_v10  ;;  %5998 = vmatprep.subr.mxu1 %v5368_v13  ;;  %v5389_v10 = vld [vmem:[%s10791_s23 + $0x910] sm:$0xff]  ;;  %v5386_v13 = vld [vmem:[%s10791_s23 + $0x8f8] sm:$0xff]  ;;  %v715_v45 = vld [vmem:[%s10791_s23 + $0xa8] sm:$0xff] }
  0x52   : > { %1196 = vmatprep.subr.mxu0 %v5328_v14  ;;  %5999 = vmatpush3.msra.mxu1 %v5320_v15  ;;  %v739_v14 = vld [vmem:[%s10791_s23 + $0x168] sm:$0xff]  ;;  %v737_v15 = vld [vmem:[%s10791_s23 + $0x158] sm:$0xff] }
  0x53   : > { %1197 = vmatpush2.msra.mxu0 %v5327_v16  ;;  %6000 = vmatprep.subr.mxu1 %v5365_v17  ;;  %v5383_v16 = vld [vmem:[%s10791_s23 + $0x8e0] sm:$0xff]  ;;  %v736_v17 = vld [vmem:[%s10791_s23 + $0x150] sm:$0xff] }
  0x54   : > { %1198 = vmatprep.mubr.f32.mxu0 %v7089_v18  ;;  %6001 = vmatpush3.msra.mxu1 %v5317_v19  ;;  %v5380_v19 = vld [vmem:[%s10791_s23 + $0x8c8] sm:$0xff] }
  0x55   : > { %1199 = vmatmul.mubr.f32.vlgmr.msra.gmra.mxu0 %v7097_v20  ;;  %6002 = vmatprep.subr.mxu1 %v5362_v21  ;;  %v731_v21 = vld [vmem:[%s10791_s23 + $0x128] sm:$0xff] }
  0x56   : > { %1380 = vmatprep.subr.mxu0 %v6524_v25  ;;  %6003 = vmatpush3.msra.mxu1 %v5314_v22  ;;  %v5377_v22 = vld [vmem:[%s10791_s23 + $0x8b0] sm:$0xff] }
  0x57   : > { %1381 = vmatpush1.msra.mxu0 %v5422_v23  ;;  %6004 = vmatprep.subr.mxu1 %v5359_v24  ;;  %v730_v23 = vld [vmem:[%s10791_s23 + $0x120] sm:$0xff]  ;;  %v728_v24 = vld [vmem:[%s10791_s23 + $0x110] sm:$0xff] }
  0x58   : > { %1382 = vmatprep.subr.mxu0 %v6524_v25  ;;  %6005 = vmatpush3.msra.mxu1 %v5311_v26  ;;  %v5458_v26 = vld [vmem:[%s10791_s23 + $0xb38] sm:$0x3] }
  0x59   : > { %1383 = vmatpush1.msra.mxu0 %v5419_v27  ;;  %6006 = vmatprep.subr.mxu1 %v5356_v28  ;;  %v727_v27 = vld [vmem:[%s10791_s23 + $0x108] sm:$0xff]  ;;  %v725_v28 = vld [vmem:[%s10791_s23 + $0xf8] sm:$0xff] }
  0x5a   : > { %1384 = vmatprep.subr.mxu0 %v6524_v25  ;;  %6007 = vmatpush3.msra.mxu1 %v5308_v29  ;;  %v5455_v29 = vld [vmem:[%s10791_s23 + $0xb20] sm:$0xff] }
  0x5b   : > { %1385 = vmatpush1.msra.mxu0 %v5416_v30  ;;  %6008 = vmatprep.subr.mxu1 %v5353_v31  ;;  %v724_v30 = vld [vmem:[%s10791_s23 + $0xf0] sm:$0xff]  ;;  %v722_v31 = vld [vmem:[%s10791_s23 + $0xe0] sm:$0xff] }
  0x5c   : > { %1386 = vmatprep.subr.mxu0 %v6524_v25  ;;  %6009 = vmatpush3.msra.mxu1 %v5305_v32  ;;  %v5452_v32 = vld [vmem:[%s10791_s23 + $0xb08] sm:$0xff] }
  0x5d   : > { %1387 = vmatpush1.msra.mxu0 %v5413_v33  ;;  %6010 = vmatprep.subr.mxu1 %v5350_v34  ;;  %v721_v33 = vld [vmem:[%s10791_s23 + $0xd8] sm:$0xff]  ;;  %v719_v34 = vld [vmem:[%s10791_s23 + $0xc8] sm:$0xff] }
  0x5e   : > { %1388 = vmatprep.subr.mxu0 %v6524_v25  ;;  %6011 = vmatpush3.msra.mxu1 %v5302_v35  ;;  %v5449_v35 = vld [vmem:[%s10791_s23 + $0xaf0] sm:$0xff] }
  0x5f   : > { %1389 = vmatpush1.msra.mxu0 %v5410_v36  ;;  %6012 = vmatprep.subr.mxu1 %v5347_v39  ;;  %v718_v36 = vld [vmem:[%s10791_s23 + $0xc0] sm:$0xff]  ;;  %v7336_v39 = vld [vmem:[%s6952_s28 + $0x48] sm:$0xff] }
  0x60   : > { %1390 = vmatprep.subr.mxu0 %v6524_v25  ;;  %6013 = vmatpush3.msra.mxu1 %v5299_v41  ;;  %v716_v41 = vld [vmem:[%s10791_s23 + $0xb0] sm:$0xff] }
  0x61   : > { %1391 = vmatpush1.msra.mxu0 %v5407_v42  ;;  %6014 = vmatprep.subr.mxu1 %v5344_v44  ;;  %v7342_v42 = vld [vmem:[%s6952_s28 + $0x40] sm:$0xff]  ;;  %v5446_v44 = vld [vmem:[%s10791_s23 + $0xad8] sm:$0xff] }
  0x62   : > { %1392 = vmatprep.subr.mxu0 %v6524_v25  ;;  %6015 = vmatpush3.msra.mxu1 %v5296_v46  ;;  %v713_v46 = vld [vmem:[%s10791_s23 + $0x98] sm:$0xff]  ;;  %v1092_v51 = vrot.slane %v7342_v42, 1 }
  0x63   : > { %1393 = vmatpush1.msra.mxu0 %v5404_v47  ;;  %6016 = vmatprep.subr.mxu1 %v5341_v50  ;;  %v1094_v47 = vrot.slane %v7336_v39, 1  ;;  %v712_v50 = vld [vmem:[%s10791_s23 + $0x90] sm:$0xff] }
  0x64   : > { %1394 = vmatprep.subr.mxu0 %v6524_v25  ;;  %6017 = vmatpush3.msra.mxu1 %v5293_v52  ;;  %v710_v52 = vld [vmem:[%s10791_s23 + $0x80] sm:$0xff]  ;;  %v7387_v62 = vsel %vm1079_vm1, %v1081_v12, %v1092_v51  ;;  %v704_v12 = vld [vmem:[%s10791_s23 + $0x50] sm:$0xff] }
  0x65   : > { %1395 = vmatpush1.msra.mxu0 %v5401_v53  ;;  %5462 = vmatprep.mubr.msk.f32.mxu1 %vm1117_vm2, %v7193_v56  ;;  %v879_v53 = vld [vmem:[%s6952_s28 + $0x68] sm:$0x1] }
  0x66   : > { %6018 = vmatprep.subr.mxu1 %v5338_v57  ;;  %1396 = vmatprep.subr.mxu0 %v6524_v25  ;;  %v709_v57 = vld [vmem:[%s10791_s23 + $0x78] sm:$0xff] }
  0x67   : > { %1288 = vmatmul.mubr.f32.gmra.mxu1 %v7202_v59  ;;  %1397 = vmatpush1.msra.mxu0 %v5398_v48  ;;  %v707_v48 = vld [vmem:[%s10791_s23 + $0x68] sm:$0xff] }
  0x68   : > { %6019 = vmatpush3.msra.mxu1 %v5290_v37  ;;  %1398 = vmatprep.subr.mxu0 %v6524_v25  ;;  %v7378_v37 = vsel %vm1079_vm1, %v1084_v8, %v1094_v47  ;;  %v5437_v8 = vld [vmem:[%s10791_s23 + $0xa90] sm:$0xff] }
  0x69   : > { %6020 = vmatprep.subr.mxu1 %v5335_v43  ;;  %1399 = vmatpush1.msra.mxu0 %v5395_v0  ;;  %v1102_v43 = vrot.slane %v879_v53, 1  ;;  %v1100_v0 = vrot.slane %v878_v60, 1  ;;  %v767_v53 = vld [vmem:[%s10791_s23 + $0x248] sm:$0xff]  ;;  %v814_v60 = vld [vmem:[%s10791_s23 + $0x3c0] sm:$0xff] }
  0x6a   : > { %6021 = vmatpush3.msra.mxu1 %v5287_v54  ;;  %5463 = vmatprep.mubr.msk.f32.mxu1 %vm1117_vm2, %v7224_v2  ;;  %v706_v54 = vld [vmem:[%s10791_s23 + $0x60] sm:$0xff] }
  0x6b   : > { %6022 = vmatprep.subr.mxu1 %v5332_v3  ;;  %1400 = vmatprep.subr.mxu0 %v6524_v25  ;;  %v5434_v3 = vld [vmem:[%s10791_s23 + $0xa78] sm:$0xff] }
  0x6c   : > { %1294 = vmatmul.mubr.f32.gmra.mxu1 %v7231_v4  ;;  %1401 = vmatpush1.msra.mxu0 %v5392_v6  ;;  %v7408_v6 = vsel %vm1079_vm1, %v1094_v47, %v1102_v43  ;;  %v820_v47 = vld [vmem:[%s10791_s23 + $0x3f0] sm:$0xff] }
  0x6d   : > { %6023 = vmatpush3.msra.mxu1 %v5284_v5  ;;  %1402 = vmatprep.subr.mxu0 %v6524_v25  ;;  %v703_v5 = vld [vmem:[%s10791_s23 + $0x48] sm:$0xff]  ;;  %v812_v43 = vld [vmem:[%s10791_s23 + $0x3b0] sm:$0xff] }
  0x6e   : > { %6024 = vmatprep.subr.mxu1 %v5329_v7  ;;  %1403 = vmatpush1.msra.mxu0 %v5389_v10  ;;  %v701_v7 = vld [vmem:[%s10791_s23 + $0x38] sm:$0xff]  ;;  %v5431_v10 = vld [vmem:[%s10791_s23 + $0xa60] sm:$0xff] }
  0x6f   : > { %6025 = vmatpush3.msra.mxu1 %v5281_v9  ;;  %1364 = vmatprep.mubr.f32.mxu1 %v7089_v18  ;;  %v734_v18 = vld [vmem:[%s10791_s23 + $0x140] sm:$0xff]  ;;  %v7415_v9 = vsel %vm1079_vm1, %v1092_v51, %v1100_v0  ;;  %v769_v51 = vld [vmem:[%s10791_s23 + $0x258] sm:$0xff] }
  0x70   : > { %1404 = vmatprep.subr.mxu0 %v6524_v25  ;;  %1476 = vmatprep.subr.mxu1 %v740_v11  ;;  %v700_v11 = vld [vmem:[%s10791_s23 + $0x30] sm:$0xff]  ;;  %v761_v0 = vld [vmem:[%s10791_s23 + $0x218] sm:$0xff] }
  0x71   : > { %1365 = vmatmul.mubr.f32.vlgmr.msra.gmra.mxu1 %v7097_v20  ;;  %1405 = vmatpush1.msra.mxu0 %v5386_v13  ;;  %v733_v20 = vld [vmem:[%s10791_s23 + $0x138] sm:$0xff]  ;;  %v698_v13 = vld [vmem:[%s10791_s23 + $0x20] sm:$0xff] }
  0x72   : > { %1477 = vmatpush1.msra.mxu1 %v739_v14  ;;  %1406 = vmatprep.subr.mxu0 %v6524_v25  ;;  %v5428_v14 = vld [vmem:[%s10791_s23 + $0xa48] sm:$0xff] }
  0x73   : > { %1478 = vmatprep.subr.mxu1 %v737_v15  ;;  %1407 = vmatpush1.msra.mxu0 %v5383_v16  ;;  %v697_v15 = vld [vmem:[%s10791_s23 + $0x18] sm:$0xff]  ;;  %v695_v16 = vld [vmem:[%s10791_s23 + $0x8] sm:$0xff] }
  0x74   : > { %1479 = vmatpush1.msra.mxu1 %v736_v17  ;;  %1408 = vmatprep.subr.mxu0 %v6524_v25  ;;  %v5425_v17 = vld [vmem:[%s10791_s23 + $0xa30] sm:$0xff] }
  0x75   : > { %1480 = vmatprep.subr.mxu1 %v734_v18  ;;  %1409 = vmatpush1.msra.mxu0 %v5380_v19  ;;  %v694_v18 = vld [vmem:[%s10791_s23] sm:$0xff]  ;;  %v788_v19 = vld [vmem:[%s10791_s23 + $0x2f0] sm:$0xff] }
  0x76   : > { %1481 = vmatpush1.msra.mxu1 %v733_v20  ;;  %1410 = vmatprep.subr.mxu0 %v6524_v25  ;;  %v836_v20 = vld [vmem:[%s10791_s23 + $0x470] sm:$0xff] }
  0x77   : > { %1482 = vmatprep.subr.mxu1 %v731_v21  ;;  %1411 = vmatpush1.msra.mxu0 %v5377_v22  ;;  %v787_v21 = vld [vmem:[%s10791_s23 + $0x2e8] sm:$0xff] }
  0x78   : > { %1483 = vmatpush1.msra.mxu1 %v730_v23  ;;  %1420 = vmatprep.subr.mxu0 %v6524_v25  ;;  %v835_v22 = vld [vmem:[%s10791_s23 + $0x468] sm:$0xff]  ;;  %v785_v23 = vld [vmem:[%s10791_s23 + $0x2d8] sm:$0xff] }
  0x79   : > { %1484 = vmatprep.subr.mxu1 %v728_v24  ;;  %5464 = vmatpush2.msk.msra.mxu0 %vm1124_vm0, %v5458_v26  ;;  %v833_v24 = vld [vmem:[%s10791_s23 + $0x458] sm:$0xff]  ;;  %v832_v26 = vld [vmem:[%s10791_s23 + $0x450] sm:$0xff] }
  0x7a   : > { %1485 = vmatpush1.msra.mxu1 %v727_v27  ;;  %1422 = vmatprep.subr.mxu0 %v6524_v25  ;;  %v830_v27 = vld [vmem:[%s10791_s23 + $0x440] sm:$0xff] }
  0x7b   : > { %1486 = vmatprep.subr.mxu1 %v725_v28  ;;  %1423 = vmatpush2.msra.mxu0 %v5455_v29  ;;  %v781_v28 = vld [vmem:[%s10791_s23 + $0x2b8] sm:$0xff] }
  0x7c   : > { %1487 = vmatpush1.msra.mxu1 %v724_v30  ;;  %1424 = vmatprep.subr.mxu0 %v6524_v25  ;;  %v829_v29 = vld [vmem:[%s10791_s23 + $0x438] sm:$0xff]  ;;  %v779_v30 = vld [vmem:[%s10791_s23 + $0x2a8] sm:$0xff] }
  0x7d   : > { %1488 = vmatprep.subr.mxu1 %v722_v31  ;;  %1425 = vmatpush2.msra.mxu0 %v5452_v32  ;;  %v827_v31 = vld [vmem:[%s10791_s23 + $0x428] sm:$0xff]  ;;  %v778_v32 = vld [vmem:[%s10791_s23 + $0x2a0] sm:$0xff] }
  0x7e   : > { %1489 = vmatpush1.msra.mxu1 %v721_v33  ;;  %1426 = vmatprep.subr.mxu0 %v6524_v25  ;;  %v826_v33 = vld [vmem:[%s10791_s23 + $0x420] sm:$0xff] }
  0x7f   : > { %1490 = vmatprep.subr.mxu1 %v719_v34  ;;  %1427 = vmatpush2.msra.mxu0 %v5449_v35  ;;  %v776_v34 = vld [vmem:[%s10791_s23 + $0x290] sm:$0xff] }
  0x80   : > { %1491 = vmatpush1.msra.mxu1 %v718_v36  ;;  %1428 = vmatprep.subr.mxu0 %v6524_v25  ;;  %v824_v35 = vld [vmem:[%s10791_s23 + $0x410] sm:$0xff]  ;;  %v775_v36 = vld [vmem:[%s10791_s23 + $0x288] sm:$0xff] }
  0x81   : > { %1492 = vmatprep.subr.mxu1 %v716_v41  ;;  %1429 = vmatpush2.msra.mxu0 %v5446_v44  ;;  %v823_v41 = vld [vmem:[%s10791_s23 + $0x408] sm:$0xff]  ;;  %v773_v44 = vld [vmem:[%s10791_s23 + $0x278] sm:$0xff] }
  0x82   : > { %1493 = vmatpush1.msra.mxu1 %v715_v45  ;;  %1430 = vmatprep.subr.mxu0 %v6524_v25  ;;  %v821_v45 = vld [vmem:[%s10791_s23 + $0x3f8] sm:$0xff] }
  0x83   : > { %1494 = vmatprep.subr.mxu1 %v713_v46  ;;  %1431 = vmatpush2.msra.mxu0 %v5443_v49  ;;  %v772_v46 = vld [vmem:[%s10791_s23 + $0x270] sm:$0xff]  ;;  %v770_v49 = vld [vmem:[%s10791_s23 + $0x260] sm:$0xff] }
  0x84   : > { %1495 = vmatpush1.msra.mxu1 %v712_v50  ;;  %1432 = vmatprep.subr.mxu0 %v6524_v25  ;;  %v818_v50 = vld [vmem:[%s10791_s23 + $0x3e0] sm:$0xff] }
  0x85   : > { %1496 = vmatprep.subr.mxu1 %v710_v52  ;;  %1433 = vmatpush2.msra.mxu0 %v5440_v55  ;;  %v817_v52 = vld [vmem:[%s10791_s23 + $0x3d8] sm:$0xff]  ;;  %v815_v55 = vld [vmem:[%s10791_s23 + $0x3c8] sm:$0xff] }
  0x86   : > { %1497 = vmatpush1.msra.mxu1 %v709_v57  ;;  %1204 = vmatprep.mubr.f32.mxu0 %v7378_v37  ;;  %v766_v57 = vld [vmem:[%s10791_s23 + $0x240] sm:$0xff] }
  0x87   : > { %1434 = vmatprep.subr.mxu0 %v6524_v25  ;;  %1498 = vmatprep.subr.mxu1 %v707_v48  ;;  %v764_v48 = vld [vmem:[%s10791_s23 + $0x230] sm:$0xff] }
  0x88   : > { %1205 = vmatmul.mubr.f32.gmra.mxu0 %v7387_v62  ;;  %1499 = vmatpush1.msra.mxu1 %v706_v54  ;;  %v811_v54 = vld [vmem:[%s10791_s23 + $0x3a8] sm:$0xff] }
  0x89   : > { %1435 = vmatpush2.msra.mxu0 %v5437_v8  ;;  %1500 = vmatprep.subr.mxu1 %v704_v12  ;;  %v763_v8 = vld [vmem:[%s10791_s23 + $0x228] sm:$0xff]  ;;  %v809_v12 = vld [vmem:[%s10791_s23 + $0x398] sm:$0xff] }
  0x8a   : > { %1436 = vmatprep.subr.mxu0 %v6524_v25  ;;  %1501 = vmatpush1.msra.mxu1 %v703_v5  ;;  %v808_v5 = vld [vmem:[%s10791_s23 + $0x390] sm:$0xff] }
  0x8b   : > { %1437 = vmatpush2.msra.mxu0 %v5434_v3  ;;  %1210 = vmatprep.mubr.f32.mxu0 %v7408_v6  ;;  %v760_v3 = vld [vmem:[%s10791_s23 + $0x210] sm:$0xff] }
  0x8c   : > { %1438 = vmatprep.subr.mxu0 %v6524_v25  ;;  %1502 = vmatprep.subr.mxu1 %v701_v7  ;;  %v758_v7 = vld [vmem:[%s10791_s23 + $0x200] sm:$0xff] }
  0x8d   : > { %1211 = vmatmul.mubr.f32.gmra.mxu0 %v7415_v9  ;;  %1503 = vmatpush1.msra.mxu1 %v700_v11  ;;  %v757_v11 = vld [vmem:[%s10791_s23 + $0x1f8] sm:$0xff] }
  0x8e   : > { %1439 = vmatpush2.msra.mxu0 %v5431_v10  ;;  %1504 = vmatprep.subr.mxu1 %v698_v13  ;;  %v806_v10 = vld [vmem:[%s10791_s23 + $0x380] sm:$0xff]  ;;  %v805_v13 = vld [vmem:[%s10791_s23 + $0x378] sm:$0xff] }
  0x8f   : > { %1440 = vmatprep.subr.mxu0 %v6524_v25  ;;  %1505 = vmatpush1.msra.mxu1 %v697_v15  ;;  %v803_v15 = vld [vmem:[%s10791_s23 + $0x368] sm:$0xff] }
  0x90   : > { %1441 = vmatpush2.msra.mxu0 %v5428_v14  ;;  %1506 = vmatprep.subr.mxu1 %v695_v16  ;;  %v755_v14 = vld [vmem:[%s10791_s23 + $0x1e8] sm:$0xff]  ;;  %v754_v16 = vld [vmem:[%s10791_s23 + $0x1e0] sm:$0xff] }
  0x91   : > { %1442 = vmatprep.subr.mxu0 %v6524_v25  ;;  %5465 = vmatprep.mubr.msk.f32.mxu0 %vm1117_vm2, %v7024_v58  ;;  %v784_v58 = vld [vmem:[%s10791_s23 + $0x2d0] sm:$0xff] }
  0x92   : > { %1443 = vmatpush2.msra.mxu0 %v5425_v17  ;;  %1507 = vmatpush1.msra.mxu1 %v694_v18  ;;  %v802_v17 = vld [vmem:[%s10791_s23 + $0x360] sm:$0xff]  ;;  %v752_v18 = vld [vmem:[%s10791_s23 + $0x1d0] sm:$0xff] }
  0x93   : > { %1445 = vmatmul.mubr.f32.vlgmr.msra.gmra.mxu0 %v7039_v63  ;;  %1508 = vmatprep.subr.mxu1 %v788_v19  ;;  %v782_v63 = vld [vmem:[%s10791_s23 + $0x2c0] sm:$0xff]  ;;  %v800_v19 = vld [vmem:[%s10791_s23 + $0x350] sm:$0xff] }
  0x94   : > { %1559 = vmatprep.subr.mxu0 %v836_v20  ;;  %1509 = vmatpush2.msra.mxu1 %v787_v21  ;;  %v751_v20 = vld [vmem:[%s10791_s23 + $0x1c8] sm:$0xff] }
  0x95   : > { %1560 = vmatpush1.msra.mxu0 %v835_v22  ;;  %1510 = vmatprep.subr.mxu1 %v785_v23  ;;  %v799_v21 = vld [vmem:[%s10791_s23 + $0x348] sm:$0xff]  ;;  %v749_v22 = vld [vmem:[%s10791_s23 + $0x1b8] sm:$0xff]  ;;  %v748_v23 = vld [vmem:[%s10791_s23 + $0x1b0] sm:$0xff] }
  0x96   : > { %1561 = vmatprep.subr.mxu0 %v833_v24  ;;  %1511 = vmatpush2.msra.mxu1 %v784_v58  ;;  %v746_v24 = vld [vmem:[%s10791_s23 + $0x1a0] sm:$0xff] }
  0x97   : > { %1562 = vmatpush1.msra.mxu0 %v832_v26  ;;  %1512 = vmatprep.subr.mxu1 %v782_v63  ;;  %v794_v58 = vld [vmem:[%s10791_s23 + $0x320] sm:$0xff]  ;;  %v745_v26 = vld [vmem:[%s10791_s23 + $0x198] sm:$0xff] }
  0x98   : > { %1563 = vmatprep.subr.mxu0 %v830_v27  ;;  %1513 = vmatpush2.msra.mxu1 %v781_v28  ;;  %v793_v63 = vld [vmem:[%s10791_s23 + $0x318] sm:$0xff]  ;;  %v743_v27 = vld [vmem:[%s10791_s23 + $0x188] sm:$0xff]  ;;  %v742_v28 = vld [vmem:[%s10791_s23 + $0x180] sm:$0xff] }
  0x99   : > { %1564 = vmatpush1.msra.mxu0 %v829_v29  ;;  %1514 = vmatprep.subr.mxu1 %v779_v30  ;;  %v7643_v29 = vld [vmem:[%s6952_s28 + $0x8] sm:$0xff]  ;;  %v7649_v30 = vld [vmem:[%s6952_s28] sm:$0xff] }
  0x9a   : > { %1565 = vmatprep.subr.mxu0 %v827_v31  ;;  %1515 = vmatpush2.msra.mxu1 %v778_v32  ;;  %v872_v31 = vld [vmem:[%s10791_s23 + $0x590] sm:$0x3]  ;;  %v789_v32 = vld [vmem:[%s10791_s23 + $0x2f8] sm:$0xff] }
  0x9b   : > { %1566 = vmatpush1.msra.mxu0 %v826_v33  ;;  %1516 = vmatprep.subr.mxu1 %v776_v34  ;;  %v871_v33 = vld [vmem:[%s10791_s23 + $0x588] sm:$0x3]  ;;  %v741_v34 = vld [vmem:[%s10791_s23 + $0x178] sm:$0xff] }
  0x9c   : > { %1567 = vmatprep.subr.mxu0 %v824_v35  ;;  %1517 = vmatpush2.msra.mxu1 %v775_v36  ;;  %v869_v35 = vld [vmem:[%s10791_s23 + $0x578] sm:$0xff]  ;;  %v786_v36 = vld [vmem:[%s10791_s23 + $0x2e0] sm:$0xff] }
  0x9d   : > { %1568 = vmatpush1.msra.mxu0 %v823_v41  ;;  %1518 = vmatprep.subr.mxu1 %v773_v44  ;;  %v868_v41 = vld [vmem:[%s10791_s23 + $0x570] sm:$0xff]  ;;  %v738_v44 = vld [vmem:[%s10791_s23 + $0x160] sm:$0xff] }
  0x9e   : > { %1569 = vmatprep.subr.mxu0 %v821_v45  ;;  %1519 = vmatpush2.msra.mxu1 %v772_v46  ;;  %v866_v45 = vld [vmem:[%s10791_s23 + $0x560] sm:$0xff]  ;;  %v783_v46 = vld [vmem:[%s10791_s23 + $0x2c8] sm:$0xff] }
  0x9f   : > { %1570 = vmatpush1.msra.mxu0 %v820_v47  ;;  %1520 = vmatprep.subr.mxu1 %v770_v49  ;;  %v865_v47 = vld [vmem:[%s10791_s23 + $0x558] sm:$0xff]  ;;  %v735_v49 = vld [vmem:[%s10791_s23 + $0x148] sm:$0xff] }
  0xa0   : > { %1571 = vmatprep.subr.mxu0 %v818_v50  ;;  %1521 = vmatpush2.msra.mxu1 %v769_v51  ;;  %v863_v50 = vld [vmem:[%s10791_s23 + $0x548] sm:$0xff]  ;;  %v780_v51 = vld [vmem:[%s10791_s23 + $0x2b0] sm:$0xff] }
  0xa1   : > { %1572 = vmatpush1.msra.mxu0 %v817_v52  ;;  %1522 = vmatprep.subr.mxu1 %v767_v53  ;;  %v732_v52 = vld [vmem:[%s10791_s23 + $0x130] sm:$0xff] }
  0xa2   : > { %1573 = vmatprep.subr.mxu0 %v815_v55  ;;  %1523 = vmatpush2.msra.mxu1 %v766_v57  ;;  %v860_v53 = vld [vmem:[%s10791_s23 + $0x530] sm:$0xff]  ;;  %v859_v55 = vld [vmem:[%s10791_s23 + $0x528] sm:$0xff]  ;;  %v729_v57 = vld [vmem:[%s10791_s23 + $0x118] sm:$0xff] }
  0xa3   : > { %1574 = vmatpush1.msra.mxu0 %v814_v60  ;;  %1524 = vmatprep.subr.mxu1 %v764_v48  ;;  %v857_v60 = vld [vmem:[%s10791_s23 + $0x518] sm:$0xff]  ;;  %v774_v48 = vld [vmem:[%s10791_s23 + $0x280] sm:$0xff] }
  0xa4   : > { %1575 = vmatprep.subr.mxu0 %v812_v43  ;;  %1525 = vmatpush2.msra.mxu1 %v763_v8  ;;  %v856_v43 = vld [vmem:[%s10791_s23 + $0x510] sm:$0xff]  ;;  %v726_v8 = vld [vmem:[%s10791_s23 + $0x100] sm:$0xff] }
  0xa5   : > { %1576 = vmatpush1.msra.mxu0 %v811_v54  ;;  %1526 = vmatprep.subr.mxu1 %v761_v0  ;;  %v854_v54 = vld [vmem:[%s10791_s23 + $0x500] sm:$0xff]  ;;  %v771_v0 = vld [vmem:[%s10791_s23 + $0x268] sm:$0xff] }
  0xa6   : > { %1577 = vmatprep.subr.mxu0 %v809_v12  ;;  %1527 = vmatpush2.msra.mxu1 %v760_v3  ;;  %v853_v12 = vld [vmem:[%s10791_s23 + $0x4f8] sm:$0xff]  ;;  %v723_v3 = vld [vmem:[%s10791_s23 + $0xe8] sm:$0xff] }
  0xa7   : > { %1578 = vmatpush1.msra.mxu0 %v808_v5  ;;  %1528 = vmatprep.subr.mxu1 %v758_v7  ;;  %v851_v5 = vld [vmem:[%s10791_s23 + $0x4e8] sm:$0xff]  ;;  %v768_v7 = vld [vmem:[%s10791_s23 + $0x250] sm:$0xff] }
  0xa8   : > { %1579 = vmatprep.subr.mxu0 %v806_v10  ;;  %1529 = vmatpush2.msra.mxu1 %v757_v11  ;;  %v850_v10 = vld [vmem:[%s10791_s23 + $0x4e0] sm:$0xff]  ;;  %v720_v11 = vld [vmem:[%s10791_s23 + $0xd0] sm:$0xff] }
  0xa9   : > { %1580 = vmatpush1.msra.mxu0 %v805_v13  ;;  %1530 = vmatprep.subr.mxu1 %v755_v14  ;;  %v848_v13 = vld [vmem:[%s10791_s23 + $0x4d0] sm:$0xff]  ;;  %v765_v14 = vld [vmem:[%s10791_s23 + $0x238] sm:$0xff] }
  0xaa   : > { %1581 = vmatprep.subr.mxu0 %v803_v15  ;;  %1369 = vmatprep.mubr.f32.mxu1 %v7378_v37  ;;  %v797_v37 = vld [vmem:[%s10791_s23 + $0x338] sm:$0xff]  ;;  %v847_v15 = vld [vmem:[%s10791_s23 + $0x4c8] sm:$0xff] }
  0xab   : > { %1531 = vmatpush2.msra.mxu1 %v754_v16  ;;  %1582 = vmatpush1.msra.mxu0 %v802_v17  ;;  %v845_v16 = vld [vmem:[%s10791_s23 + $0x4b8] sm:$0xff]  ;;  %v844_v17 = vld [vmem:[%s10791_s23 + $0x4b0] sm:$0xff] }
  0xac   : > { %1370 = vmatmul.mubr.f32.gmra.mxu1 %v7387_v62  ;;  %1532 = vmatprep.subr.mxu1 %v752_v18  ;;  %v796_v62 = vld [vmem:[%s10791_s23 + $0x330] sm:$0xff]  ;;  %v714_v18 = vld [vmem:[%s10791_s23 + $0xa0] sm:$0xff] }
  0xad   : > { %1583 = vmatprep.subr.mxu0 %v800_v19  ;;  %1533 = vmatpush2.msra.mxu1 %v751_v20  ;;  %v842_v19 = vld [vmem:[%s10791_s23 + $0x4a0] sm:$0xff]  ;;  %v759_v20 = vld [vmem:[%s10791_s23 + $0x208] sm:$0xff] }
  0xae   : > { %1584 = vmatpush1.msra.mxu0 %v799_v21  ;;  %1534 = vmatprep.subr.mxu1 %v749_v22  ;;  %v841_v21 = vld [vmem:[%s10791_s23 + $0x498] sm:$0xff]  ;;  %v839_v22 = vld [vmem:[%s10791_s23 + $0x488] sm:$0xff] }
  0xaf   : > { %1585 = vmatprep.subr.mxu0 %v797_v37  ;;  %1374 = vmatprep.mubr.f32.mxu1 %v7408_v6  ;;  %v791_v6 = vld [vmem:[%s10791_s23 + $0x308] sm:$0xff]  ;;  %v756_v37 = vld [vmem:[%s10791_s23 + $0x1f0] sm:$0xff] }
  0xb0   : > { %1535 = vmatpush2.msra.mxu1 %v748_v23  ;;  %1586 = vmatpush1.msra.mxu0 %v796_v62  ;;  %v7807_v23 = vld [vmem:[%s6952_s28 + $0x18] sm:$0xff]  ;;  %v708_v62 = vld [vmem:[%s10791_s23 + $0x70] sm:$0xff] }
  0xb1   : > { %1375 = vmatmul.mubr.f32.gmra.mxu1 %v7415_v9  ;;  %1536 = vmatprep.subr.mxu1 %v746_v24  ;;  %v790_v9 = vld [vmem:[%s10791_s23 + $0x300] sm:$0xff]  ;;  %v7813_v24 = vld [vmem:[%s6952_s28 + $0x10] sm:$0xff] }
  0xb2   : > { %1587 = vmatprep.subr.mxu0 %v794_v58  ;;  %1537 = vmatpush2.msra.mxu1 %v745_v26  ;;  %v753_v58 = vld [vmem:[%s10791_s23 + $0x1d8] sm:$0xff] }
  0xb3   : > { %1588 = vmatpush1.msra.mxu0 %v793_v63  ;;  %1538 = vmatprep.subr.mxu1 %v743_v27  ;;  %v705_v26 = vld [vmem:[%s10791_s23 + $0x58] sm:$0xff]  ;;  %v750_v27 = vld [vmem:[%s10791_s23 + $0x1c0] sm:$0xff] }
  0xb4   : > { %1589 = vmatprep.subr.mxu0 %v791_v6  ;;  %1539 = vmatpush2.msra.mxu1 %v742_v28  ;;  %v837_v63 = vld [vmem:[%s10791_s23 + $0x478] sm:$0xff]  ;;  %v702_v6 = vld [vmem:[%s10791_s23 + $0x40] sm:$0xff] }
  0xb5   : > { %1540 = vmatprep.mubr.f32.mxu1 %v7643_v29  ;;  %1590 = vmatpush1.msra.mxu0 %v790_v9  ;;  %v834_v28 = vld [vmem:[%s10791_s23 + $0x460] sm:$0xff]  ;;  %v747_v9 = vld [vmem:[%s10791_s23 + $0x1a8] sm:$0xff] }
  0xb6   : > { %1541 = vmatmul.mubr.f32.vlgmr.msra.gmra.mxu1 %v7649_v30  ;;  %5468 = vmatprep.subr.msk.mxu0 %vm1124_vm0, %v872_v31  ;;  %v7842_v31 = vld [vmem:[%s6952_s28 + $0x38] sm:$0xff] }
  0xb7   : > { %6035 = vmatprep.subr.mxu1 %v789_v32  ;;  %5469 = vmatpush2.msk.msra.mxu0 %vm1124_vm0, %v871_v33  ;;  %v699_v32 = vld [vmem:[%s10791_s23 + $0x28] sm:$0xff] }
  0xb8   : > { %6036 = vmatpush3.msra.mxu1 %v741_v34  ;;  %1601 = vmatprep.subr.mxu0 %v869_v35  ;;  %v831_v33 = vld [vmem:[%s10791_s23 + $0x448] sm:$0xff]  ;;  %v744_v34 = vld [vmem:[%s10791_s23 + $0x190] sm:$0xff] }
  0xb9   : > { %6037 = vmatprep.subr.mxu1 %v786_v36  ;;  %1546 = vmatprep.mubr.f32.mxu1 %v7033_v61  ;;  %v862_v61 = vld [vmem:[%s10791_s23 + $0x540] sm:$0xff]  ;;  %v7856_v35 = vld [vmem:[%s6952_s28 + $0x30] sm:$0xff] }
  0xba   : > { %1602 = vmatpush2.msra.mxu0 %v868_v41  ;;  %6038 = vmatpush3.msra.mxu1 %v738_v44  ;;  %v696_v36 = vld [vmem:[%s10791_s23 + $0x10] sm:$0xff] }
  0xbb   : > { %1603 = vmatprep.subr.mxu0 %v866_v45  ;;  %1547 = vmatmul.mubr.f32.gmra.mxu1 %v7045_v1  ;;  %v777_v1 = vld [vmem:[%s10791_s23 + $0x298] sm:$0xff]  ;;  %v828_v41 = vld [vmem:[%s10791_s23 + $0x430] sm:$0xff] }
  0xbc   : > { %6039 = vmatprep.subr.mxu1 %v783_v46  ;;  %1604 = vmatpush2.msra.mxu0 %v865_v47  ;;  %v5523_v44 = vld [vmem:[%s10791_s23 + $0xcb0] sm:$0xff]  ;;  %v825_v45 = vld [vmem:[%s10791_s23 + $0x418] sm:$0xff]  ;;  %v5522_v46 = vld [vmem:[%s10791_s23 + $0xca8] sm:$0xff] }
  0xbd   : > { %6040 = vmatpush3.msra.mxu1 %v735_v49  ;;  %1605 = vmatprep.subr.mxu0 %v863_v50  ;;  %v7896_v47 = vld [vmem:[%s6952_s28 + $0x28] sm:$0xff]  ;;  %v5516_v50 = vld [vmem:[%s10791_s23 + $0xc78] sm:$0xff] }
  0xbe   : > { %6041 = vmatprep.subr.mxu1 %v780_v51  ;;  %1552 = vmatprep.mubr.f32.mxu1 %v7336_v39  ;;  %v819_v49 = vld [vmem:[%s10791_s23 + $0x3e8] sm:$0xff] }
  0xbf   : > { %1606 = vmatpush2.msra.mxu0 %v862_v61  ;;  %6042 = vmatpush3.msra.mxu1 %v732_v52  ;;  %v5514_v51 = vld [vmem:[%s10791_s23 + $0xc68] sm:$0xff]  ;;  %v7910_v61 = vld [vmem:[%s6952_s28 + $0x20] sm:$0xff]  ;;  %v816_v52 = vld [vmem:[%s10791_s23 + $0x3d0] sm:$0xff] }
  0xc0   : > { %1607 = vmatprep.subr.mxu0 %v860_v53  ;;  %1553 = vmatmul.mubr.f32.gmra.mxu1 %v7342_v42  ;;  %v5513_v53 = vld [vmem:[%s10791_s23 + $0xc60] sm:$0xff] }
  0xc1   : > { %6043 = vmatprep.subr.mxu1 %v777_v1  ;;  %1608 = vmatpush2.msra.mxu0 %v859_v55  ;;  %v5511_v1 = vld [vmem:[%s10791_s23 + $0xc50] sm:$0xff]  ;;  %v813_v55 = vld [vmem:[%s10791_s23 + $0x3b8] sm:$0xff] }
  0xc2   : > { %6044 = vmatpush3.msra.mxu1 %v729_v57  ;;  %1609 = vmatprep.subr.mxu0 %v857_v60  ;;  %v5510_v57 = vld [vmem:[%s10791_s23 + $0xc48] sm:$0xff]  ;;  %v5508_v60 = vld [vmem:[%s10791_s23 + $0xc38] sm:$0xff] }
  0xc3   : > { %6045 = vmatprep.subr.mxu1 %v774_v48  ;;  %1610 = vmatpush2.msra.mxu0 %v856_v43  ;;  %v5507_v48 = vld [vmem:[%s10791_s23 + $0xc30] sm:$0xff]  ;;  %v5505_v43 = vld [vmem:[%s10791_s23 + $0xc20] sm:$0xff] }
  0xc4   : > { %6046 = vmatpush3.msra.mxu1 %v726_v8  ;;  %1611 = vmatprep.subr.mxu0 %v854_v54  ;;  %v5504_v8 = vld [vmem:[%s10791_s23 + $0xc18] sm:$0xff]  ;;  %v5502_v54 = vld [vmem:[%s10791_s23 + $0xc08] sm:$0xff] }
  0xc5   : > { %6047 = vmatprep.subr.mxu1 %v771_v0  ;;  %1612 = vmatpush2.msra.mxu0 %v853_v12  ;;  %v804_v0 = vld [vmem:[%s10791_s23 + $0x370] sm:$0xff]  ;;  %v5501_v12 = vld [vmem:[%s10791_s23 + $0xc00] sm:$0xff] }
  0xc6   : > { %6048 = vmatpush3.msra.mxu1 %v723_v3  ;;  %5466 = vmatprep.mubr.msk.f32.mxu0 %vm1117_vm2, %v7193_v56  ;;  %v717_v56 = vld [vmem:[%s10791_s23 + $0xb8] sm:$0xff]  ;;  %v5499_v3 = vld [vmem:[%s10791_s23 + $0xbf0] sm:$0xff] }
  0xc7   : > { %1613 = vmatprep.subr.mxu0 %v851_v5  ;;  %6049 = vmatprep.subr.mxu1 %v768_v7  ;;  %v801_v5 = vld [vmem:[%s10791_s23 + $0x358] sm:$0xff]  ;;  %v5498_v7 = vld [vmem:[%s10791_s23 + $0xbe8] sm:$0xff] }
  0xc8   : > { %1450 = vmatmul.mubr.f32.gmra.mxu0 %v7202_v59  ;;  %6050 = vmatpush3.msra.mxu1 %v720_v11  ;;  %v762_v59 = vld [vmem:[%s10791_s23 + $0x220] sm:$0xff] }
  0xc9   : > { %1614 = vmatpush2.msra.mxu0 %v850_v10  ;;  %6051 = vmatprep.subr.mxu1 %v765_v14  ;;  %v5496_v10 = vld [vmem:[%s10791_s23 + $0xbd8] sm:$0xff]  ;;  %v798_v11 = vld [vmem:[%s10791_s23 + $0x340] sm:$0xff] }
  0xca   : > { %1615 = vmatprep.subr.mxu0 %v848_v13  ;;  %6052 = vmatpush3.msra.mxu1 %v717_v56  ;;  %v5495_v13 = vld [vmem:[%s10791_s23 + $0xbd0] sm:$0xff]  ;;  %v5493_v14 = vld [vmem:[%s10791_s23 + $0xbc0] sm:$0xff]  ;;  %v5492_v56 = vld [vmem:[%s10791_s23 + $0xbb8] sm:$0xff] }
  0xcb   : > { %1616 = vmatpush2.msra.mxu0 %v847_v15  ;;  %5467 = vmatprep.mubr.msk.f32.mxu0 %vm1117_vm2, %v7224_v2  ;;  %v711_v2 = vld [vmem:[%s10791_s23 + $0x88] sm:$0xff] }
  0xcc   : > { %1617 = vmatprep.subr.mxu0 %v845_v16  ;;  %6053 = vmatprep.subr.mxu1 %v762_v59  ;;  %v795_v15 = vld [vmem:[%s10791_s23 + $0x328] sm:$0xff]  ;;  %v792_v59 = vld [vmem:[%s10791_s23 + $0x310] sm:$0xff] }
  0xcd   : > { %1455 = vmatmul.mubr.f32.gmra.mxu0 %v7231_v4  ;;  %6054 = vmatpush3.msra.mxu1 %v714_v18  ;;  %v838_v4 = vld [vmem:[%s10791_s23 + $0x480] sm:$0xff]  ;;  %v5490_v16 = vld [vmem:[%s10791_s23 + $0xba8] sm:$0xff]  ;;  %v5487_v18 = vld [vmem:[%s10791_s23 + $0xb90] sm:$0xff] }
  0xce   : > { %1618 = vmatpush2.msra.mxu0 %v844_v17  ;;  %6055 = vmatprep.subr.mxu1 %v759_v20  ;;  %v5489_v17 = vld [vmem:[%s10791_s23 + $0xba0] sm:$0xff]  ;;  %v5486_v20 = vld [vmem:[%s10791_s23 + $0xb88] sm:$0xff] }
  0xcf   : > { %1619 = vmatprep.subr.mxu0 %v842_v19  ;;  %6056 = vmatpush3.msra.mxu1 %v711_v2  ;;  %v873_v19 = vld [vmem:[%s10791_s23 + $0x598] sm:$0x3]  ;;  %v870_v2 = vld [vmem:[%s10791_s23 + $0x580] sm:$0xff] }
  0xd0   : > { %1620 = vmatpush2.msra.mxu0 %v841_v21  ;;  %6057 = vmatprep.subr.mxu1 %v756_v37  ;;  %v5484_v21 = vld [vmem:[%s10791_s23 + $0xb78] sm:$0xff]  ;;  %v5481_v37 = vld [vmem:[%s10791_s23 + $0xb60] sm:$0xff] }
  0xd1   : > { %1621 = vmatprep.subr.mxu0 %v839_v22  ;;  %5470 = vmatprep.mubr.msk.f32.mxu0 %vm1117_vm2, %v7807_v23  ;;  %v5483_v22 = vld [vmem:[%s10791_s23 + $0xb70] sm:$0xff] }
  0xd2   : > { %1622 = vmatpush2.msra.mxu0 %v838_v4  ;;  %6058 = vmatpush3.msra.mxu1 %v708_v62  ;;  %v867_v4 = vld [vmem:[%s10791_s23 + $0x568] sm:$0xff]  ;;  %v5480_v62 = vld [vmem:[%s10791_s23 + $0xb58] sm:$0xff] }
  0xd3   : > { %1624 = vmatmul.mubr.f32.vlgmr.msra.gmra.mxu0 %v7813_v24  ;;  %6059 = vmatprep.subr.mxu1 %v753_v58  ;;  %v5478_v58 = vld [vmem:[%s10791_s23 + $0xb48] sm:$0xff] }
  0xd4   : > { %1722 = vmatprep.subr.mxu0 %v6524_v25  ;;  %6060 = vmatpush3.msra.mxu1 %v705_v26  ;;  %v864_v26 = vld [vmem:[%s10791_s23 + $0x550] sm:$0xff] }
  0xd5   : > { %1723 = vmatpush1.msra.mxu0 %v837_v63  ;;  %6061 = vmatprep.subr.mxu1 %v750_v27  ;;  %v5477_v63 = vld [vmem:[%s10791_s23 + $0xb40] sm:$0xff]  ;;  %v5571_v27 = vld [vmem:[%s10791_s23 + $0xe30] sm:$0xff] }
  0xd6   : > { %1724 = vmatprep.subr.mxu0 %v6524_v25  ;;  %5471 = vmatprep.mubr.msk.f32.mxu0 %vm1117_vm2, %v7842_v31 }
  0xd7   : > { %6062 = vmatpush3.msra.mxu1 %v702_v6  ;;  %1725 = vmatpush1.msra.mxu0 %v834_v28  ;;  %v861_v6 = vld [vmem:[%s10791_s23 + $0x538] sm:$0xff]  ;;  %v5570_v28 = vld [vmem:[%s10791_s23 + $0xe28] sm:$0xff] }
  0xd8   : > { %6063 = vmatprep.subr.mxu1 %v747_v9  ;;  %1630 = vmatmul.mubr.f32.gmra.mxu0 %v7856_v35  ;;  %v5568_v9 = vld [vmem:[%s10791_s23 + $0xe18] sm:$0xff] }
  0xd9   : > { %1726 = vmatprep.subr.mxu0 %v6524_v25  ;;  %6064 = vmatpush3.msra.mxu1 %v699_v32  ;;  %v858_v32 = vld [vmem:[%s10791_s23 + $0x520] sm:$0xff] }
  0xda   : > { %1727 = vmatpush1.msra.mxu0 %v831_v33  ;;  %6065 = vmatprep.subr.mxu1 %v744_v34  ;;  %v5567_v33 = vld [vmem:[%s10791_s23 + $0xe10] sm:$0xff]  ;;  %v5565_v34 = vld [vmem:[%s10791_s23 + $0xe00] sm:$0xff] }
  0xdb   : > { %1728 = vmatprep.subr.mxu0 %v6524_v25  ;;  %5472 = vmatprep.mubr.msk.f32.mxu0 %vm1117_vm2, %v7151_v38  ;;  %v5520_v38 = vld [vmem:[%s10791_s23 + $0xc98] sm:$0xff] }
  0xdc   : > { %6066 = vmatpush3.msra.mxu1 %v696_v36  ;;  %1706 = vmatprep.mubr.f32.mxu1 %v7643_v29  ;;  %v822_v29 = vld [vmem:[%s10791_s23 + $0x400] sm:$0xff]  ;;  %v855_v36 = vld [vmem:[%s10791_s23 + $0x508] sm:$0xff] }
  0xdd   : > { %1729 = vmatpush1.msra.mxu0 %v828_v41  ;;  %1707 = vmatmul.mubr.f32.vlgmr.msra.gmra.mxu1 %v7649_v30  ;;  %v5517_v30 = vld [vmem:[%s10791_s23 + $0xc80] sm:$0xff]  ;;  %v5564_v41 = vld [vmem:[%s10791_s23 + $0xdf8] sm:$0xff] }
  0xde   : > { %1636 = vmatmul.mubr.f32.gmra.mxu0 %v7157_v40  ;;  %1730 = vmatprep.subr.mxu0 %v6524_v25  ;;  %v5519_v40 = vld [vmem:[%s10791_s23 + $0xc90] sm:$0xff] }
  0xdf   : > { %2052 = vmatprep.subr.mxu1 %v5523_v44  ;;  %1731 = vmatpush1.msra.mxu0 %v825_v45  ;;  %v5562_v44 = vld [vmem:[%s10791_s23 + $0xde8] sm:$0xff]  ;;  %v852_v45 = vld [vmem:[%s10791_s23 + $0x4f0] sm:$0xff] }
  0xe0   : > { %2053 = vmatpush1.msra.mxu1 %v5522_v46  ;;  %1732 = vmatprep.subr.mxu0 %v6524_v25  ;;  %v5561_v46 = vld [vmem:[%s10791_s23 + $0xde0] sm:$0xff] }
  0xe1   : > { %2054 = vmatprep.subr.mxu1 %v5520_v38  ;;  %1711 = vmatprep.mubr.f32.mxu1 %v7896_v47  ;;  %v5559_v38 = vld [vmem:[%s10791_s23 + $0xdd0] sm:$0xff] }
  0xe2   : > { %1733 = vmatpush1.msra.mxu0 %v822_v29  ;;  %2055 = vmatpush1.msra.mxu1 %v5519_v40  ;;  %v849_v29 = vld [vmem:[%s10791_s23 + $0x4d8] sm:$0xff]  ;;  %v5558_v40 = vld [vmem:[%s10791_s23 + $0xdc8] sm:$0xff] }
  0xe3   : > { %1734 = vmatprep.subr.mxu0 %v6524_v25  ;;  %1712 = vmatmul.mubr.f32.gmra.mxu1 %v7910_v61 }
  0xe4   : > { %2056 = vmatprep.subr.mxu1 %v5517_v30  ;;  %1735 = vmatpush1.msra.mxu0 %v819_v49  ;;  %v5556_v30 = vld [vmem:[%s10791_s23 + $0xdb8] sm:$0xff]  ;;  %v846_v49 = vld [vmem:[%s10791_s23 + $0x4c0] sm:$0xff] }
  0xe5   : > { %2057 = vmatpush1.msra.mxu1 %v5516_v50  ;;  %1736 = vmatprep.subr.mxu0 %v6524_v25  ;;  %v5555_v50 = vld [vmem:[%s10791_s23 + $0xdb0] sm:$0xff] }
  0xe6   : > { %2058 = vmatprep.subr.mxu1 %v5514_v51  ;;  %1716 = vmatprep.mubr.f32.mxu1 %v7336_v39  ;;  %v810_v39 = vld [vmem:[%s10791_s23 + $0x3a0] sm:$0xff] }
  0xe7   : > { %1737 = vmatpush1.msra.mxu0 %v816_v52  ;;  %2059 = vmatpush1.msra.mxu1 %v5513_v53  ;;  %v5553_v51 = vld [vmem:[%s10791_s23 + $0xda0] sm:$0xff]  ;;  %v843_v52 = vld [vmem:[%s10791_s23 + $0x4a8] sm:$0xff]  ;;  %v5552_v53 = vld [vmem:[%s10791_s23 + $0xd98] sm:$0xff] }
  0xe8   : > { %1738 = vmatprep.subr.mxu0 %v6524_v25  ;;  %1717 = vmatmul.mubr.f32.gmra.mxu1 %v7342_v42  ;;  %v807_v42 = vld [vmem:[%s10791_s23 + $0x388] sm:$0xff] }
  0xe9   : > { %2060 = vmatprep.subr.mxu1 %v5511_v1  ;;  %1739 = vmatpush1.msra.mxu0 %v813_v55  ;;  %v5550_v1 = vld [vmem:[%s10791_s23 + $0xd88] sm:$0xff]  ;;  %v840_v55 = vld [vmem:[%s10791_s23 + $0x490] sm:$0xff] }
  0xea   : > { %2061 = vmatpush1.msra.mxu1 %v5510_v57  ;;  %1740 = vmatprep.subr.mxu0 %v6524_v25  ;;  %v5549_v57 = vld [vmem:[%s10791_s23 + $0xd80] sm:$0xff] }
  0xeb   : > { %2062 = vmatprep.subr.mxu1 %v5508_v60  ;;  %1741 = vmatpush1.msra.mxu0 %v810_v39  ;;  %v5547_v60 = vld [vmem:[%s10791_s23 + $0xd70] sm:$0xff] }
  0xec   : > { %2063 = vmatpush1.msra.mxu1 %v5507_v48  ;;  %1742 = vmatprep.subr.mxu0 %v6524_v25  ;;  %v5619_v39 = vld [vmem:[%s10791_s23 + $0xfb0] sm:$0xff]  ;;  %v5546_v48 = vld [vmem:[%s10791_s23 + $0xd68] sm:$0xff] }
  0xed   : > { %2064 = vmatprep.subr.mxu1 %v5505_v43  ;;  %1743 = vmatpush1.msra.mxu0 %v807_v42  ;;  %v5618_v43 = vld [vmem:[%s10791_s23 + $0xfa8] sm:$0xff]  ;;  %v5544_v42 = vld [vmem:[%s10791_s23 + $0xd58] sm:$0xff] }
  0xee   : > { %2065 = vmatpush1.msra.mxu1 %v5504_v8  ;;  %1744 = vmatprep.subr.mxu0 %v6524_v25  ;;  %v5616_v8 = vld [vmem:[%s10791_s23 + $0xf98] sm:$0xff] }
  0xef   : > { %2066 = vmatprep.subr.mxu1 %v5502_v54  ;;  %1745 = vmatpush1.msra.mxu0 %v804_v0  ;;  %v5543_v54 = vld [vmem:[%s10791_s23 + $0xd50] sm:$0xff]  ;;  %v5541_v0 = vld [vmem:[%s10791_s23 + $0xd40] sm:$0xff] }
  0xf0   : > { %2067 = vmatpush1.msra.mxu1 %v5501_v12  ;;  %1746 = vmatprep.subr.mxu0 %v6524_v25  ;;  %v5613_v12 = vld [vmem:[%s10791_s23 + $0xf80] sm:$0xff] }
  0xf1   : > { %2068 = vmatprep.subr.mxu1 %v5499_v3  ;;  %1747 = vmatpush1.msra.mxu0 %v801_v5  ;;  %v5540_v3 = vld [vmem:[%s10791_s23 + $0xd38] sm:$0xff] }
  0xf2   : > { %2069 = vmatpush1.msra.mxu1 %v5498_v7  ;;  %1748 = vmatprep.subr.mxu0 %v6524_v25  ;;  %v5612_v5 = vld [vmem:[%s10791_s23 + $0xf78] sm:$0xff] }
  0xf3   : > { %2070 = vmatprep.subr.mxu1 %v5496_v10  ;;  %1749 = vmatpush1.msra.mxu0 %v798_v11  ;;  %v5538_v11 = vld [vmem:[%s10791_s23 + $0xd28] sm:$0xff] }
  0xf4   : > { %2071 = vmatpush1.msra.mxu1 %v5495_v13  ;;  %1750 = vmatprep.subr.mxu0 %v6524_v25  ;;  %v5610_v13 = vld [vmem:[%s10791_s23 + $0xf68] sm:$0xff] }
  0xf5   : > { %2072 = vmatprep.subr.mxu1 %v5493_v14  ;;  %1751 = vmatpush1.msra.mxu0 %v795_v15  ;;  %v5537_v15 = vld [vmem:[%s10791_s23 + $0xd20] sm:$0xff] }
  0xf6   : > { %2073 = vmatpush1.msra.mxu1 %v5492_v56  ;;  %1752 = vmatprep.subr.mxu0 %v6524_v25 }
  0xf7   : > { %2074 = vmatprep.subr.mxu1 %v5490_v16  ;;  %1753 = vmatpush1.msra.mxu0 %v792_v59  ;;  %v5609_v16 = vld [vmem:[%s10791_s23 + $0xf60] sm:$0xff]  ;;  %v5535_v59 = vld [vmem:[%s10791_s23 + $0xd10] sm:$0xff] }
  0xf8   : > { %2075 = vmatpush1.msra.mxu1 %v5489_v17  ;;  %1762 = vmatprep.subr.mxu0 %v6524_v25 }
  0xf9   : > { %2076 = vmatprep.subr.mxu1 %v5487_v18  ;;  %5473 = vmatpush2.msk.msra.mxu0 %vm1124_vm0, %v873_v19  ;;  %v5607_v18 = vld [vmem:[%s10791_s23 + $0xf50] sm:$0xff]  ;;  %v8188_v19 = vld [vmem:[%s6952_s28 + $0x58] sm:$0xff] }
  0xfa   : > { %2077 = vmatpush1.msra.mxu1 %v5486_v20  ;;  %1764 = vmatprep.subr.mxu0 %v6524_v25  ;;  %v5534_v20 = vld [vmem:[%s10791_s23 + $0xd08] sm:$0xff] }
  0xfb   : > { %2078 = vmatprep.subr.mxu1 %v5484_v21  ;;  %1765 = vmatpush2.msra.mxu0 %v870_v2  ;;  %v5606_v21 = vld [vmem:[%s10791_s23 + $0xf48] sm:$0xff] }
  0xfc   : > { %2079 = vmatpush1.msra.mxu1 %v5483_v22  ;;  %1766 = vmatprep.subr.mxu0 %v6524_v25  ;;  %v1803_v2 = vld [vmem:[%s6952_s28 + $0x8] sm:$0xfc]  ;;  %v5532_v22 = vld [vmem:[%s10791_s23 + $0xcf8] sm:$0xff] }
  0xfd   : > { %2080 = vmatprep.subr.mxu1 %v5481_v37  ;;  %1767 = vmatpush2.msra.mxu0 %v867_v4  ;;  %v5604_v37 = vld [vmem:[%s10791_s23 + $0xf38] sm:$0xff]  ;;  %v1802_v4 = vld [vmem:[%s6952_s28] sm:$0xfc] }
  0xfe   : > { %2081 = vmatpush1.msra.mxu1 %v5480_v62  ;;  %1768 = vmatprep.subr.mxu0 %v6524_v25  ;;  %v8207_v62 = vld [vmem:[%s6952_s28 + $0x50] sm:$0xff] }
  0xff   : > { %2082 = vmatprep.subr.mxu1 %v5478_v58  ;;  %1769 = vmatpush2.msra.mxu0 %v864_v26  ;;  %v5531_v58 = vld [vmem:[%s10791_s23 + $0xcf0] sm:$0xff] }
 0x100   : > { %2083 = vmatpush1.msra.mxu1 %v5477_v63  ;;  %1770 = vmatprep.subr.mxu0 %v6524_v25  ;;  %v5603_v26 = vld [vmem:[%s10791_s23 + $0xf30] sm:$0xff]  ;;  %v5529_v63 = vld [vmem:[%s10791_s23 + $0xce0] sm:$0xff] }
 0x101   : > { %2084 = vmatprep.subr.mxu1 %v5571_v27  ;;  %1771 = vmatpush2.msra.mxu0 %v861_v6  ;;  %v5601_v27 = vld [vmem:[%s10791_s23 + $0xf20] sm:$0xff]  ;;  %v2003_v6 = vrot.slane %v1803_v2, 2  ;;  %v5503_v2 = vld [vmem:[%s10791_s23 + $0xc10] sm:$0xff] }
 0x102   : > { %2085 = vmatpush2.msra.mxu1 %v5570_v28  ;;  %1772 = vmatprep.subr.mxu0 %v6524_v25  ;;  %v2004_v28 = vrot.slane %v7896_v47, 2  ;;  %v5642_v47 = vld [vmem:[%s10791_s23 + $0x1068] sm:$0xff] }
 0x103   : > { %2086 = vmatprep.subr.mxu1 %v5568_v9  ;;  %1773 = vmatpush2.msra.mxu0 %v858_v32  ;;  %v5528_v9 = vld [vmem:[%s10791_s23 + $0xcd8] sm:$0xff] }
 0x104   : > { %2087 = vmatpush2.msra.mxu1 %v5567_v33  ;;  %1774 = vmatprep.subr.mxu0 %v6524_v25  ;;  %v5600_v32 = vld [vmem:[%s10791_s23 + $0xf18] sm:$0xff]  ;;  %v2000_v33 = vrot.slane %v1802_v4, 2 }
 0x105   : > { %2088 = vmatprep.subr.mxu1 %v5565_v34  ;;  %1775 = vmatpush2.msra.mxu0 %v855_v36  ;;  %v2001_v34 = vrot.slane %v7910_v61, 2  ;;  %v5526_v36 = vld [vmem:[%s10791_s23 + $0xcc8] sm:$0xff]  ;;  %v5548_v4 = vld [vmem:[%s10791_s23 + $0xd78] sm:$0xff] }
 0x106   : > { %2089 = vmatpush2.msra.mxu1 %v5564_v41  ;;  %1776 = vmatprep.subr.mxu0 %v6524_v25  ;;  %v5598_v41 = vld [vmem:[%s10791_s23 + $0xf08] sm:$0xff]  ;;  %v5640_v61 = vld [vmem:[%s10791_s23 + $0x1058] sm:$0xff] }
 0x107   : > { %2090 = vmatprep.subr.mxu1 %v5562_v44  ;;  %1777 = vmatpush2.msra.mxu0 %v852_v45  ;;  %v5525_v44 = vld [vmem:[%s10791_s23 + $0xcc0] sm:$0xff] }
 0x108   : > { %2091 = vmatpush2.msra.mxu1 %v5561_v46  ;;  %1778 = vmatprep.subr.mxu0 %v6524_v25  ;;  %v5597_v45 = vld [vmem:[%s10791_s23 + $0xf00] sm:$0xff]  ;;  %v8245_v46 = vsel %vm1999_vm3, %v2003_v6, %v2004_v28 }
 0x109   : > { %2092 = vmatprep.subr.mxu1 %v5559_v38  ;;  %1779 = vmatpush2.msra.mxu0 %v849_v29  ;;  %v5595_v38 = vld [vmem:[%s10791_s23 + $0xef0] sm:$0xff]  ;;  %v5572_v29 = vld [vmem:[%s10791_s23 + $0xe38] sm:$0xff]  ;;  %v5545_v6 = vld [vmem:[%s10791_s23 + $0xd60] sm:$0xff] }
 0x10a   : > { %2093 = vmatpush2.msra.mxu1 %v5558_v40  ;;  %1780 = vmatprep.subr.mxu0 %v6524_v25  ;;  %v8256_v40 = vsel %vm1999_vm3, %v2000_v33, %v2001_v34  ;;  %v5497_v33 = vld [vmem:[%s10791_s23 + $0xbe0] sm:$0xff] }
 0x10b   : > { %2094 = vmatprep.subr.mxu1 %v5556_v30  ;;  %1781 = vmatpush2.msra.mxu0 %v846_v49  ;;  %v5594_v30 = vld [vmem:[%s10791_s23 + $0xee8] sm:$0xff]  ;;  %v5524_v49 = vld [vmem:[%s10791_s23 + $0xcb8] sm:$0xff] }
 0x10c   : > { %2095 = vmatpush2.msra.mxu1 %v5555_v50  ;;  %1782 = vmatprep.subr.mxu0 %v6524_v25  ;;  %v5592_v50 = vld [vmem:[%s10791_s23 + $0xed8] sm:$0xff] }
 0x10d   : > { %2096 = vmatprep.subr.mxu1 %v5553_v51  ;;  %1783 = vmatpush2.msra.mxu0 %v843_v52  ;;  %v5569_v51 = vld [vmem:[%s10791_s23 + $0xe20] sm:$0xff]  ;;  %v5591_v52 = vld [vmem:[%s10791_s23 + $0xed0] sm:$0xff] }
 0x10e   : > { %2097 = vmatpush2.msra.mxu1 %v5552_v53  ;;  %1784 = vmatprep.subr.mxu0 %v6524_v25  ;;  %v5521_v53 = vld [vmem:[%s10791_s23 + $0xca0] sm:$0xff] }
 0x10f   : > { %2098 = vmatprep.subr.mxu1 %v5550_v1  ;;  %1785 = vmatpush2.msra.mxu0 %v840_v55  ;;  %v5589_v1 = vld [vmem:[%s10791_s23 + $0xec0] sm:$0xff]  ;;  %v5566_v55 = vld [vmem:[%s10791_s23 + $0xe08] sm:$0xff] }
 0x110   : > { %5474 = vmatprep.mubr.msk.f32.mxu0 %vm1117_vm2, %v7807_v23  ;;  %2099 = vmatpush2.msra.mxu1 %v5549_v57  ;;  %v1283_v23 = vpop.f32.mrf.mxu1  ;;  %v5588_v57 = vld [vmem:[%s10791_s23 + $0xeb8] sm:$0xff] }
 0x111   : > { %1787 = vmatmul.mubr.f32.vlgmr.msra.gmra.mxu0 %v7813_v24  ;;  %2100 = vmatprep.subr.mxu1 %v5547_v60  ;;  %v5615_v24 = vld [vmem:[%s10791_s23 + $0xf90] sm:$0xff]  ;;  %v5518_v60 = vld [vmem:[%s10791_s23 + $0xc88] sm:$0xff] }
 0x112   : > { %2135 = vmatprep.subr.mxu0 %v5619_v39  ;;  %2101 = vmatpush2.msra.mxu1 %v5546_v48  ;;  %v1285_v10 = vpop.f32.mrf.mxu1  ;;  %v5586_v48 = vld [vmem:[%s10791_s23 + $0xea8] sm:$0xff] }
 0x113   : > { %2136 = vmatpush1.msra.mxu0 %v5618_v43  ;;  %2102 = vmatprep.subr.mxu1 %v5544_v42  ;;  %v5563_v43 = vld [vmem:[%s10791_s23 + $0xdf0] sm:$0xff]  ;;  %v5585_v42 = vld [vmem:[%s10791_s23 + $0xea0] sm:$0xff] }
 0x114   : > { %2137 = vmatprep.subr.mxu0 %v5616_v8  ;;  %5475 = vmatprep.mubr.msk.f32.mxu0 %vm1117_vm2, %v7842_v31  ;;  %v5515_v8 = vld [vmem:[%s10791_s23 + $0xc70] sm:$0xff] }
 0x115   : > { %2103 = vmatpush2.msra.mxu1 %v5543_v54  ;;  %v1200_v7 = vpop.f32.mrf.mxu0  ;;  %2138 = vmatpush1.msra.mxu0 %v5615_v24  ;;  %v5583_v54 = vld [vmem:[%s10791_s23 + $0xe90] sm:$0xff]  ;;  %v5560_v24 = vld [vmem:[%s10791_s23 + $0xdd8] sm:$0xff] }
 0x116   : > { %2104 = vmatprep.subr.mxu1 %v5541_v0  ;;  %v8170_v14 = vadd.f32 %v1283_v23, %v1200_v7  ;;  %1792 = vmatmul.mubr.f32.gmra.mxu0 %v7856_v35  ;;  %v5582_v0 = vld [vmem:[%s10791_s23 + $0xe88] sm:$0xff] }
 0x117   : > { %2139 = vmatprep.subr.mxu0 %v5613_v12  ;;  %v1202_v56 = vpop.f32.mrf.mxu0  ;;  %2105 = vmatpush2.msra.mxu1 %v5540_v3  ;;  %v5512_v12 = vld [vmem:[%s10791_s23 + $0xc58] sm:$0xff] }
 0x118   : > { %2140 = vmatpush1.msra.mxu0 %v5612_v5  ;;  %v8182_v17 = vadd.f32 %v1285_v10, %v1202_v56  ;;  %2106 = vmatprep.subr.mxu1 %v5538_v11  ;;  %v5580_v3 = vld [vmem:[%s10791_s23 + $0xe78] sm:$0xff]  ;;  %v5557_v5 = vld [vmem:[%s10791_s23 + $0xdc0] sm:$0xff]  ;;  %v5579_v10 = vld [vmem:[%s10791_s23 + $0xe70] sm:$0xff] }
 0x119   : > { %2141 = vmatprep.subr.mxu0 %v5610_v13  ;;  %5476 = vmatprep.mubr.msk.f32.mxu0 %vm1117_vm2, %v8188_v19  ;;  %v5509_v11 = vld [vmem:[%s10791_s23 + $0xc40] sm:$0xff] }
 0x11a   : > { %2107 = vmatpush2.msra.mxu1 %v5537_v15  ;;  %2142 = vmatpush1.msra.mxu0 %v5609_v16  ;;  %v5577_v13 = vld [vmem:[%s10791_s23 + $0xe60] sm:$0xff]  ;;  %v5554_v15 = vld [vmem:[%s10791_s23 + $0xda8] sm:$0xff]  ;;  %v5576_v16 = vld [vmem:[%s10791_s23 + $0xe58] sm:$0xff] }
 0x11b   : > { %2108 = vmatprep.subr.mxu1 %v5535_v59  ;;  %1797 = vmatmul.mubr.f32.gmra.mxu0 %v8207_v62  ;;  %v5506_v59 = vld [vmem:[%s10791_s23 + $0xc28] sm:$0xff] }
 0x11c   : > { %2143 = vmatprep.subr.mxu0 %v5607_v18  ;;  %2109 = vmatpush2.msra.mxu1 %v5534_v20  ;;  %v5574_v18 = vld [vmem:[%s10791_s23 + $0xe48] sm:$0xff]  ;;  %v5551_v20 = vld [vmem:[%s10791_s23 + $0xd90] sm:$0xff] }
 0x11d   : > { %2144 = vmatpush1.msra.mxu0 %v5606_v21  ;;  %2110 = vmatprep.subr.mxu1 %v5532_v22  ;;  %v5573_v21 = vld [vmem:[%s10791_s23 + $0xe40] sm:$0xff] }
 0x11e   : > { %2145 = vmatprep.subr.mxu0 %v5604_v37  ;;  %2111 = vmatpush2.msra.mxu1 %v5531_v58  ;;  %v5655_v37 = vld [vmem:[%s10791_s23 + $0x10d0] sm:$0x3]  ;;  %v5654_v58 = vld [vmem:[%s10791_s23 + $0x10c8] sm:$0x3] }
 0x11f   : > { %2146 = vmatpush1.msra.mxu0 %v5603_v26  ;;  %2112 = vmatprep.subr.mxu1 %v5529_v63  ;;  %v5500_v26 = vld [vmem:[%s10791_s23 + $0xbf8] sm:$0xff] }
 0x120   : > { %2147 = vmatprep.subr.mxu0 %v5601_v27  ;;  %2113 = vmatpush2.msra.mxu1 %v5528_v9  ;;  %v5652_v27 = vld [vmem:[%s10791_s23 + $0x10b8] sm:$0xff] }
 0x121   : > { %2148 = vmatpush1.msra.mxu0 %v5600_v32  ;;  %2114 = vmatprep.subr.mxu1 %v5526_v36  ;;  %v5651_v32 = vld [vmem:[%s10791_s23 + $0x10b0] sm:$0xff]  ;;  %v5649_v36 = vld [vmem:[%s10791_s23 + $0x10a0] sm:$0xff] }
 0x122   : > { %2149 = vmatprep.subr.mxu0 %v5598_v41  ;;  %2115 = vmatpush2.msra.mxu1 %v5525_v44  ;;  %v5542_v41 = vld [vmem:[%s10791_s23 + $0xd48] sm:$0xff] }
 0x123   : > { %2150 = vmatpush1.msra.mxu0 %v5597_v45  ;;  %2116 = vmatprep.mubr.f32.mxu1 %v8245_v46  ;;  %v8393_v44 = vld [vmem:[%s6952_s28 + $0x48] sm:$0xff] }
 0x124   : > { %2151 = vmatprep.subr.mxu0 %v5595_v38  ;;  %6076 = vmatprep.subr.mxu1 %v5572_v29  ;;  %v2014_v45 = vrot.slane %v8393_v44, 2  ;;  %v5648_v38 = vld [vmem:[%s10791_s23 + $0x1098] sm:$0xff]  ;;  %v5494_v29 = vld [vmem:[%s10791_s23 + $0xbc8] sm:$0xff] }
 0x125   : > { %2117 = vmatmul.mubr.f32.vlgmr.msra.gmra.mxu1 %v8256_v40  ;;  %2152 = vmatpush1.msra.mxu0 %v5594_v30  ;;  %v8403_v30 = vld [vmem:[%s6952_s28 + $0x40] sm:$0xff] }
 0x126   : > { %6077 = vmatpush3.msra.mxu1 %v5524_v49  ;;  %2153 = vmatprep.subr.mxu0 %v5592_v50  ;;  %v2012_v49 = vrot.slane %v8403_v30, 2  ;;  %v5646_v50 = vld [vmem:[%s10791_s23 + $0x1088] sm:$0xff] }
 0x127   : > { %6078 = vmatprep.subr.mxu1 %v5569_v51  ;;  %v8290_v39 = vpop.f32.mrf.mxu1  ;;  %2154 = vmatpush1.msra.mxu0 %v5591_v52  ;;  %v5539_v51 = vld [vmem:[%s10791_s23 + $0xd30] sm:$0xff]  ;;  %v1807_v52 = vld [vmem:[%s6952_s28 + $0x68] sm:$0x3] }
 0x128   : > { %6079 = vmatpush3.msra.mxu1 %v5521_v53  ;;  %2155 = vmatprep.subr.mxu0 %v5589_v1  ;;  %v5645_v53 = vld [vmem:[%s10791_s23 + $0x1080] sm:$0xff]  ;;  %v5491_v1 = vld [vmem:[%s10791_s23 + $0xbb0] sm:$0xff] }
 0x129   : > { %6080 = vmatprep.subr.mxu1 %v5566_v55  ;;  %v8304_v23 = vpop.f32.mrf.mxu1  ;;  %2156 = vmatpush1.msra.mxu0 %v5588_v57  ;;  %v1806_v55 = vld [vmem:[%s6952_s28 + $0x60] sm:$0x3]  ;;  %v8423_v57 = vsel %vm1999_vm3, %v2004_v28, %v2014_v45  ;;  %v5488_v28 = vld [vmem:[%s10791_s23 + $0xb98] sm:$0xff] }
 0x12a   : > { %6081 = vmatpush3.msra.mxu1 %v5518_v60  ;;  %2157 = vmatprep.subr.mxu0 %v5586_v48  ;;  %v5643_v60 = vld [vmem:[%s10791_s23 + $0x1070] sm:$0xff]  ;;  %v5536_v48 = vld [vmem:[%s10791_s23 + $0xd18] sm:$0xff] }
 0x12b   : > { %6082 = vmatprep.subr.mxu1 %v5563_v43  ;;  %2158 = vmatpush1.msra.mxu0 %v5585_v42  ;;  %v8434_v43 = vsel %vm1999_vm3, %v2001_v34, %v2012_v49  ;;  %v2022_v42 = vrot.slane %v1807_v52, 2  ;;  %v5533_v34 = vld [vmem:[%s10791_s23 + $0xd00] sm:$0xff]  ;;  %v5711_v52 = vld [vmem:[%s10791_s23 + $0x1248] sm:$0xff] }
 0x12c   : > { %6083 = vmatpush3.msra.mxu1 %v5515_v8  ;;  %v8324_v7 = vpop.f32.mrf.mxu1  ;;  %2159 = vmatprep.subr.mxu0 %v5583_v54  ;;  %v2020_v8 = vrot.slane %v1806_v55, 2  ;;  %v5639_v54 = vld [vmem:[%s10791_s23 + $0x1050] sm:$0xff] }
 0x12d   : > { %6084 = vmatprep.subr.mxu1 %v5560_v24  ;;  %2160 = vmatpush1.msra.mxu0 %v5582_v0  ;;  %v5485_v24 = vld [vmem:[%s10791_s23 + $0xb80] sm:$0xff]  ;;  %v8457_v0 = vsel %vm1999_vm3, %v2014_v45, %v2022_v42  ;;  %v1808_v42 = vld [vmem:[%s6952_s28 + $0x70] sm:$0x3] }
 0x12e   : > { %6085 = vmatpush3.msra.mxu1 %v5512_v12  ;;  %v8338_v56 = vpop.f32.mrf.mxu1  ;;  %2161 = vmatprep.subr.mxu0 %v5580_v3  ;;  %v5637_v12 = vld [vmem:[%s10791_s23 + $0x1040] sm:$0xff]  ;;  %v5530_v3 = vld [vmem:[%s10791_s23 + $0xce8] sm:$0xff] }
 0x12f   : > { %6086 = vmatprep.subr.mxu1 %v5557_v5  ;;  %2162 = vmatpush1.msra.mxu0 %v5579_v10  ;;  %v8466_v5 = vsel %vm1999_vm3, %v2012_v49, %v2020_v8  ;;  %v5636_v10 = vld [vmem:[%s10791_s23 + $0x1038] sm:$0xff]  ;;  %v2018_v49 = vrot.slane %v8188_v19, 2  ;;  %v5706_v8 = vld [vmem:[%s10791_s23 + $0x1220] sm:$0xff] }
 0x130   : > { %6087 = vmatpush3.msra.mxu1 %v5509_v11  ;;  %2163 = vmatprep.subr.mxu0 %v5577_v13  ;;  %v5482_v11 = vld [vmem:[%s10791_s23 + $0xb68] sm:$0xff]  ;;  %v5608_v19 = vld [vmem:[%s10791_s23 + $0xf58] sm:$0xff] }
 0x131   : > { %6088 = vmatprep.subr.mxu1 %v5554_v15  ;;  %v6026_v22 = vpop.f32.mrf.mxu1  ;;  %2164 = vmatpush1.msra.mxu0 %v5576_v16  ;;  %v5634_v13 = vld [vmem:[%s10791_s23 + $0x1028] sm:$0xff]  ;;  %v5527_v15 = vld [vmem:[%s10791_s23 + $0xcd0] sm:$0xff]  ;;  %v5633_v16 = vld [vmem:[%s10791_s23 + $0x1020] sm:$0xff] }
 0x132   : > { %6089 = vmatpush3.msra.mxu1 %v5506_v59  ;;  %2165 = vmatprep.subr.mxu0 %v5574_v18  ;;  %v5479_v59 = vld [vmem:[%s10791_s23 + $0xb50] sm:$0xff] }
 0x133   : > { %6090 = vmatprep.subr.mxu1 %v5551_v20  ;;  %v6027_v63 = vpop.f32.mrf.mxu1  ;;  %2166 = vmatpush1.msra.mxu0 %v5573_v21  ;;  %v5631_v18 = vld [vmem:[%s10791_s23 + $0x1010] sm:$0xff]  ;;  %v5630_v20 = vld [vmem:[%s10791_s23 + $0x1008] sm:$0xff]  ;;  %v1805_v21 = vld [vmem:[%s6952_s28 + $0x18] sm:$0xfc] }
 0x134   : > { %6091 = vmatpush3.msra.mxu1 %v5503_v2  ;;  %v8376_v9 = vadd.f32 %v6027_v63, %v6026_v22  ;;  %5657 = vmatprep.subr.msk.mxu0 %vm1124_vm0, %v5655_v37  ;;  %v5628_v2 = vld [vmem:[%s10791_s23 + $0xff8] sm:$0xff]  ;;  %v1804_v22 = vld [vmem:[%s6952_s28 + $0x10] sm:$0xfc]  ;;  %v2010_v63 = vrot.slane %v7842_v31, 2  ;;  %v5622_v31 = vld [vmem:[%s10791_s23 + $0xfc8] sm:$0xff] }
 0x135   : > { %6092 = vmatprep.subr.mxu1 %v5548_v4  ;;  %5658 = vmatpush2.msk.msra.mxu0 %vm1124_vm0, %v5654_v58  ;;  %v5620_v37 = vld [vmem:[%s10791_s23 + $0xfb8] sm:$0xff]  ;;  %v5627_v4 = vld [vmem:[%s10791_s23 + $0xff0] sm:$0xff]  ;;  %v5625_v58 = vld [vmem:[%s10791_s23 + $0xfe0] sm:$0xff] }
 0x136   : > { %6093 = vmatpush3.msra.mxu1 %v5500_v26  ;;  %2177 = vmatprep.subr.mxu0 %v5652_v27  ;;  %v2009_v26 = vrot.slane %v1805_v21, 2  ;;  %v5593_v21 = vld [vmem:[%s10791_s23 + $0xee0] sm:$0xff] }
 0x137   : > { %6094 = vmatprep.subr.mxu1 %v5545_v6  ;;  %2178 = vmatpush2.msra.mxu0 %v5651_v32  ;;  %v5624_v6 = vld [vmem:[%s10791_s23 + $0xfd8] sm:$0xff]  ;;  %v2006_v32 = vrot.slane %v1804_v22, 2  ;;  %v5694_v22 = vld [vmem:[%s10791_s23 + $0x11c0] sm:$0xff] }
 0x138   : > { %6095 = vmatpush3.msra.mxu1 %v5497_v33  ;;  %2179 = vmatprep.subr.mxu0 %v5649_v36  ;;  %v2007_v33 = vrot.slane %v7856_v35, 2  ;;  %v5621_v35 = vld [vmem:[%s10791_s23 + $0xfc0] sm:$0xff]  ;;  %v8536_v45 = vsel %vm1999_vm3, %v2009_v26, %v2010_v63  ;;  %v5587_v26 = vld [vmem:[%s10791_s23 + $0xeb0] sm:$0xff] }
 0x139   : > { %6096 = vmatprep.subr.mxu1 %v5542_v41  ;;  %2180 = vmatpush2.msra.mxu0 %v5648_v38  ;;  %v5614_v41 = vld [vmem:[%s10791_s23 + $0xf88] sm:$0xff]  ;;  %v5611_v38 = vld [vmem:[%s10791_s23 + $0xf70] sm:$0xff] }
 0x13a   : > { %6097 = vmatpush3.msra.mxu1 %v5494_v29  ;;  %2181 = vmatprep.subr.mxu0 %v5646_v50  ;;  %v8543_v29 = vsel %vm1999_vm3, %v2006_v32, %v2007_v33  ;;  %v5712_v50 = vld [vmem:[%s10791_s23 + $0x1250] sm:$0xff]  ;;  %v5685_v32 = vld [vmem:[%s10791_s23 + $0x1178] sm:$0xff] }
 0x13b   : > { %6098 = vmatprep.subr.mxu1 %v5539_v51  ;;  %2182 = vmatpush2.msra.mxu0 %v5645_v53  ;;  %v2016_v53 = vrot.slane %v8207_v62, 2  ;;  %v5605_v62 = vld [vmem:[%s10791_s23 + $0xf40] sm:$0xff] }
 0x13c   : > { %6099 = vmatpush3.msra.mxu1 %v5491_v1  ;;  %2122 = vmatprep.mubr.f32.mxu1 %v8423_v57  ;;  %v1809_v1 = vld [vmem:[%s6952_s28 + $0x78] sm:$0x3] }
 0x13d   : > { %2183 = vmatprep.subr.mxu0 %v5643_v60  ;;  %6100 = vmatprep.subr.mxu1 %v5536_v48  ;;  %v8572_v48 = vsel %vm1999_vm3, %v2010_v63, %v2018_v49  ;;  %v5690_v63 = vld [vmem:[%s10791_s23 + $0x11a0] sm:$0xff] }
 0x13e   : > { %2123 = vmatmul.mubr.f32.gmra.mxu1 %v8434_v43  ;;  %2184 = vmatpush2.msra.mxu0 %v5642_v47  ;;  %v5708_v47 = vld [vmem:[%s10791_s23 + $0x1230] sm:$0xff] }
 0x13f   : > { %6101 = vmatpush3.msra.mxu1 %v5488_v28  ;;  %2185 = vmatprep.subr.mxu0 %v5640_v61  ;;  %v2026_v28 = vrot.slane %v1809_v1, 2  ;;  %v5653_v1 = vld [vmem:[%s10791_s23 + $0x10c0] sm:$0xff] }
 0x140   : > { %6102 = vmatprep.subr.mxu1 %v5533_v34  ;;  %2186 = vmatpush2.msra.mxu0 %v5639_v54  ;;  %v5602_v34 = vld [vmem:[%s10791_s23 + $0xf28] sm:$0xff]  ;;  %v5705_v54 = vld [vmem:[%s10791_s23 + $0x1218] sm:$0xff] }
 0x141   : > { %6103 = vmatpush3.msra.mxu1 %v5485_v24  ;;  %2128 = vmatprep.mubr.f32.mxu1 %v8457_v0  ;;  %v2024_v24 = vrot.slane %v1808_v42, 2  ;;  %v5650_v42 = vld [vmem:[%s10791_s23 + $0x10a8] sm:$0xff] }
 0x142   : > { %2187 = vmatprep.subr.mxu0 %v5637_v12  ;;  %6104 = vmatprep.subr.mxu1 %v5530_v3  ;;  %v5703_v3 = vld [vmem:[%s10791_s23 + $0x1208] sm:$0xff] }
 0x143   : > { %2129 = vmatmul.mubr.f32.gmra.mxu1 %v8466_v5  ;;  %2188 = vmatpush2.msra.mxu0 %v5636_v10 }
 0x144   : > { %6105 = vmatpush3.msra.mxu1 %v5482_v11  ;;  %2189 = vmatprep.subr.mxu0 %v5634_v13  ;;  %v8605_v11 = vsel %vm1999_vm3, %v2018_v49, %v2026_v28  ;;  %v5599_v13 = vld [vmem:[%s10791_s23 + $0xf10] sm:$0xff]  ;;  %v5667_v28 = vld [vmem:[%s10791_s23 + $0x10e8] sm:$0xff] }
 0x145   : > { %6106 = vmatprep.subr.mxu1 %v5527_v15  ;;  %2190 = vmatpush2.msra.mxu0 %v5633_v16  ;;  %v8615_v15 = vsel %vm1999_vm3, %v2016_v53, %v2024_v24  ;;  %v5700_v16 = vld [vmem:[%s10791_s23 + $0x11f0] sm:$0xff] }
 0x146   : > { %6107 = vmatpush3.msra.mxu1 %v5479_v59  ;;  %2191 = vmatprep.subr.mxu0 %v5631_v18  ;;  %v5596_v59 = vld [vmem:[%s10791_s23 + $0xef8] sm:$0xff]  ;;  %v5699_v18 = vld [vmem:[%s10791_s23 + $0x11e8] sm:$0xff]  ;;  %v5575_v49 = vld [vmem:[%s10791_s23 + $0xe50] sm:$0xff] }
 0x147   : > { %2282 = vmatprep.mubr.f32.mxu1 %v8245_v46  ;;  %2298 = vmatprep.subr.mxu1 %v6524_v25  ;;  %v5617_v46 = vld [vmem:[%s10791_s23 + $0xfa0] sm:$0xff]  ;;  %v5760_v24 = vld [vmem:[%s10791_s23 + $0x13d0] sm:$0xff] }
 0x148   : > { %2192 = vmatpush2.msra.mxu0 %v5630_v20  ;;  %v1206_v27 = vpop.f32.mrf.mxu0  ;;  %2283 = vmatmul.mubr.f32.vlgmr.msra.gmra.mxu1 %v8256_v40  ;;  %v5697_v20 = vld [vmem:[%s10791_s23 + $0x11d8] sm:$0xff] }
 0x149   : > { %2193 = vmatprep.subr.mxu0 %v5628_v2  ;;  %v8520_v36 = vadd.f32 %v8290_v39, %v1206_v27  ;;  %2299 = vmatpush1.msra.mxu1 %v5620_v37  ;;  %v5696_v2 = vld [vmem:[%s10791_s23 + $0x11d0] sm:$0xff]  ;;  %v5590_v37 = vld [vmem:[%s10791_s23 + $0xec8] sm:$0xff] }
 0x14a   : > { %2194 = vmatpush2.msra.mxu0 %v5627_v4  ;;  %v1208_v40 = vpop.f32.mrf.mxu0  ;;  %2300 = vmatprep.subr.mxu1 %v6524_v25  ;;  %v5693_v4 = vld [vmem:[%s10791_s23 + $0x11b8] sm:$0xff]  ;;  %v5688_v27 = vld [vmem:[%s10791_s23 + $0x1190] sm:$0xff] }
 0x14b   : > { %2195 = vmatprep.subr.mxu0 %v5625_v58  ;;  %v8533_v39 = vadd.f32 %v8304_v23, %v1208_v40  ;;  %2301 = vmatpush1.msra.mxu1 %v5617_v46  ;;  %v5691_v58 = vld [vmem:[%s10791_s23 + $0x11a8] sm:$0xff]  ;;  %v5584_v46 = vld [vmem:[%s10791_s23 + $0xe98] sm:$0xff]  ;;  %v5682_v40 = vld [vmem:[%s10791_s23 + $0x1160] sm:$0xff] }
 0x14c   : > { %2196 = vmatpush2.msra.mxu0 %v5624_v6  ;;  %2302 = vmatprep.subr.mxu1 %v6524_v25  ;;  %v5687_v6 = vld [vmem:[%s10791_s23 + $0x1188] sm:$0xff] }
 0x14d   : > { %2197 = vmatprep.subr.mxu0 %v5622_v31  ;;  %v1212_v23 = vpop.f32.mrf.mxu0  ;;  %2303 = vmatpush1.msra.mxu1 %v5614_v41  ;;  %v5684_v31 = vld [vmem:[%s10791_s23 + $0x1170] sm:$0xff]  ;;  %v5578_v41 = vld [vmem:[%s10791_s23 + $0xe68] sm:$0xff] }
 0x14e   : > { %2198 = vmatpush2.msra.mxu0 %v5621_v35  ;;  %v8550_v51 = vadd.f32 %v8324_v7, %v1212_v23  ;;  %2304 = vmatprep.subr.mxu1 %v6524_v25  ;;  %v5709_v7 = vld [vmem:[%s10791_s23 + $0x1238] sm:$0xff]  ;;  %v5678_v23 = vld [vmem:[%s10791_s23 + $0x1140] sm:$0xff] }
 0x14f   : > { %5659 = vmatprep.mubr.msk.f32.mxu0 %vm1117_vm2, %v8536_v45  ;;  %v1214_v55 = vpop.f32.mrf.mxu0  ;;  %2305 = vmatpush1.msra.mxu1 %v5611_v38  ;;  %v5681_v35 = vld [vmem:[%s10791_s23 + $0x1158] sm:$0xff]  ;;  %v5679_v38 = vld [vmem:[%s10791_s23 + $0x1148] sm:$0xff] }
 0x150   : > { %2200 = vmatmul.mubr.f32.vlgmr.msra.gmra.mxu0 %v8543_v29  ;;  %v8568_v60 = vadd.f32 %v8338_v56, %v1214_v55  ;;  %2306 = vmatprep.subr.mxu1 %v6524_v25  ;;  %v8583_v56 = vsel %vm1999_vm3, %v2007_v33, %v2016_v53  ;;  %v5581_v33 = vld [vmem:[%s10791_s23 + $0xe80] sm:$0xff]  ;;  %v5673_v53 = vld [vmem:[%s10791_s23 + $0x1118] sm:$0xff]  ;;  %v5672_v55 = vld [vmem:[%s10791_s23 + $0x1110] sm:$0xff] }
 0x151   : > { %2637 = vmatprep.subr.mxu0 %v5712_v50  ;;  %2307 = vmatpush1.msra.mxu1 %v5608_v19  ;;  %v5676_v50 = vld [vmem:[%s10791_s23 + $0x1130] sm:$0xff]  ;;  %v5656_v19 = vld [vmem:[%s10791_s23 + $0x10d8] sm:$0x3] }
 0x152   : > { %2638 = vmatpush1.msra.mxu0 %v5711_v52  ;;  %2308 = vmatprep.subr.mxu1 %v6524_v25  ;;  %v5675_v52 = vld [vmem:[%s10791_s23 + $0x1128] sm:$0xff] }
 0x153   : > { %2639 = vmatprep.subr.mxu0 %v5709_v7  ;;  %v1446_v61 = vpop.f32.mrf.mxu0  ;;  %5660 = vmatprep.mubr.msk.f32.mxu0 %vm1117_vm2, %v8572_v48  ;;  %v5670_v7 = vld [vmem:[%s10791_s23 + $0x1100] sm:$0xff] }
 0x154   : > { %2309 = vmatpush1.msra.mxu1 %v5605_v62  ;;  %v8597_v12 = vadd.f32 %v8376_v9, %v1446_v61  ;;  %2640 = vmatpush1.msra.mxu0 %v5708_v47  ;;  %v5702_v9 = vld [vmem:[%s10791_s23 + $0x1200] sm:$0xff]  ;;  %v5669_v47 = vld [vmem:[%s10791_s23 + $0x10f8] sm:$0xff]  ;;  %v5647_v61 = vld [vmem:[%s10791_s23 + $0x1090] sm:$0xff] }
 0x155   : > { %2310 = vmatprep.subr.mxu1 %v6524_v25  ;;  %v1448_v10 = vpop.f32.mrf.mxu0  ;;  %2206 = vmatmul.mubr.f32.gmra.mxu0 %v8583_v56 }
 0x156   : > { %2641 = vmatprep.subr.mxu0 %v5706_v8  ;;  %2311 = vmatpush1.msra.mxu1 %v5602_v34  ;;  %v5666_v34 = vld [vmem:[%s10791_s23 + $0x10e0] sm:$0xff]  ;;  %v5759_v10 = vld [vmem:[%s10791_s23 + $0x13c8] sm:$0xff] }
 0x157   : > { %2642 = vmatpush1.msra.mxu0 %v5705_v54  ;;  %2312 = vmatprep.subr.mxu1 %v6524_v25 }
 0x158   : > { %2643 = vmatprep.subr.mxu0 %v5703_v3  ;;  %5661 = vmatprep.mubr.msk.f32.mxu0 %vm1117_vm2, %v8605_v11  ;;  %v5644_v3 = vld [vmem:[%s10791_s23 + $0x1078] sm:$0xff] }
 0x159   : > { %2313 = vmatpush1.msra.mxu1 %v5599_v13  ;;  %2644 = vmatpush1.msra.mxu0 %v5702_v9  ;;  %v5757_v9 = vld [vmem:[%s10791_s23 + $0x13b8] sm:$0xff] }
 0x15a   : > { %2314 = vmatprep.subr.mxu1 %v6524_v25  ;;  %2212 = vmatmul.mubr.f32.gmra.mxu0 %v8615_v15 }
 0x15b   : > { %2645 = vmatprep.subr.mxu0 %v5700_v16  ;;  %2315 = vmatpush1.msra.mxu1 %v5596_v59  ;;  %v5641_v16 = vld [vmem:[%s10791_s23 + $0x1060] sm:$0xff]  ;;  %v5756_v59 = vld [vmem:[%s10791_s23 + $0x13b0] sm:$0xff] }
 0x15c   : > { %2646 = vmatpush1.msra.mxu0 %v5699_v18  ;;  %2316 = vmatprep.subr.mxu1 %v6524_v25 }
 0x15d   : > { %2647 = vmatprep.subr.mxu0 %v5697_v20  ;;  %2317 = vmatpush1.msra.mxu1 %v5593_v21  ;;  %v5754_v20 = vld [vmem:[%s10791_s23 + $0x13a0] sm:$0xff] }
 0x15e   : > { %2648 = vmatpush1.msra.mxu0 %v5696_v2  ;;  %2318 = vmatprep.subr.mxu1 %v6524_v25  ;;  %v5638_v2 = vld [vmem:[%s10791_s23 + $0x1048] sm:$0xff] }
 0x15f   : > { %2649 = vmatprep.subr.mxu0 %v5694_v22  ;;  %2319 = vmatpush1.msra.mxu1 %v5590_v37  ;;  %v5753_v22 = vld [vmem:[%s10791_s23 + $0x1398] sm:$0xff]  ;;  %v5751_v37 = vld [vmem:[%s10791_s23 + $0x1388] sm:$0xff] }
 0x160   : > { %2650 = vmatpush1.msra.mxu0 %v5693_v4  ;;  %2320 = vmatprep.subr.mxu1 %v6524_v25 }
 0x161   : > { %2651 = vmatprep.subr.mxu0 %v5691_v58  ;;  %2321 = vmatpush1.msra.mxu1 %v5587_v26  ;;  %v5635_v58 = vld [vmem:[%s10791_s23 + $0x1030] sm:$0xff] }
 0x162   : > { %2652 = vmatpush1.msra.mxu0 %v5690_v63  ;;  %2322 = vmatprep.subr.mxu1 %v6524_v25  ;;  %v5750_v63 = vld [vmem:[%s10791_s23 + $0x1380] sm:$0xff] }
 0x163   : > { %2653 = vmatprep.subr.mxu0 %v5688_v27  ;;  %2323 = vmatpush1.msra.mxu1 %v5584_v46  ;;  %v5748_v46 = vld [vmem:[%s10791_s23 + $0x1370] sm:$0xff] }
 0x164   : > { %2654 = vmatpush1.msra.mxu0 %v5687_v6  ;;  %2324 = vmatprep.subr.mxu1 %v6524_v25 }
 0x165   : > { %2655 = vmatprep.subr.mxu0 %v5685_v32  ;;  %2325 = vmatpush1.msra.mxu1 %v5581_v33  ;;  %v5747_v32 = vld [vmem:[%s10791_s23 + $0x1368] sm:$0xff]  ;;  %v5745_v33 = vld [vmem:[%s10791_s23 + $0x1358] sm:$0xff] }
 0x166   : > { %2656 = vmatpush1.msra.mxu0 %v5684_v31  ;;  %2326 = vmatprep.subr.mxu1 %v6524_v25  ;;  %v5744_v31 = vld [vmem:[%s10791_s23 + $0x1350] sm:$0xff] }
 0x167   : > { %2657 = vmatprep.subr.mxu0 %v5682_v40  ;;  %2327 = vmatpush1.msra.mxu1 %v5578_v41  ;;  %v5742_v40 = vld [vmem:[%s10791_s23 + $0x1340] sm:$0xff] }
 0x168   : > { %2658 = vmatpush1.msra.mxu0 %v5681_v35  ;;  %2328 = vmatprep.subr.mxu1 %v6524_v25  ;;  %v5626_v35 = vld [vmem:[%s10791_s23 + $0xfe8] sm:$0xff] }
 0x169   : > { %2659 = vmatprep.subr.mxu0 %v5679_v38  ;;  %2329 = vmatpush1.msra.mxu1 %v5575_v49  ;;  %v5739_v49 = vld [vmem:[%s10791_s23 + $0x1328] sm:$0xff] }
 0x16a   : > { %2660 = vmatpush1.msra.mxu0 %v5678_v23  ;;  %2338 = vmatprep.subr.mxu1 %v6524_v25 }
 0x16b   : > { %2661 = vmatprep.subr.mxu0 %v5676_v50  ;;  %5662 = vmatpush2.msk.msra.mxu1 %vm1124_vm0, %v5656_v19  ;;  %v5736_v50 = vld [vmem:[%s10791_s23 + $0x1310] sm:$0xff] }
 0x16c   : > { %2662 = vmatpush1.msra.mxu0 %v5675_v52  ;;  %v6029_v62 = vpop.f32.mrf.mxu1  ;;  %2340 = vmatprep.subr.mxu1 %v6524_v25  ;;  %v5808_v19 = vld [vmem:[%s10791_s23 + $0x1550] sm:$0xff] }
 0x16d   : > { %2663 = vmatprep.subr.mxu0 %v5673_v53  ;;  %2341 = vmatpush2.msra.mxu1 %v5653_v1  ;;  %v5807_v53 = vld [vmem:[%s10791_s23 + $0x1548] sm:$0xff] }
 0x16e   : > { %2664 = vmatpush1.msra.mxu0 %v5672_v55  ;;  %v6030_v8 = vpop.f32.mrf.mxu1  ;;  %2342 = vmatprep.subr.mxu1 %v6524_v25  ;;  %v5733_v55 = vld [vmem:[%s10791_s23 + $0x12f8] sm:$0xff] }
 0x16f   : > { %2665 = vmatprep.subr.mxu0 %v5670_v7  ;;  %v8740_v54 = vadd.f32 %v6030_v8, %v6029_v62  ;;  %2343 = vmatpush2.msra.mxu1 %v5650_v42  ;;  %v5732_v7 = vld [vmem:[%s10791_s23 + $0x12f0] sm:$0xff]  ;;  %v5802_v62 = vld [vmem:[%s10791_s23 + $0x1520] sm:$0xff] }
 0x170   : > { %2666 = vmatpush1.msra.mxu0 %v5669_v47  ;;  %2344 = vmatprep.subr.mxu1 %v6524_v25  ;;  %v5729_v47 = vld [vmem:[%s10791_s23 + $0x12d8] sm:$0xff] }
 0x171   : > { %2667 = vmatprep.subr.mxu0 %v5667_v28  ;;  %v6032_v13 = vpop.f32.mrf.mxu1  ;;  %2345 = vmatpush2.msra.mxu1 %v5647_v61  ;;  %v5801_v28 = vld [vmem:[%s10791_s23 + $0x1518] sm:$0xff]  ;;  %v5727_v61 = vld [vmem:[%s10791_s23 + $0x12c8] sm:$0xff] }
 0x172   : > { %2668 = vmatpush1.msra.mxu0 %v5666_v34  ;;  %2346 = vmatprep.subr.mxu1 %v6524_v25 }
 0x173   : > { %2669 = vmatprep.subr.mxu0 %v5760_v24  ;;  %v6033_v18 = vpop.f32.mrf.mxu1  ;;  %2347 = vmatpush2.msra.mxu1 %v5644_v3  ;;  %v5798_v24 = vld [vmem:[%s10791_s23 + $0x1500] sm:$0xff]  ;;  %v5724_v3 = vld [vmem:[%s10791_s23 + $0x12b0] sm:$0xff] }
 0x174   : > { %2670 = vmatpush2.msra.mxu0 %v5759_v10  ;;  %v8765_v21 = vadd.f32 %v6033_v18, %v6032_v13  ;;  %2348 = vmatprep.subr.mxu1 %v6524_v25  ;;  %v2388_v10 = vld [vmem:[%s6952_s28 + $0x8] sm:$0xf8] }
 0x175   : > { %2671 = vmatprep.subr.mxu0 %v5757_v9  ;;  %2349 = vmatpush2.msra.mxu1 %v5641_v16  ;;  %v5723_v9 = vld [vmem:[%s10791_s23 + $0x12a8] sm:$0xff] }
 0x176   : > { %2672 = vmatpush2.msra.mxu0 %v5756_v59  ;;  %v1542_v4 = vpop.f32.mrf.mxu1  ;;  %2350 = vmatprep.subr.mxu1 %v6524_v25  ;;  %v5795_v16 = vld [vmem:[%s10791_s23 + $0x14e8] sm:$0xff]  ;;  %v2387_v59 = vld [vmem:[%s6952_s28] sm:$0xf8] }
 0x177   : > { %2673 = vmatprep.subr.mxu0 %v5754_v20  ;;  %v8782_v26 = vadd.f32 %v1542_v4, %v8170_v14  ;;  %2351 = vmatpush2.msra.mxu1 %v5638_v2  ;;  %v5632_v14 = vld [vmem:[%s10791_s23 + $0x1018] sm:$0xff]  ;;  %v8937_v4 = vld [vmem:[%s6952_s28 + $0x28] sm:$0xff] }
 0x178   : > { %2674 = vmatpush2.msra.mxu0 %v5753_v22  ;;  %v1544_v27 = vpop.f32.mrf.mxu1  ;;  %2352 = vmatprep.subr.mxu1 %v6524_v25  ;;  %v5793_v20 = vld [vmem:[%s10791_s23 + $0x14d8] sm:$0xff]  ;;  %v5792_v22 = vld [vmem:[%s10791_s23 + $0x14d0] sm:$0xff] }
 0x179   : > { %2675 = vmatprep.subr.mxu0 %v5751_v37  ;;  %v8792_v6 = vadd.f32 %v1544_v27, %v8182_v17  ;;  %2287 = vmatprep.mubr.f32.mxu1 %v8423_v57  ;;  %v5629_v17 = vld [vmem:[%s10791_s23 + $0x1000] sm:$0xff]  ;;  %v2588_v37 = vrot.slane %v2388_v10, 3  ;;  %v2585_v27 = vrot.slane %v2387_v59, 3 }
 0x17a   : > { %2353 = vmatpush2.msra.mxu1 %v5635_v58  ;;  %2676 = vmatpush2.msra.mxu0 %v5750_v63  ;;  %v2589_v58 = vrot.slane %v8937_v4, 3  ;;  %v5790_v63 = vld [vmem:[%s10791_s23 + $0x14c0] sm:$0xff] }
 0x17b   : > { %2288 = vmatmul.mubr.f32.gmra.mxu1 %v8434_v43  ;;  %2354 = vmatprep.subr.mxu1 %v6524_v25  ;;  %v1548_v57 = vpop.f32.mrf.mxu1 }
 0x17c   : > { %2677 = vmatprep.subr.mxu0 %v5748_v46  ;;  %2355 = vmatpush2.msra.mxu1 %v5632_v14  ;;  %v8813_v43 = vadd.f32 %v1548_v57, %v8520_v36  ;;  %v5741_v36 = vld [vmem:[%s10791_s23 + $0x1338] sm:$0xff]  ;;  %v8947_v46 = vld [vmem:[%s6952_s28 + $0x20] sm:$0xff]  ;;  %v5787_v57 = vld [vmem:[%s10791_s23 + $0x14a8] sm:$0xff] }
 0x17d   : > { %2678 = vmatpush2.msra.mxu0 %v5747_v32  ;;  %2356 = vmatprep.subr.mxu1 %v6524_v25  ;;  %v1550_v41 = vpop.f32.mrf.mxu1  ;;  %v2586_v14 = vrot.slane %v8947_v46, 3  ;;  %v5717_v32 = vld [vmem:[%s10791_s23 + $0x1278] sm:$0xff]  ;;  %v5832_v46 = vld [vmem:[%s10791_s23 + $0x1610] sm:$0xff] }
 0x17e   : > { %2679 = vmatprep.subr.mxu0 %v5745_v33  ;;  %2292 = vmatprep.mubr.f32.mxu1 %v8457_v0  ;;  %v8827_v38 = vadd.f32 %v1550_v41, %v8533_v39  ;;  %v5623_v0 = vld [vmem:[%s10791_s23 + $0xfd0] sm:$0xff]  ;;  %v5738_v39 = vld [vmem:[%s10791_s23 + $0x1320] sm:$0xff]  ;;  %v5789_v33 = vld [vmem:[%s10791_s23 + $0x14b8] sm:$0xff]  ;;  %v8968_v41 = vsel %vm2584_vm4, %v2588_v37, %v2589_v58 }
 0x17f   : > { %2357 = vmatpush2.msra.mxu1 %v5629_v17  ;;  %2680 = vmatpush2.msra.mxu0 %v5744_v31  ;;  %v5715_v17 = vld [vmem:[%s10791_s23 + $0x1268] sm:$0xff]  ;;  %v5765_v37 = vld [vmem:[%s10791_s23 + $0x13f8] sm:$0xff] }
 0x180   : > { %2293 = vmatmul.mubr.f32.gmra.mxu1 %v8466_v5  ;;  %2358 = vmatprep.subr.mxu1 %v6524_v25  ;;  %v1554_v23 = vpop.f32.mrf.mxu1 }
 0x181   : > { %2681 = vmatprep.subr.mxu0 %v5742_v40  ;;  %2359 = vmatpush2.msra.mxu1 %v5626_v35  ;;  %v8841_v5 = vadd.f32 %v1554_v23, %v8550_v51  ;;  %v5735_v51 = vld [vmem:[%s10791_s23 + $0x1308] sm:$0xff]  ;;  %v5714_v40 = vld [vmem:[%s10791_s23 + $0x1260] sm:$0xff]  ;;  %v5784_v23 = vld [vmem:[%s10791_s23 + $0x1490] sm:$0xff] }
 0x182   : > { %2682 = vmatpush2.msra.mxu0 %v5741_v36  ;;  %2360 = vmatprep.subr.mxu1 %v6524_v25  ;;  %v1556_v52 = vpop.f32.mrf.mxu1  ;;  %v5786_v36 = vld [vmem:[%s10791_s23 + $0x14a0] sm:$0xff] }
 0x183   : > { %2683 = vmatprep.subr.mxu0 %v5739_v49  ;;  %2361 = vmatpush2.msra.mxu1 %v5623_v0  ;;  %v8859_v1 = vadd.f32 %v1556_v52, %v8568_v60  ;;  %v5730_v60 = vld [vmem:[%s10791_s23 + $0x12e0] sm:$0xff]  ;;  %v8979_v49 = vsel %vm2584_vm4, %v2585_v27, %v2586_v14  ;;  %v5781_v52 = vld [vmem:[%s10791_s23 + $0x1478] sm:$0xff]  ;;  %v5740_v27 = vld [vmem:[%s10791_s23 + $0x1330] sm:$0xff] }
 0x184   : > { %5663 = vmatprep.mubr.msk.f32.mxu1 %vm1117_vm2, %v8536_v45  ;;  %2684 = vmatpush2.msra.mxu0 %v5738_v39  ;;  %v5805_v45 = vld [vmem:[%s10791_s23 + $0x1538] sm:$0xff] }
 0x185   : > { %2363 = vmatmul.mubr.f32.vlgmr.msra.gmra.mxu1 %v8543_v29  ;;  %2685 = vmatprep.subr.mxu0 %v5736_v50  ;;  %v5804_v29 = vld [vmem:[%s10791_s23 + $0x1530] sm:$0xff]  ;;  %v5783_v50 = vld [vmem:[%s10791_s23 + $0x1488] sm:$0xff] }
 0x186   : > { %2720 = vmatprep.subr.mxu1 %v5808_v19  ;;  %2686 = vmatpush2.msra.mxu0 %v5735_v51  ;;  %v5713_v19 = vld [vmem:[%s10791_s23 + $0x1258] sm:$0xff]  ;;  %v5780_v51 = vld [vmem:[%s10791_s23 + $0x1470] sm:$0xff] }
 0x187   : > { %2721 = vmatpush1.msra.mxu1 %v5807_v53  ;;  %2687 = vmatprep.subr.mxu0 %v5733_v55  ;;  %v5710_v53 = vld [vmem:[%s10791_s23 + $0x1240] sm:$0xff] }
 0x188   : > { %2722 = vmatprep.subr.mxu1 %v5805_v45  ;;  %v1451_v42 = vpop.f32.mrf.mxu0  ;;  %5664 = vmatprep.mubr.msk.f32.mxu1 %vm1117_vm2, %v8572_v48  ;;  %v5799_v48 = vld [vmem:[%s10791_s23 + $0x1508] sm:$0xff]  ;;  %v5778_v45 = vld [vmem:[%s10791_s23 + $0x1460] sm:$0xff] }
 0x189   : > { %2688 = vmatpush2.msra.mxu0 %v5732_v7  ;;  %v8889_v8 = vadd.f32 %v8740_v54, %v1451_v42  ;;  %2723 = vmatpush1.msra.mxu1 %v5804_v29  ;;  %v5726_v54 = vld [vmem:[%s10791_s23 + $0x12c0] sm:$0xff]  ;;  %v5755_v7 = vld [vmem:[%s10791_s23 + $0x13a8] sm:$0xff] }
 0x18a   : > { %2689 = vmatprep.subr.mxu0 %v5730_v60  ;;  %v1453_v34 = vpop.f32.mrf.mxu0  ;;  %2368 = vmatmul.mubr.f32.gmra.mxu1 %v8583_v56  ;;  %v5796_v56 = vld [vmem:[%s10791_s23 + $0x14f0] sm:$0xff]  ;;  %v5777_v60 = vld [vmem:[%s10791_s23 + $0x1458] sm:$0xff] }
 0x18b   : > { %2724 = vmatprep.subr.mxu1 %v5802_v62  ;;  %2690 = vmatpush2.msra.mxu0 %v5729_v47  ;;  %v5707_v62 = vld [vmem:[%s10791_s23 + $0x1228] sm:$0xff]  ;;  %v5772_v34 = vld [vmem:[%s10791_s23 + $0x1430] sm:$0xff] }
 0x18c   : > { %2725 = vmatpush1.msra.mxu1 %v5801_v28  ;;  %2691 = vmatprep.subr.mxu0 %v5727_v61  ;;  %v5775_v47 = vld [vmem:[%s10791_s23 + $0x1448] sm:$0xff]  ;;  %v5774_v61 = vld [vmem:[%s10791_s23 + $0x1440] sm:$0xff] }
 0x18d   : > { %2726 = vmatprep.subr.mxu1 %v5799_v48  ;;  %v1456_v13 = vpop.f32.mrf.mxu0  ;;  %5665 = vmatprep.mubr.msk.f32.mxu1 %vm1117_vm2, %v8605_v11  ;;  %v5721_v11 = vld [vmem:[%s10791_s23 + $0x1298] sm:$0xff]  ;;  %v5704_v48 = vld [vmem:[%s10791_s23 + $0x1210] sm:$0xff] }
 0x18e   : > { %2692 = vmatpush2.msra.mxu0 %v5726_v54  ;;  %v8921_v18 = vadd.f32 %v8765_v21, %v1456_v13  ;;  %2727 = vmatpush1.msra.mxu1 %v5798_v24  ;;  %v5720_v21 = vld [vmem:[%s10791_s23 + $0x1290] sm:$0xff]  ;;  %v5769_v13 = vld [vmem:[%s10791_s23 + $0x1418] sm:$0xff] }
 0x18f   : > { %2693 = vmatprep.subr.mxu0 %v5724_v3  ;;  %v1458_v2 = vpop.f32.mrf.mxu0  ;;  %2373 = vmatmul.mubr.f32.gmra.mxu1 %v8615_v15  ;;  %v5718_v15 = vld [vmem:[%s10791_s23 + $0x1280] sm:$0xff]  ;;  %v5771_v3 = vld [vmem:[%s10791_s23 + $0x1428] sm:$0xff] }
 0x190   : > { %2728 = vmatprep.subr.mxu1 %v5796_v56  ;;  %2694 = vmatpush2.msra.mxu0 %v5723_v9  ;;  %v5701_v56 = vld [vmem:[%s10791_s23 + $0x11f8] sm:$0xff]  ;;  %v5746_v9 = vld [vmem:[%s10791_s23 + $0x1360] sm:$0xff] }
 0x191   : > { %2729 = vmatpush1.msra.mxu1 %v5795_v16  ;;  %2695 = vmatprep.subr.mxu0 %v5721_v11  ;;  %v5768_v11 = vld [vmem:[%s10791_s23 + $0x1410] sm:$0xff] }
 0x192   : > { %2730 = vmatprep.subr.mxu1 %v5793_v20  ;;  %2696 = vmatpush2.msra.mxu0 %v5720_v21  ;;  %v5766_v21 = vld [vmem:[%s10791_s23 + $0x1400] sm:$0xff] }
 0x193   : > { %2731 = vmatpush1.msra.mxu1 %v5792_v22  ;;  %v1625_v31 = vpop.f32.mrf.mxu0  ;;  %2697 = vmatprep.subr.mxu0 %v5718_v15  ;;  %v5743_v22 = vld [vmem:[%s10791_s23 + $0x1348] sm:$0xff] }
 0x194   : > { %2732 = vmatprep.subr.mxu1 %v5790_v63  ;;  %v8971_v35 = vadd.f32 %v1625_v31, %v8782_v26  ;;  %2698 = vmatpush2.msra.mxu0 %v5717_v32  ;;  %v5761_v26 = vld [vmem:[%s10791_s23 + $0x13d8] sm:$0xff]  ;;  %v5763_v63 = vld [vmem:[%s10791_s23 + $0x13e8] sm:$0xff] }
 0x195   : > { %2733 = vmatpush1.msra.mxu1 %v5789_v33  ;;  %v1627_v0 = vpop.f32.mrf.mxu0  ;;  %2699 = vmatprep.subr.mxu0 %v5715_v17  ;;  %v5762_v33 = vld [vmem:[%s10791_s23 + $0x13e0] sm:$0xff]  ;;  %v5844_v17 = vld [vmem:[%s10791_s23 + $0x1670] sm:$0x3] }
 0x196   : > { %2734 = vmatprep.subr.mxu1 %v5787_v57  ;;  %v8988_v39 = vadd.f32 %v1627_v0, %v8792_v6  ;;  %2700 = vmatpush2.msra.mxu0 %v5714_v40  ;;  %v5758_v6 = vld [vmem:[%s10791_s23 + $0x13c0] sm:$0xff]  ;;  %v5737_v57 = vld [vmem:[%s10791_s23 + $0x1318] sm:$0xff]  ;;  %v5843_v40 = vld [vmem:[%s10791_s23 + $0x1668] sm:$0x3] }
 0x197   : > { %2701 = vmatprep.mubr.f32.mxu0 %v8968_v41  ;;  %2735 = vmatpush1.msra.mxu1 %v5786_v36  ;;  %v5689_v36 = vld [vmem:[%s10791_s23 + $0x1198] sm:$0xff] }
 0x198   : > { %2702 = vmatmul.mubr.f32.vlgmr.msra.gmra.mxu0 %v8979_v49  ;;  %2736 = vmatprep.subr.mxu1 %v5784_v23  ;;  %v1631_v55 = vpop.f32.mrf.mxu0  ;;  %v5841_v23 = vld [vmem:[%s10791_s23 + $0x1658] sm:$0xff] }
 0x199   : > { %6117 = vmatprep.subr.mxu0 %v5761_v26  ;;  %2737 = vmatpush1.msra.mxu1 %v5783_v50  ;;  %v9017_v29 = vadd.f32 %v1631_v55, %v8813_v43  ;;  %v5752_v43 = vld [vmem:[%s10791_s23 + $0x1390] sm:$0xff]  ;;  %v5734_v26 = vld [vmem:[%s10791_s23 + $0x1300] sm:$0xff]  ;;  %v2599_v50 = vrot.slane %v8393_v44, 3  ;;  %v5731_v55 = vld [vmem:[%s10791_s23 + $0x12e8] sm:$0xff] }
 0x19a   : > { %6118 = vmatpush3.msra.mxu0 %v5713_v19  ;;  %2738 = vmatprep.subr.mxu1 %v5781_v52  ;;  %v1633_v42 = vpop.f32.mrf.mxu0  ;;  %v5840_v19 = vld [vmem:[%s10791_s23 + $0x1650] sm:$0xff]  ;;  %v5686_v52 = vld [vmem:[%s10791_s23 + $0x1180] sm:$0xff] }
 0x19b   : > { %6119 = vmatprep.subr.mxu0 %v5758_v6  ;;  %2739 = vmatpush1.msra.mxu1 %v5780_v51  ;;  %v9032_v28 = vadd.f32 %v1633_v42, %v8827_v38  ;;  %v5749_v38 = vld [vmem:[%s10791_s23 + $0x1378] sm:$0xff]  ;;  %v2597_v6 = vrot.slane %v8403_v30, 3  ;;  %v5838_v44 = vld [vmem:[%s10791_s23 + $0x1640] sm:$0xff]  ;;  %v5835_v42 = vld [vmem:[%s10791_s23 + $0x1628] sm:$0xff] }
 0x19c   : > { %6120 = vmatpush3.msra.mxu0 %v5710_v53  ;;  %2740 = vmatprep.subr.mxu1 %v5778_v45  ;;  %v2392_v45 = vld [vmem:[%s6952_s28 + $0x68] sm:$0x7]  ;;  %v5837_v30 = vld [vmem:[%s10791_s23 + $0x1638] sm:$0xff] }
 0x19d   : > { %6121 = vmatprep.subr.mxu0 %v5755_v7  ;;  %2741 = vmatpush1.msra.mxu1 %v5777_v60  ;;  %v6067_v24 = vpop.f32.mrf.mxu1  ;;  %v2391_v7 = vld [vmem:[%s6952_s28 + $0x60] sm:$0x7]  ;;  %v2607_v4 = vrot.slane %v2392_v45, 3 }
 0x19e   : > { %6122 = vmatpush3.msra.mxu0 %v5707_v62  ;;  %v1637_v54 = vpop.f32.mrf.mxu0  ;;  %2742 = vmatprep.subr.mxu1 %v5775_v47  ;;  %v9145_v62 = vsel %vm2584_vm4, %v2589_v58, %v2599_v50  ;;  %v5834_v58 = vld [vmem:[%s10791_s23 + $0x1620] sm:$0xff] }
 0x19f   : > { %6123 = vmatprep.subr.mxu0 %v5752_v43  ;;  %v9053_v10 = vadd.f32 %v1637_v54, %v8841_v5  ;;  %2743 = vmatpush1.msra.mxu1 %v5774_v61  ;;  %v6068_v59 = vpop.f32.mrf.mxu1  ;;  %v5698_v5 = vld [vmem:[%s10791_s23 + $0x11e0] sm:$0xff]  ;;  %v5728_v43 = vld [vmem:[%s10791_s23 + $0x12d0] sm:$0xff]  ;;  %v9156_v61 = vsel %vm2584_vm4, %v2586_v14, %v2597_v6  ;;  %v5725_v14 = vld [vmem:[%s10791_s23 + $0x12b8] sm:$0xff] }
 0x1a0   : > { %6124 = vmatpush3.msra.mxu0 %v5704_v48  ;;  %v1639_v16 = vpop.f32.mrf.mxu0  ;;  %2744 = vmatprep.subr.mxu1 %v5772_v34  ;;  %v6069_v2 = vadd.f32 %v6068_v59, %v6067_v24  ;;  %v5680_v48 = vld [vmem:[%s10791_s23 + $0x1150] sm:$0xff]  ;;  %v2605_v34 = vrot.slane %v2391_v7, 3  ;;  %v5831_v54 = vld [vmem:[%s10791_s23 + $0x1608] sm:$0xff]  ;;  %v9182_v24 = vsel %vm2584_vm4, %v2599_v50, %v2607_v4  ;;  %v5826_v59 = vld [vmem:[%s10791_s23 + $0x15e0] sm:$0xff] }
 0x1a1   : > { %6125 = vmatprep.subr.mxu0 %v5749_v38  ;;  %v9068_v20 = vadd.f32 %v1639_v16, %v8859_v1  ;;  %2745 = vmatpush1.msra.mxu1 %v5771_v3  ;;  %v5695_v1 = vld [vmem:[%s10791_s23 + $0x11c8] sm:$0xff]  ;;  %v5829_v3 = vld [vmem:[%s10791_s23 + $0x15f8] sm:$0xff]  ;;  %v5674_v16 = vld [vmem:[%s10791_s23 + $0x1120] sm:$0xff] }
 0x1a2   : > { %6126 = vmatpush3.msra.mxu0 %v5701_v56  ;;  %2746 = vmatprep.subr.mxu1 %v5769_v13  ;;  %v9083_v15 = vadd.f32 %v6069_v2, %v8597_v12  ;;  %v5692_v12 = vld [vmem:[%s10791_s23 + $0x11b0] sm:$0xff]  ;;  %v5722_v56 = vld [vmem:[%s10791_s23 + $0x12a0] sm:$0xff]  ;;  %v9191_v13 = vsel %vm2584_vm4, %v2597_v6, %v2605_v34  ;;  %v5671_v2 = vld [vmem:[%s10791_s23 + $0x1108] sm:$0xff] }
 0x1a3   : > { %6127 = vmatprep.subr.mxu0 %v5746_v9  ;;  %2747 = vmatpush1.msra.mxu1 %v5768_v11  ;;  %v6070_v32 = vpop.f32.mrf.mxu1  ;;  %v5828_v9 = vld [vmem:[%s10791_s23 + $0x15f0] sm:$0xff]  ;;  %v5719_v11 = vld [vmem:[%s10791_s23 + $0x1288] sm:$0xff]  ;;  %v5813_v50 = vld [vmem:[%s10791_s23 + $0x1578] sm:$0xff] }
 0x1a4   : > { %6128 = vmatpush3.msra.mxu0 %v5698_v5  ;;  %2748 = vmatprep.subr.mxu1 %v5766_v21  ;;  %v5825_v5 = vld [vmem:[%s10791_s23 + $0x15d8] sm:$0xff]  ;;  %v5823_v21 = vld [vmem:[%s10791_s23 + $0x15c8] sm:$0xff]  ;;  %v6515_v7 = vld [vmem:[%s6952_s28 + $0x50] sm:$0xff] }
 0x1a5   : > { %6129 = vmatprep.subr.mxu0 %v5743_v22  ;;  %2749 = vmatpush1.msra.mxu1 %v5765_v37  ;;  %v6071_v31 = vpop.f32.mrf.mxu1  ;;  %v5716_v22 = vld [vmem:[%s10791_s23 + $0x1270] sm:$0xff]  ;;  %v5822_v37 = vld [vmem:[%s10791_s23 + $0x15c0] sm:$0xff]  ;;  %v5797_v4 = vld [vmem:[%s10791_s23 + $0x14f8] sm:$0xff] }
 0x1a6   : > { %6130 = vmatpush3.msra.mxu0 %v5695_v1  ;;  %2750 = vmatprep.subr.mxu1 %v5763_v63  ;;  %v6072_v0 = vadd.f32 %v6071_v31, %v6070_v32  ;;  %v5668_v1 = vld [vmem:[%s10791_s23 + $0x10f0] sm:$0xff]  ;;  %v5819_v32 = vld [vmem:[%s10791_s23 + $0x15a8] sm:$0xff]  ;;  %v5806_v31 = vld [vmem:[%s10791_s23 + $0x1540] sm:$0xff] }
 0x1a7   : > { %6131 = vmatprep.subr.mxu0 %v5740_v27  ;;  %2751 = vmatpush1.msra.mxu1 %v5762_v33  ;;  %v5820_v63 = vld [vmem:[%s10791_s23 + $0x15b0] sm:$0xff]  ;;  %v2390_v27 = vld [vmem:[%s6952_s28 + $0x18] sm:$0xf8] }
 0x1a8   : > { %6132 = vmatpush3.msra.mxu0 %v5692_v12  ;;  %5846 = vmatprep.subr.msk.mxu1 %vm1124_vm0, %v5844_v17  ;;  %v6073_v51 = vpop.f32.mrf.mxu1  ;;  %v9125_v53 = vadd.f32 %v6072_v0, %v8889_v8  ;;  %v5683_v8 = vld [vmem:[%s10791_s23 + $0x1168] sm:$0xff]  ;;  %v5809_v33 = vld [vmem:[%s10791_s23 + $0x1558] sm:$0xff]  ;;  %v2389_v12 = vld [vmem:[%s6952_s28 + $0x10] sm:$0xf8] }
 0x1a9   : > { %6133 = vmatprep.subr.mxu0 %v5737_v57  ;;  %5847 = vmatpush2.msk.msra.mxu1 %vm1124_vm0, %v5843_v40  ;;  %v5817_v17 = vld [vmem:[%s10791_s23 + $0x1598] sm:$0xff]  ;;  %v5816_v57 = vld [vmem:[%s10791_s23 + $0x1590] sm:$0xff]  ;;  %v2594_v40 = vrot.slane %v2390_v27, 3  ;;  %v2591_v0 = vrot.slane %v2389_v12, 3  ;;  %v5839_v27 = vld [vmem:[%s10791_s23 + $0x1648] sm:$0xff] }
 0x1aa   : > { %6134 = vmatpush3.msra.mxu0 %v5689_v36  ;;  %2762 = vmatprep.subr.mxu1 %v5841_v23  ;;  %v6074_v60 = vpop.f32.mrf.mxu1  ;;  %v6513_v23 = vld [vmem:[%s6952_s28 + $0x30] sm:$0xff]  ;;  %v5827_v12 = vld [vmem:[%s10791_s23 + $0x15e8] sm:$0xff] }
 0x1ab   : > { %6135 = vmatprep.subr.mxu0 %v5734_v26  ;;  %2763 = vmatpush2.msra.mxu1 %v5840_v19  ;;  %v6075_v47 = vadd.f32 %v6074_v60, %v6073_v51  ;;  %v2592_v26 = vrot.slane %v6513_v23, 3  ;;  %v5803_v19 = vld [vmem:[%s10791_s23 + $0x1528] sm:$0xff]  ;;  %v2601_v60 = vrot.slane %v6515_v7, 3 }
 0x1ac   : > { %6136 = vmatpush3.msra.mxu0 %v5686_v52  ;;  %2764 = vmatprep.subr.mxu1 %v5838_v44  ;;  %v6514_v52 = vld [vmem:[%s6952_s28 + $0x58] sm:$0xff]  ;;  %v5811_v51 = vld [vmem:[%s10791_s23 + $0x1568] sm:$0xff] }
 0x1ad   : > { %6137 = vmatprep.subr.mxu0 %v5731_v55  ;;  %2765 = vmatpush2.msra.mxu1 %v5837_v30  ;;  %v9165_v38 = vadd.f32 %v6075_v47, %v8921_v18  ;;  %v5677_v18 = vld [vmem:[%s10791_s23 + $0x1138] sm:$0xff]  ;;  %v2603_v6 = vrot.slane %v6514_v52, 3  ;;  %v5810_v55 = vld [vmem:[%s10791_s23 + $0x1560] sm:$0xff]  ;;  %v5800_v30 = vld [vmem:[%s10791_s23 + $0x1510] sm:$0xff] }
 0x1ae   : > { %6138 = vmatpush3.msra.mxu0 %v5683_v8  ;;  %2707 = vmatprep.mubr.f32.mxu0 %v9145_v62  ;;  %v2394_v44 = vld [vmem:[%s6952_s28 + $0x78] sm:$0x7]  ;;  %v9274_v8 = vsel %vm2584_vm4, %v2591_v0, %v2592_v26 }
 0x1af   : > { %2766 = vmatprep.subr.mxu1 %v5835_v42  ;;  %6139 = vmatprep.subr.mxu0 %v5728_v43  ;;  %v2611_v47 = vrot.slane %v2394_v44, 3  ;;  %v2393_v43 = vld [vmem:[%s6952_s28 + $0x70] sm:$0x7] }
 0x1b0   : > { %2708 = vmatmul.mubr.f32.gmra.mxu0 %v9156_v61  ;;  %2767 = vmatpush2.msra.mxu1 %v5834_v58  ;;  %v5794_v58 = vld [vmem:[%s10791_s23 + $0x14e0] sm:$0xff]  ;;  %v2609_v34 = vrot.slane %v2393_v43, 3 }
 0x1b1   : > { %6140 = vmatpush3.msra.mxu0 %v5680_v48  ;;  %2768 = vmatprep.subr.mxu1 %v5832_v46  ;;  %v9294_v48 = vsel %vm2584_vm4, %v2592_v26, %v2601_v60  ;;  %v9297_v46 = vsel %vm2584_vm4, %v2603_v6, %v2611_v47 }
 0x1b2   : > { %6141 = vmatprep.subr.mxu0 %v5725_v14  ;;  %2769 = vmatpush2.msra.mxu1 %v5831_v54  ;;  %v5791_v14 = vld [vmem:[%s10791_s23 + $0x14c8] sm:$0xff]  ;;  %v9313_v54 = vsel %vm2584_vm4, %v2601_v60, %v2609_v34 }
 0x1b3   : > { %6142 = vmatpush3.msra.mxu0 %v5677_v18  ;;  %2713 = vmatprep.mubr.f32.mxu0 %v9182_v24  ;;  %v5782_v18 = vld [vmem:[%s10791_s23 + $0x1480] sm:$0xff] }
 0x1b4   : > { %2770 = vmatprep.subr.mxu1 %v5829_v3  ;;  %6143 = vmatprep.subr.mxu0 %v5722_v56  ;;  %v5776_v3 = vld [vmem:[%s10791_s23 + $0x1450] sm:$0xff] }
 0x1b5   : > { %2714 = vmatmul.mubr.f32.gmra.mxu0 %v9191_v13  ;;  %2771 = vmatpush2.msra.mxu1 %v5828_v9  ;;  %v5773_v9 = vld [vmem:[%s10791_s23 + $0x1438] sm:$0xff] }
 0x1b6   : > { %6144 = vmatpush3.msra.mxu0 %v5674_v16  ;;  %2772 = vmatprep.subr.mxu1 %v5826_v59  ;;  %v5770_v59 = vld [vmem:[%s10791_s23 + $0x1420] sm:$0xff] }
 0x1b7   : > { %6145 = vmatprep.subr.mxu0 %v5719_v11  ;;  %2773 = vmatpush2.msra.mxu1 %v5825_v5 }
 0x1b8   : > { %6146 = vmatpush3.msra.mxu0 %v5671_v2  ;;  %2774 = vmatprep.subr.mxu1 %v5823_v21  ;;  %v5764_v2 = vld [vmem:[%s10791_s23 + $0x13f0] sm:$0xff] }
 0x1b9   : > { %6147 = vmatprep.subr.mxu0 %v5716_v22  ;;  %2775 = vmatpush2.msra.mxu1 %v5822_v37  ;;  %v5845_v22 = vld [vmem:[%s10791_s23 + $0x1678] sm:$0x3] }
 0x1ba   : > { %6148 = vmatpush3.msra.mxu0 %v5668_v1  ;;  %2867 = vmatprep.mubr.f32.mxu0 %v8968_v41  ;;  %v6512_v41 = vld [vmem:[%s6952_s28 + $0x38] sm:$0xff] }
 0x1bb   : > { %2776 = vmatprep.subr.mxu1 %v5820_v63  ;;  %2868 = vmatmul.mubr.f32.vlgmr.msra.gmra.mxu0 %v8979_v49  ;;  %v2595_v36 = vrot.slane %v6512_v41, 3  ;;  %v5814_v49 = vld [vmem:[%s10791_s23 + $0x1580] sm:$0xff]  ;;  %v5812_v41 = vld [vmem:[%s10791_s23 + $0x1570] sm:$0xff] }
 0x1bc   : > { %2883 = vmatprep.subr.mxu0 %v6524_v25  ;;  %2777 = vmatpush2.msra.mxu1 %v5819_v32  ;;  %v5836_v32 = vld [vmem:[%s10791_s23 + $0x1630] sm:$0xff] }
 0x1bd   : > { %2884 = vmatpush1.msra.mxu0 %v5809_v33  ;;  %2778 = vmatprep.subr.mxu1 %v5817_v17  ;;  %v2596_v45 = vsel %vm2584_vm4, %v2594_v40, %v2595_v36  ;;  %v9279_v42 = vsel %vm2584_vm4, %v2595_v36, %v2603_v6  ;;  %v5830_v33 = vld [vmem:[%s10791_s23 + $0x1600] sm:$0xff]  ;;  %v5824_v17 = vld [vmem:[%s10791_s23 + $0x15d0] sm:$0xff]  ;;  %v5815_v40 = vld [vmem:[%s10791_s23 + $0x1588] sm:$0xff] }
 0x1be   : > { %2885 = vmatprep.subr.mxu0 %v6524_v25  ;;  %2779 = vmatpush2.msra.mxu1 %v5816_v57  ;;  %v5821_v57 = vld [vmem:[%s10791_s23 + $0x15b8] sm:$0xff] }
 0x1bf   : > { %2886 = vmatpush1.msra.mxu0 %v5806_v31  ;;  %2780 = vmatprep.subr.mxu1 %v5814_v49  ;;  %v5818_v31 = vld [vmem:[%s10791_s23 + $0x15a0] sm:$0xff] }
 0x1c0   : > { %2887 = vmatprep.subr.mxu0 %v6524_v25  ;;  %2781 = vmatpush2.msra.mxu1 %v5813_v50 }
 0x1c1   : > { %2888 = vmatpush1.msra.mxu0 %v5803_v19  ;;  %2782 = vmatprep.subr.mxu1 %v5811_v51 }
 0x1c2   : > { %2889 = vmatprep.subr.mxu0 %v6524_v25  ;;  %2783 = vmatpush2.msra.mxu1 %v5810_v55 }
 0x1c3   : > { %5848 = vmatprep.mubr.msk.f32.mxu1 %vm1117_vm2, %v2596_v45  ;;  %2890 = vmatpush1.msra.mxu0 %v5800_v30 }
 0x1c4   : > { %2785 = vmatmul.mubr.f32.vlgmr.msra.gmra.mxu1 %v9274_v8  ;;  %2891 = vmatprep.subr.mxu0 %v6524_v25 }
 0x1c5   : > { %5849 = vmatprep.mubr.msk.f32.mxu1 %vm1117_vm2, %v9279_v42  ;;  %2892 = vmatpush1.msra.mxu0 %v5797_v4 }
 0x1c6   : > { %2872 = vmatprep.mubr.f32.mxu0 %v9145_v62  ;;  %2893 = vmatprep.subr.mxu0 %v6524_v25  ;;  %v5788_v62 = vld [vmem:[%s10791_s23 + $0x14b0] sm:$0xff] }
 0x1c7   : > { %2873 = vmatmul.mubr.f32.gmra.mxu0 %v9156_v61  ;;  %v5785_v61 = vld [vmem:[%s10791_s23 + $0x1498] sm:$0xff] }
 0x1c8   : > { %2894 = vmatpush1.msra.mxu0 %v5794_v58  ;;  %2791 = vmatmul.mubr.f32.gmra.mxu1 %v9294_v48 }
 0x1c9   : > { %2895 = vmatprep.subr.mxu0 %v6524_v25  ;;  %5850 = vmatprep.mubr.msk.f32.mxu1 %vm1117_vm2, %v9297_v46 }
 0x1ca   : > { %2896 = vmatpush1.msra.mxu0 %v5791_v14  ;;  %2877 = vmatprep.mubr.f32.mxu0 %v9182_v24  ;;  %v5779_v24 = vld [vmem:[%s10791_s23 + $0x1468] sm:$0xff] }
 0x1cb   : > { %2897 = vmatprep.subr.mxu0 %v6524_v25  ;;  %2878 = vmatmul.mubr.f32.gmra.mxu0 %v9191_v13 }
 0x1cc   : > { %2898 = vmatpush1.msra.mxu0 %v5788_v62  ;;  %2797 = vmatmul.mubr.f32.gmra.mxu1 %v9313_v54 }
 0x1cd   : > { %2899 = vmatprep.subr.mxu0 %v6524_v25  ;;  %5852 = vmatprep.mubr.msk.f32.mxu0 %vm1117_vm2, %v2596_v45 }
 0x1ce   : > { %2900 = vmatpush1.msra.mxu0 %v5785_v61  ;;  %3098 = vmatprep.mubr.f32.mxu1 %v6524_v25 }
 0x1cf   : > { %2901 = vmatprep.subr.mxu0 %v6524_v25 }
 0x1d0   : > { %2902 = vmatpush1.msra.mxu0 %v5782_v18 }
 0x1d1   : > { %2903 = vmatprep.subr.mxu0 %v6524_v25  ;;  %v1788_v56 = vpop.f32.mrf.mxu0 }
 0x1d2   : > { %2904 = vmatpush1.msra.mxu0 %v5779_v24  ;;  %v9337_v13 = vadd.f32 %v1788_v56, %v9083_v15  ;;  %v5767_v15 = vld [vmem:[%s10791_s23 + $0x1408] sm:$0xff] }
 0x1d3   : > { %2905 = vmatprep.subr.mxu0 %v6524_v25  ;;  %v1790_v16 = vpop.f32.mrf.mxu0 }
 0x1d4   : > { %2906 = vmatpush1.msra.mxu0 %v5776_v3 }
 0x1d5   : > { %2907 = vmatprep.subr.mxu0 %v6524_v25 }
 0x1d6   : > { %2908 = vmatpush1.msra.mxu0 %v5773_v9  ;;  %v1793_v11 = vpop.f32.mrf.mxu0 }
 0x1d7   : > { %2909 = vmatprep.subr.mxu0 %v6524_v25  ;;  %v9352_v5 = vadd.f32 %v1793_v11, %v9125_v53  ;;  %v5842_v53 = vld [vmem:[%s10791_s23 + $0x1660] sm:$0xff] }
 0x1d8   : > { %2910 = vmatpush1.msra.mxu0 %v5770_v59  ;;  %v1795_v21 = vpop.f32.mrf.mxu0 }
 0x1d9   : > { %2911 = vmatprep.subr.mxu0 %v6524_v25 }
 0x1da   : > { %2912 = vmatpush1.msra.mxu0 %v5767_v15 }
 0x1db   : > { %2913 = vmatprep.subr.mxu0 %v6524_v25  ;;  %v1798_v37 = vpop.f32.mrf.mxu0 }
 0x1dc   : > { %2914 = vmatpush1.msra.mxu0 %v5764_v2  ;;  %v9367_v1 = vadd.f32 %v1798_v37, %v9165_v38  ;;  %v5833_v38 = vld [vmem:[%s10791_s23 + $0x1618] sm:$0xff] }
 0x1dd   : > { %2923 = vmatprep.subr.mxu0 %v6524_v25  ;;  %v1800_v63 = vpop.f32.mrf.mxu0 }
 0x1de   : > { %5851 = vmatpush2.msk.msra.mxu0 %vm1124_vm0, %v5845_v22  ;;  %v2974_v63 = vlaneseq }
 0x1df   : > { %2925 = vmatprep.subr.mxu0 %v6524_v25 }
 0x1e0   : > { %2926 = vmatpush2.msra.mxu0 %v5842_v53 }
 0x1e1   : > { %2927 = vmatprep.subr.mxu0 %v6524_v25 }
 0x1e2   : > { %2928 = vmatpush2.msra.mxu0 %v5839_v27 }
 0x1e3   : > { %2929 = vmatprep.subr.mxu0 %v6524_v25 }
 0x1e4   : > { %2930 = vmatpush2.msra.mxu0 %v5836_v32  ;;  %v9434_v32 = vshrl.u32 %v2974_v63, 7 }
 0x1e5   : > { %2931 = vmatprep.subr.mxu0 %v6524_v25  ;;  %v2118_v36 = vpop.f32.mrf.mxu1 }
 0x1e6   : > { %2932 = vmatpush2.msra.mxu0 %v5833_v38 }
 0x1e7   : > { %2933 = vmatprep.subr.mxu0 %v6524_v25  ;;  %v2120_v49 = vpop.f32.mrf.mxu1 }
 0x1e8   : > { %2934 = vmatpush2.msra.mxu0 %v5830_v33 }
 0x1e9   : > { %2935 = vmatprep.subr.mxu0 %v6524_v25 }
 0x1ea   : > { %2936 = vmatpush2.msra.mxu0 %v5827_v12 }
 0x1eb   : > { %2937 = vmatprep.subr.mxu0 %v6524_v25 }
 0x1ec   : > { %2938 = vmatpush2.msra.mxu0 %v5824_v17 }
 0x1ed   : > { %2939 = vmatprep.subr.mxu0 %v6524_v25 }
 0x1ee   : > { %2940 = vmatpush2.msra.mxu0 %v5821_v57  ;;  %v2980_v57 = vsub.s32 1, %v9434_v32 }
 0x1ef   : > { %2941 = vmatprep.subr.mxu0 %v6524_v25 }
 0x1f0   : > { %2942 = vmatpush2.msra.mxu0 %v5818_v31 }
 0x1f1   : > { %2943 = vmatprep.subr.mxu0 %v6524_v25 }
 0x1f2   : > { %2944 = vmatpush2.msra.mxu0 %v5815_v40 }
 0x1f3   : > { %2945 = vmatprep.subr.mxu0 %v6524_v25 }
 0x1f4   : > { %2946 = vmatpush2.msra.mxu0 %v5812_v41 }
 0x1f5   : > { %2948 = vmatmul.mubr.f32.vlgmr.msra.gmra.mxu0 %v9274_v8 }
 0x1f6   : > { %5853 = vmatprep.mubr.msk.f32.mxu0 %vm1117_vm2, %v9279_v42 }
 0x1f9   : > { %2953 = vmatmul.mubr.f32.gmra.mxu0 %v9294_v48 }
 0x1fa   : > { %5854 = vmatprep.mubr.msk.f32.mxu0 %vm1117_vm2, %v9297_v46 }
 0x1fd   : > { %2958 = vmatmul.mubr.f32.gmra.mxu0 %v9313_v54 }
 0x1fe   : > { %v2124_v0 = vpop.f32.mrf.mxu1  ;;  %3572 = vmatprep.mubr.f32.mxu0 %v6524_v25 }
 0x200   : > { %v2126_v23 = vpop.f32.mrf.mxu1 }
 0x203   : > { %v2130_v26 = vpop.f32.mrf.mxu1 }
 0x205   : > { %v2132_v50 = vpop.f32.mrf.mxu1 }
 0x208   : > { %v6108_v19 = vpop.f32.mrf.mxu1 }
 0x20a   : > { %v6109_v52 = vpop.f32.mrf.mxu1 }
 0x20b   : > { %v6110_v6 = vadd.f32 %v6109_v52, %v6108_v19 }
 0x210   : > { %v2201_v51 = vpop.f32.mrf.mxu0 }
 0x211   : > { %v2202_v44 = vadd.f32 %v2201_v51, %v2118_v36  ;;  %v9441_v36 = vld [vmem:[%s10794_s1] sm:$0x7] }
 0x212   : > { %v2203_v55 = vpop.f32.mrf.mxu0  ;;  %v2981_v52 = vrot.slane %v9441_v36, %v2980_v57 }
 0x213   : > { %v2378_v45 = vadd.f32 %v2202_v44, %v8971_v35  ;;  %v2204_v30 = vadd.f32 %v2203_v55, %v2120_v49 }
 0x215   : > { %v2379_v8 = vadd.f32 %v2204_v30, %v8988_v39  ;;  %v2207_v7 = vpop.f32.mrf.mxu0 }
 0x216   : > { %v2208_v60 = vadd.f32 %v2207_v7, %v2124_v0  ;;  %v3004_v7 = vld [vmem:[%s10795_s6 + $0x30] sm:$0xff] }
 0x217   : > { %v2209_v42 = vpop.f32.mrf.mxu0 }
 0x218   : > { %v2381_v47 = vadd.f32 %v2208_v60, %v9017_v29  ;;  %v2210_v43 = vadd.f32 %v2209_v42, %v2126_v23 }
 0x21a   : > { %v2382_v4 = vadd.f32 %v2210_v43, %v9032_v28  ;;  %v2213_v58 = vpop.f32.mrf.mxu0 }
 0x21b   : > { %v2214_v48 = vadd.f32 %v2213_v58, %v2130_v26 }
 0x21c   : > { %v2215_v34 = vpop.f32.mrf.mxu0 }
 0x21d   : > { %v2384_v46 = vadd.f32 %v2214_v48, %v9053_v10  ;;  %v2216_v14 = vadd.f32 %v2215_v34, %v2132_v50  ;;  %v2999_v34 = vld [vmem:[%s10795_s6 + $0x8] sm:$0xff] }
 0x21f   : > { %v2385_v62 = vadd.f32 %v2216_v14, %v9068_v20  ;;  %v2998_v14 = vld [vmem:[%s10795_s6] sm:$0xff] }
 0x23b   : > { %v6111_v35 = vpop.f32.mrf.mxu1 }
 0x23d   : > { %v6112_v54 = vpop.f32.mrf.mxu1 }
 0x23e   : > { %v6113_v61 = vadd.f32 %v6112_v54, %v6111_v35 }
 0x240   : > { %v6114_v39 = vpop.f32.mrf.mxu1 }
 0x242   : > { %v6115_v18 = vpop.f32.mrf.mxu1 }
 0x243   : > { %v6116_v24 = vadd.f32 %v6115_v18, %v6114_v39 }
 0x245   : > { %v2364_v3 = vpop.f32.mrf.mxu1 }
 0x246   : > { %v2365_v56 = vadd.f32 %v6110_v6, %v2364_v3 }
 0x247   : > { %v2366_v29 = vpop.f32.mrf.mxu1 }
 0x248   : > { %v9426_v9 = vadd.f32 %v2365_v56, %v9337_v13 }
 0x24a   : > { %v2369_v28 = vpop.f32.mrf.mxu1 }
 0x24b   : > { %v2370_v16 = vadd.f32 %v6113_v61, %v2369_v28 }
 0x24c   : > { %v2371_v59 = vpop.f32.mrf.mxu1 }
 0x24d   : > { %v9429_v10 = vadd.f32 %v2370_v16, %v9352_v5 }
 0x24f   : > { %v2374_v15 = vpop.f32.mrf.mxu1 }
 0x250   : > { %v2375_v20 = vadd.f32 %v6116_v24, %v2374_v15  ;;  %v3025_v15 = vld [vmem:[%s10796_s2] sm:$0xff] }
 0x251   : > { %v2376_v11 = vpop.f32.mrf.mxu1 }
 0x252   : > { %v9432_v2 = vadd.f32 %v2375_v20, %v9367_v1  ;;  %v2976_v1 = vsub.s32 0, %v9434_v32 }
 0x254   : > { %v2977_v44 = vrot.slane %v9441_v36, %v2976_v1 }
 0x258   : > { %v2703_v21 = vpop.f32.mrf.mxu0 }
 0x25a   : > { %v2705_v22 = vpop.f32.mrf.mxu0 }
 0x270   : > { %v2709_v37 = vpop.f32.mrf.mxu0 }
 0x272   : > { %v2711_v27 = vpop.f32.mrf.mxu0 }
 0x275   : > { %v2715_v33 = vpop.f32.mrf.mxu0 }
 0x277   : > { %v2717_v0 = vpop.f32.mrf.mxu0 }
 0x27b   : > { %v6149_v18 = vpop.f32.mrf.mxu0 }
 0x27d   : > { %v6150_v56 = vpop.f32.mrf.mxu0 }
 0x284   : > { %v2786_v53 = vpop.f32.mrf.mxu1 }
 0x285   : > { %v2787_v40 = vadd.f32 %v2786_v53, %v2703_v21  ;;  %v3026_v21 = vld [vmem:[%s10796_s2 + $0x8] sm:$0x1f] }
 0x286   : > { %v2788_v13 = vpop.f32.mrf.mxu1 }
 0x287   : > { %v2789_v17 = vadd.f32 %v2788_v13, %v2705_v22  ;;  %v2963_v51 = vadd.f32 %v2787_v40, %v2378_v45  ;;  %v3005_v45 = vld [vmem:[%s10795_s6 + $0x38] sm:$0xff]  ;;  %v6152_v16 = vpop.f32.mrf.mxu0 }
 0x288   : > { %v2792_v38 = vpop.f32.mrf.mxu1 }
 0x289   : > { %v2793_v12 = vadd.f32 %v2792_v38, %v2709_v37  ;;  %v2964_v19 = vadd.f32 %v2789_v17, %v2379_v8  ;;  %v3002_v8 = vld [vmem:[%s10795_s6 + $0x20] sm:$0xff]  ;;  %v2989_v48 = vadd.f32 %v2977_v44, %v2963_v51  ;;  %v6153_v11 = vpop.f32.mrf.mxu0 }
 0x28a   : > { %v2794_v5 = vpop.f32.mrf.mxu1  ;;  %v6154_v13 = vadd.f32 %v6153_v11, %v6152_v16  ;;  %v3362_v16 = vld [vmem:[%s10798_s3 + $0x50] sm:$0xff] }
 0x28b   : > { %v2795_v31 = vadd.f32 %v2794_v5, %v2711_v27  ;;  %v2966_v23 = vadd.f32 %v2793_v12, %v2381_v47  ;;  %v2990_v43 = vadd.f32 %v2981_v52, %v2964_v19  ;;  %v3007_v39 = vmul.f32 %v2998_v14, %v2989_v48  ;;  %v6155_v22 = vpop.f32.mrf.mxu0  ;;  %v3377_v48 = vld [vmem:[%s10798_s3 + $0xc8] sm:$0xff]  ;;  %v3374_v14 = vld [vmem:[%s10798_s3 + $0xb0] sm:$0xff] }
 0x28c   : > { %v2798_v41 = vpop.f32.mrf.mxu1  ;;  %v6151_v27 = vadd.f32 %v6150_v56, %v6149_v18  ;;  %v2984_v12 = vsub.s32 2, %v9434_v32  ;;  %v3368_v18 = vld [vmem:[%s10798_s3 + $0x80] sm:$0xff]  ;;  %v3365_v56 = vld [vmem:[%s10798_s3 + $0x68] sm:$0xff]  ;;  %v3358_v11 = vld [vmem:[%s10798_s3 + $0x30] sm:$0xff] }
 0x28d   : > { %v2967_v49 = vadd.f32 %v2795_v31, %v2382_v4  ;;  %v2799_v26 = vadd.f32 %v2798_v41, %v2715_v33  ;;  %v2992_v42 = vadd.f32 %v2977_v44, %v2966_v23  ;;  %v3001_v4 = vld [vmem:[%s10795_s6 + $0x18] sm:$0xff]  ;;  %v3008_v61 = vmul.f32 %v2999_v34, %v2990_v43  ;;  %v6156_v37 = vpop.f32.mrf.mxu0  ;;  %v3380_v43 = vld [vmem:[%s10798_s3 + $0xe0] sm:$0xff] }
 0x28e   : > { %v2800_v50 = vpop.f32.mrf.mxu1  ;;  %v6157_v31 = vadd.f32 %v6156_v37, %v6155_v22  ;;  %v3376_v34 = vld [vmem:[%s10798_s3 + $0xc0] sm:$0xff]  ;;  %v3355_v37 = vld [vmem:[%s10798_s3 + $0x18] sm:$0xff] }
 0x28f   : > { %v2801_v6 = vadd.f32 %v2800_v50, %v2717_v0  ;;  %v2969_v55 = vadd.f32 %v2799_v26, %v2384_v46  ;;  %v2993_v30 = vadd.f32 %v2981_v52, %v2967_v49  ;;  %v3010_v54 = vmul.f32 %v3001_v4, %v2992_v42  ;;  %v3187_v42 = vld [vmem:[%s10797_s24 + $0x8] sm:$0x1f]  ;;  %v3379_v4 = vld [vmem:[%s10798_s3 + $0xd8] sm:$0xff]  ;;  %v3356_v22 = vld [vmem:[%s10798_s3 + $0x20] sm:$0xff] }
 0x290   : > { %v2985_v0 = vrot.slane %v9441_v36, %v2984_v12  ;;  %v3412_v12 = vld [vmem:[%s10798_s3 + $0x1e0] sm:$0xff]  ;;  %v4103_v32 = vld [vmem:[%s10765_s10 + $0x18] sm:$0xf] }
 0x291   : > { %v2970_v60 = vadd.f32 %v2801_v6, %v2385_v62  ;;  %v2995_v47 = vadd.f32 %v2977_v44, %v2969_v55  ;;  %v3011_v62 = vmul.f32 %v3002_v8, %v2993_v30  ;;  %v3006_v6 = vld [vmem:[%s10795_s6 + $0x40] sm:$0xff]  ;;  %v3383_v8 = vld [vmem:[%s10798_s3 + $0xf8] sm:$0xff] }
 0x293   : > { %v2996_v58 = vadd.f32 %v2981_v52, %v2970_v60  ;;  %v3013_v46 = vmul.f32 %v3004_v7, %v2995_v47  ;;  %v3003_v52 = vld [vmem:[%s10795_s6 + $0x28] sm:$0xff]  ;;  %v3186_v60 = vld [vmem:[%s10797_s24] sm:$0xff]  ;;  %v3382_v47 = vld [vmem:[%s10798_s3 + $0xf0] sm:$0xff] }
 0x295   : > { %v3014_v35 = vmul.f32 %v3005_v45, %v2996_v58  ;;  %v3381_v45 = vld [vmem:[%s10798_s3 + $0xe8] sm:$0xff]  ;;  %v3378_v58 = vld [vmem:[%s10798_s3 + $0xd0] sm:$0xff] }
 0x297   : > { %6472 = vtanh.f32 %v3014_v35  ;;  %v3372_v35 = vld [vmem:[%s10798_s3 + $0xa0] sm:$0xff] }
 0x298   : > { %6474 = vtanh.f32 %v3013_v46  ;;  %v3375_v46 = vld [vmem:[%s10798_s3 + $0xb8] sm:$0xff] }
 0x299   : > { %6476 = vtanh.f32 %v3011_v62  ;;  %v3373_v62 = vld [vmem:[%s10798_s3 + $0xa8] sm:$0xff] }
 0x29a   : > { %6478 = vtanh.f32 %v3010_v54  ;;  %v3371_v54 = vld [vmem:[%s10798_s3 + $0x98] sm:$0xff] }
 0x29b   : > { %6480 = vtanh.f32 %v3008_v61  ;;  %v3370_v61 = vld [vmem:[%s10798_s3 + $0x90] sm:$0xff] }
 0x29c   : > { %6482 = vtanh.f32 %v3007_v39  ;;  %v3369_v39 = vld [vmem:[%s10798_s3 + $0x88] sm:$0xff] }
 0x2a4   : > { %v9467_v24 = vpop.eup %6472 }
 0x2a5   : > { %v6475_v3 = vpop.eup %6474  ;;  %3060 = vmatprep.subr.mxu1 %v9467_v24 }
 0x2a6   : > { %v6477_v29 = vpop.eup %6476  ;;  %3061 = vmatpush1.msra.mxu1 %v6475_v3 }
 0x2a7   : > { %v6479_v28 = vpop.eup %6478  ;;  %3062 = vmatprep.subr.mxu1 %v6477_v29 }
 0x2a8   : > { %v6481_v59 = vpop.eup %6480  ;;  %3063 = vmatpush1.msra.mxu1 %v6479_v28 }
 0x2a9   : > { %v6483_v20 = vpop.eup %6482  ;;  %3064 = vmatprep.subr.mxu1 %v6481_v59 }
 0x2aa   : > { %3065 = vmatpush1.msra.mxu1 %v6483_v20 }
 0x2ab   : > { %5855 = vmatmul.mubr.msk.f32.vlgmr.msra.gmra.mxu1 %vm3027_vm5, %v3025_v15 }
 0x2ac   : > { %3104 = vmatprep.mubr.f32.mxu1 %v6524_v25 }
 0x2af   : > { %5856 = vmatmul.mubr.msk.f32.gmra.mxu1 %vm3027_vm5, %v3026_v21 }
 0x2b0   : > { %6263 = vmatprep.mubr.msk.f32.mxu1 %vm3027_vm5, %v3025_v15  ;;  %v3360_v15 = vld [vmem:[%s10798_s3 + $0x40] sm:$0xff] }
 0x2b5   : > { %v2949_v53 = vpop.f32.mrf.mxu0 }
 0x2b6   : > { %v2950_v33 = vadd.f32 %v6151_v27, %v2949_v53  ;;  %v3354_v53 = vld [vmem:[%s10798_s3 + $0x10] sm:$0xff]  ;;  %v3352_v27 = vld [vmem:[%s10798_s3] sm:$0xff] }
 0x2b7   : > { %v2951_v63 = vpop.f32.mrf.mxu0 }
 0x2b8   : > { %v2965_v49 = vadd.f32 %v2950_v33, %v9426_v9  ;;  %v3000_v9 = vld [vmem:[%s10795_s6 + $0x10] sm:$0xff]  ;;  %v3353_v63 = vld [vmem:[%s10798_s3 + $0x8] sm:$0xff] }
 0x2b9   : > { %v2954_v38 = vpop.f32.mrf.mxu0  ;;  %v3413_v33 = vld [vmem:[%s10798_s3 + $0x1e8] sm:$0xff] }
 0x2ba   : > { %v2955_v5 = vadd.f32 %v6154_v13, %v2954_v38  ;;  %v2991_v51 = vadd.f32 %v2985_v0, %v2965_v49  ;;  %v3415_v13 = vld [vmem:[%s10798_s3 + $0x1f8] sm:$0xff]  ;;  %v3414_v38 = vld [vmem:[%s10798_s3 + $0x1f0] sm:$0xff] }
 0x2bb   : > { %v2956_v17 = vpop.f32.mrf.mxu0  ;;  %v3406_v49 = vld [vmem:[%s10798_s3 + $0x1b0] sm:$0xff] }
 0x2bc   : > { %v2968_v40 = vadd.f32 %v2955_v5, %v9429_v10  ;;  %v3009_v55 = vmul.f32 %v3000_v9, %v2991_v51  ;;  %v3411_v5 = vld [vmem:[%s10798_s3 + $0x1d8] sm:$0xff]  ;;  %v3410_v17 = vld [vmem:[%s10798_s3 + $0x1d0] sm:$0xff]  ;;  %v3396_v9 = vld [vmem:[%s10798_s3 + $0x160] sm:$0xff] }
 0x2bd   : > { %v2959_v41 = vpop.f32.mrf.mxu0  ;;  %v3398_v51 = vld [vmem:[%s10798_s3 + $0x170] sm:$0xff] }
 0x2be   : > { %v2960_v23 = vadd.f32 %v6157_v31, %v2959_v41  ;;  %v2994_v50 = vadd.f32 %v2985_v0, %v2968_v40  ;;  %v3409_v31 = vld [vmem:[%s10798_s3 + $0x1c8] sm:$0xff]  ;;  %v3408_v40 = vld [vmem:[%s10798_s3 + $0x1c0] sm:$0xff]  ;;  %v3407_v41 = vld [vmem:[%s10798_s3 + $0x1b8] sm:$0xff] }
 0x2bf   : > { %v2961_v26 = vpop.f32.mrf.mxu0 }
 0x2c0   : > { %v2971_v19 = vadd.f32 %v2960_v23, %v9432_v2  ;;  %v3012_v36 = vmul.f32 %v3003_v52, %v2994_v50  ;;  %v3404_v23 = vld [vmem:[%s10798_s3 + $0x1a0] sm:$0xff]  ;;  %v3403_v26 = vld [vmem:[%s10798_s3 + $0x198] sm:$0xff]  ;;  %v3402_v50 = vld [vmem:[%s10798_s3 + $0x190] sm:$0xff] }
 0x2c1   : > { %v3400_v52 = vld [vmem:[%s10798_s3 + $0x180] sm:$0xff] }
 0x2c2   : > { %v2997_v10 = vadd.f32 %v2985_v0, %v2971_v19  ;;  %v3405_v0 = vld [vmem:[%s10798_s3 + $0x1a8] sm:$0xff] }
 0x2c3   : > { %v3401_v19 = vld [vmem:[%s10798_s3 + $0x188] sm:$0xff] }
 0x2c4   : > { %v3015_v44 = vmul.f32 %v3006_v6, %v2997_v10  ;;  %v3399_v6 = vld [vmem:[%s10798_s3 + $0x178] sm:$0xff]  ;;  %v3397_v10 = vld [vmem:[%s10798_s3 + $0x168] sm:$0xff] }
 0x2c6   : > { %6484 = vtanh.f32 %v3015_v44  ;;  %v3394_v44 = vld [vmem:[%s10798_s3 + $0x150] sm:$0xff] }
 0x2c7   : > { %6486 = vtanh.f32 %v3012_v36  ;;  %v3395_v36 = vld [vmem:[%s10798_s3 + $0x158] sm:$0xff] }
 0x2c8   : > { %6488 = vtanh.f32 %v3009_v55  ;;  %v3393_v55 = vld [vmem:[%s10798_s3 + $0x148] sm:$0xff] }
 0x2d3   : > { %v6485_v2 = vpop.eup %6484 }
 0x2d4   : > { %6257 = vmatprep.subr.mxu1 %v6485_v2  ;;  %v6487_v30 = vpop.eup %6486 }
 0x2d5   : > { %6258 = vmatpush3.msra.mxu1 %v6485_v2  ;;  %v6489_v7 = vpop.eup %6488 }
 0x2d6   : > { %6259 = vmatprep.subr.mxu1 %v6487_v30 }
 0x2d7   : > { %6260 = vmatpush3.msra.mxu1 %v6487_v30 }
 0x2d8   : > { %6261 = vmatprep.subr.mxu1 %v6489_v7 }
 0x2d9   : > { %6262 = vmatpush3.msra.mxu1 %v6489_v7 }
 0x2da   : > { %6264 = vmatmul.mubr.msk.f32.vlgmr.msra.gmra.mxu1 %vm3027_vm5, %v3026_v21  ;;  %3220 = vmatprep.subr.mxu1 %v9467_v24  ;;  %v3367_v24 = vld [vmem:[%s10798_s3 + $0x78] sm:$0xff]  ;;  %v3357_v21 = vld [vmem:[%s10798_s3 + $0x28] sm:$0xff] }
 0x2db   : > { %3221 = vmatpush1.msra.mxu1 %v6475_v3  ;;  %3258 = vmatprep.mubr.f32.mxu1 %v6524_v25  ;;  %v3366_v3 = vld [vmem:[%s10798_s3 + $0x70] sm:$0xff] }
 0x2dc   : > { %3222 = vmatprep.subr.mxu1 %v6477_v29  ;;  %v3364_v29 = vld [vmem:[%s10798_s3 + $0x60] sm:$0xff] }
 0x2dd   : > { %3223 = vmatpush1.msra.mxu1 %v6479_v28  ;;  %v3363_v28 = vld [vmem:[%s10798_s3 + $0x58] sm:$0xff] }
 0x2de   : > { %3224 = vmatprep.subr.mxu1 %v6481_v59  ;;  %v3361_v59 = vld [vmem:[%s10798_s3 + $0x48] sm:$0xff] }
 0x2df   : > { %3225 = vmatpush1.msra.mxu1 %v6483_v20  ;;  %v3359_v20 = vld [vmem:[%s10798_s3 + $0x38] sm:$0xff] }
 0x2e0   : > { %5859 = vmatmul.mubr.msk.f32.vlgmr.msra.gmra.mxu1 %vm3027_vm5, %v3186_v60  ;;  %6266 = vmatprep.subr.mxu1 %v6485_v2 }
 0x2e1   : > { %6267 = vmatpush3.msra.mxu1 %v6485_v2  ;;  %3264 = vmatprep.mubr.f32.mxu1 %v6524_v25  ;;  %v3392_v2 = vld [vmem:[%s10798_s3 + $0x140] sm:$0xff] }
 0x2e2   : > { %6268 = vmatprep.subr.mxu1 %v6487_v30 }
 0x2e3   : > { %6269 = vmatpush3.msra.mxu1 %v6487_v30  ;;  %v3391_v30 = vld [vmem:[%s10798_s3 + $0x138] sm:$0xff] }
 0x2e4   : > { %5860 = vmatmul.mubr.msk.f32.gmra.mxu1 %vm3027_vm5, %v3187_v42  ;;  %6270 = vmatprep.subr.mxu1 %v6489_v7 }
 0x2e5   : > { %6271 = vmatpush3.msra.mxu1 %v6489_v7  ;;  %6272 = vmatprep.mubr.msk.f32.mxu1 %vm3027_vm5, %v3186_v60  ;;  %v3390_v7 = vld [vmem:[%s10798_s3 + $0x130] sm:$0xff]  ;;  %v3389_v60 = vld [vmem:[%s10798_s3 + $0x128] sm:$0xff] }
 0x2e6   : > { %3431 = vmatprep.subr.mxu1 %v3383_v8  ;;  %v3387_v8 = vld [vmem:[%s10798_s3 + $0x118] sm:$0xff] }
 0x2e8   : > { %6273 = vmatmul.mubr.msk.f32.vlgmr.msra.gmra.mxu1 %vm3027_vm5, %v3187_v42  ;;  %v3388_v42 = vld [vmem:[%s10798_s3 + $0x120] sm:$0xff] }
 0x2e9   : > { %3432 = vmatpush1.msra.mxu1 %v3382_v47  ;;  %v3386_v47 = vld [vmem:[%s10798_s3 + $0x110] sm:$0xff] }
 0x2ea   : > { %3433 = vmatprep.subr.mxu1 %v3381_v45  ;;  %v3385_v45 = vld [vmem:[%s10798_s3 + $0x108] sm:$0xff] }
 0x2eb   : > { %3434 = vmatpush1.msra.mxu1 %v3380_v43  ;;  %v3423_v43 = vld [vmem:[%s10798_s3 + $0x238] sm:$0xff] }
 0x2ec   : > { %3435 = vmatprep.subr.mxu1 %v3379_v4  ;;  %3532 = vmatprep.subr.mxu0 %v3423_v43  ;;  %v3384_v4 = vld [vmem:[%s10798_s3 + $0x100] sm:$0xff]  ;;  %v3591_v43 = vld [vmem:[%s10762_s7 + $0x30] sm:$0xff] }
 0x2ed   : > { %3436 = vmatpush1.msra.mxu1 %v3378_v58  ;;  %v3422_v58 = vld [vmem:[%s10798_s3 + $0x230] sm:$0xff] }
 0x2ee   : > { %3437 = vmatprep.subr.mxu1 %v3377_v48  ;;  %3533 = vmatpush1.msra.mxu0 %v3422_v58  ;;  %v3421_v48 = vld [vmem:[%s10798_s3 + $0x228] sm:$0xff]  ;;  %v3589_v58 = vld [vmem:[%s10762_s7 + $0x20] sm:$0xff] }
 0x2ef   : > { %3438 = vmatpush1.msra.mxu1 %v3376_v34  ;;  %v3656_v34 = vld [vmem:[%s10762_s7 + $0x238] sm:$0xff]  ;;  %3534 = vmatprep.subr.mxu0 %v3421_v48 }
 0x2f0   : > { %3439 = vmatprep.subr.mxu1 %v3375_v46  ;;  %v3420_v46 = vld [vmem:[%s10798_s3 + $0x220] sm:$0xff]  ;;  %v3588_v48 = vld [vmem:[%s10762_s7 + $0x18] sm:$0xff] }
 0x2f1   : > { %3440 = vmatpush1.msra.mxu1 %v3374_v14  ;;  %3535 = vmatpush1.msra.mxu0 %v3420_v46  ;;  %v3419_v14 = vld [vmem:[%s10798_s3 + $0x218] sm:$0xff]  ;;  %v3586_v46 = vld [vmem:[%s10762_s7 + $0x8] sm:$0xff] }
 0x2f2   : > { %3441 = vmatprep.subr.mxu1 %v3373_v62  ;;  %3536 = vmatprep.subr.mxu0 %v3419_v14  ;;  %v3418_v62 = vld [vmem:[%s10798_s3 + $0x210] sm:$0xff]  ;;  %v3585_v14 = vld [vmem:[%s10762_s7] sm:$0xff] }
 0x2f3   : > { %3442 = vmatpush1.msra.mxu1 %v3372_v35  ;;  %3537 = vmatpush1.msra.mxu0 %v3418_v62  ;;  %v3417_v35 = vld [vmem:[%s10798_s3 + $0x208] sm:$0xff]  ;;  %v3648_v62 = vld [vmem:[%s10762_s7 + $0x1f8] sm:$0xff] }
 0x2f4   : > { %3443 = vmatprep.subr.mxu1 %v3371_v54  ;;  %3538 = vmatprep.subr.mxu0 %v3417_v35  ;;  %v3416_v54 = vld [vmem:[%s10798_s3 + $0x200] sm:$0xff]  ;;  %v3647_v35 = vld [vmem:[%s10762_s7 + $0x1f0] sm:$0xff] }
 0x2f5   : > { %3444 = vmatpush1.msra.mxu1 %v3370_v61  ;;  %3539 = vmatpush1.msra.mxu0 %v3416_v54  ;;  %v3616_v61 = vld [vmem:[%s10762_s7 + $0xf8] sm:$0xff]  ;;  %v3646_v54 = vld [vmem:[%s10762_s7 + $0x1e8] sm:$0xff] }
 0x2f6   : > { %3445 = vmatprep.subr.mxu1 %v3369_v39  ;;  %3657 = vmatprep.subr.mxu0 %v3616_v61  ;;  %v3645_v61 = vld [vmem:[%s10762_s7 + $0x1e0] sm:$0xff] }
 0x2f7   : > { %3446 = vmatpush1.msra.mxu1 %v3368_v18 }
 0x2f8   : > { %3447 = vmatprep.subr.mxu1 %v3367_v24 }
 0x2f9   : > { %3448 = vmatpush1.msra.mxu1 %v3366_v3 }
 0x2fa   : > { %3449 = vmatprep.subr.mxu1 %v3365_v56 }
 0x2fb   : > { %3450 = vmatpush1.msra.mxu1 %v3364_v29 }
 0x2fc   : > { %3451 = vmatprep.subr.mxu1 %v3363_v28 }
 0x2fd   : > { %3452 = vmatpush1.msra.mxu1 %v3362_v16 }
 0x2fe   : > { %3453 = vmatprep.subr.mxu1 %v3361_v59 }
 0x2ff   : > { %3454 = vmatpush1.msra.mxu1 %v3360_v15 }
 0x300   : > { %3455 = vmatprep.subr.mxu1 %v3359_v20 }
 0x301   : > { %3456 = vmatpush1.msra.mxu1 %v3358_v11  ;;  %v3655_v11 = vld [vmem:[%s10762_s7 + $0x230] sm:$0xff] }
 0x302   : > { %3457 = vmatprep.subr.mxu1 %v3357_v21  ;;  %v3654_v21 = vld [vmem:[%s10762_s7 + $0x228] sm:$0xff] }
 0x303   : > { %3458 = vmatpush1.msra.mxu1 %v3356_v22 }
 0x304   : > { %3459 = vmatprep.subr.mxu1 %v3355_v37  ;;  %v3653_v37 = vld [vmem:[%s10762_s7 + $0x220] sm:$0xff] }
 0x305   : > { %3460 = vmatpush1.msra.mxu1 %v3354_v53 }
 0x306   : > { %3461 = vmatprep.subr.mxu1 %v3353_v63  ;;  %v3652_v63 = vld [vmem:[%s10762_s7 + $0x218] sm:$0xff] }
 0x307   : > { %3462 = vmatpush1.msra.mxu1 %v3352_v27 }
 0x308   : > { %3463 = vmatprep.subr.mxu1 %v3415_v13 }
 0x309   : > { %3464 = vmatpush2.msra.mxu1 %v3414_v38  ;;  %v3651_v38 = vld [vmem:[%s10762_s7 + $0x210] sm:$0xff] }
 0x30a   : > { %3465 = vmatprep.subr.mxu1 %v3413_v33  ;;  %v3650_v33 = vld [vmem:[%s10762_s7 + $0x208] sm:$0xff] }
 0x30b   : > { %3466 = vmatpush2.msra.mxu1 %v3412_v12 }
 0x30c   : > { %3467 = vmatprep.subr.mxu1 %v3411_v5  ;;  %v3649_v5 = vld [vmem:[%s10762_s7 + $0x200] sm:$0xff] }
 0x30d   : > { %3468 = vmatpush2.msra.mxu1 %v3410_v17 }
 0x30e   : > { %3469 = vmatprep.subr.mxu1 %v3409_v31  ;;  %v3615_v31 = vld [vmem:[%s10762_s7 + $0xf0] sm:$0xff] }
 0x30f   : > { %3470 = vmatpush2.msra.mxu1 %v3408_v40  ;;  %v3614_v40 = vld [vmem:[%s10762_s7 + $0xe8] sm:$0xff] }
 0x310   : > { %3471 = vmatprep.subr.mxu1 %v3407_v41  ;;  %v3613_v41 = vld [vmem:[%s10762_s7 + $0xe0] sm:$0xff] }
 0x311   : > { %3472 = vmatpush2.msra.mxu1 %v3406_v49  ;;  %v3612_v49 = vld [vmem:[%s10762_s7 + $0xd8] sm:$0xff] }
 0x312   : > { %3473 = vmatprep.subr.mxu1 %v3405_v0 }
 0x313   : > { %3474 = vmatpush2.msra.mxu1 %v3404_v23  ;;  %v3611_v23 = vld [vmem:[%s10762_s7 + $0xd0] sm:$0xff] }
 0x314   : > { %3475 = vmatprep.subr.mxu1 %v3403_v26  ;;  %v3610_v26 = vld [vmem:[%s10762_s7 + $0xc8] sm:$0xff] }
 0x315   : > { %3476 = vmatpush2.msra.mxu1 %v3402_v50  ;;  %v3609_v50 = vld [vmem:[%s10762_s7 + $0xc0] sm:$0xff] }
 0x316   : > { %3477 = vmatprep.subr.mxu1 %v3401_v19  ;;  %v3608_v19 = vld [vmem:[%s10762_s7 + $0xb8] sm:$0xff] }
 0x317   : > { %3478 = vmatpush2.msra.mxu1 %v3400_v52  ;;  %v3607_v52 = vld [vmem:[%s10762_s7 + $0xb0] sm:$0xff] }
 0x318   : > { %3479 = vmatprep.subr.mxu1 %v3399_v6  ;;  %v3606_v6 = vld [vmem:[%s10762_s7 + $0xa8] sm:$0xff] }
 0x319   : > { %3480 = vmatpush2.msra.mxu1 %v3398_v51  ;;  %v3605_v51 = vld [vmem:[%s10762_s7 + $0xa0] sm:$0xff] }
 0x31a   : > { %3481 = vmatprep.subr.mxu1 %v3397_v10  ;;  %v3604_v10 = vld [vmem:[%s10762_s7 + $0x98] sm:$0xff] }
 0x31b   : > { %3482 = vmatpush2.msra.mxu1 %v3396_v9  ;;  %v3603_v9 = vld [vmem:[%s10762_s7 + $0x90] sm:$0xff] }
 0x31c   : > { %3483 = vmatprep.subr.mxu1 %v3395_v36  ;;  %v3602_v36 = vld [vmem:[%s10762_s7 + $0x88] sm:$0xff] }
 0x31d   : > { %3484 = vmatpush2.msra.mxu1 %v3394_v44  ;;  %v3601_v44 = vld [vmem:[%s10762_s7 + $0x80] sm:$0xff] }
 0x31e   : > { %3485 = vmatprep.subr.mxu1 %v3393_v55  ;;  %v3600_v55 = vld [vmem:[%s10762_s7 + $0x78] sm:$0xff] }
 0x31f   : > { %3486 = vmatpush2.msra.mxu1 %v3392_v2  ;;  %v3599_v2 = vld [vmem:[%s10762_s7 + $0x70] sm:$0xff] }
 0x320   : > { %3487 = vmatprep.subr.mxu1 %v3391_v30  ;;  %v3598_v30 = vld [vmem:[%s10762_s7 + $0x68] sm:$0xff] }
 0x321   : > { %3488 = vmatpush2.msra.mxu1 %v3390_v7  ;;  %v3597_v7 = vld [vmem:[%s10762_s7 + $0x60] sm:$0xff] }
 0x322   : > { %3489 = vmatprep.subr.mxu1 %v3389_v60  ;;  %v3596_v60 = vld [vmem:[%s10762_s7 + $0x58] sm:$0xff] }
 0x323   : > { %3490 = vmatpush2.msra.mxu1 %v3388_v42  ;;  %v3595_v42 = vld [vmem:[%s10762_s7 + $0x50] sm:$0xff] }
 0x324   : > { %3491 = vmatprep.subr.mxu1 %v3387_v8  ;;  %v3594_v8 = vld [vmem:[%s10762_s7 + $0x48] sm:$0xff] }
 0x325   : > { %3492 = vmatpush2.msra.mxu1 %v3386_v47  ;;  %v3593_v47 = vld [vmem:[%s10762_s7 + $0x40] sm:$0xff] }
 0x326   : > { %3493 = vmatprep.subr.mxu1 %v3385_v45  ;;  %v3592_v45 = vld [vmem:[%s10762_s7 + $0x38] sm:$0xff] }
 0x327   : > { %3494 = vmatpush2.msra.mxu1 %v3384_v4  ;;  %v3590_v4 = vld [vmem:[%s10762_s7 + $0x28] sm:$0xff] }
 0x328   : > { %3758 = vmatprep.subr.mxu1 %v3656_v34  ;;  %v3587_v34 = vld [vmem:[%s10762_s7 + $0x10] sm:$0xff] }
 0x36b   : > { %v3100_v39 = vpop.f32.mrf.mxu1 }
 0x36d   : > { %v3102_v18 = vpop.f32.mrf.mxu1 }
 0x36f   : > { %v3106_v24 = vpop.f32.mrf.mxu1 }
 0x371   : > { %v3108_v3 = vpop.f32.mrf.mxu1 }
 0x39a   : > { %v6265_v56 = vpop.f32.mrf.mxu1 }
 0x39c   : > { %v3177_v29 = vpop.f32.mrf.mxu1 }
 0x3a0   : > { %v3260_v28 = vpop.f32.mrf.mxu1 }
 0x3a1   : > { %v9730_v15 = vmax.f32 %v3100_v39, %v3260_v28  ;;  %v3644_v39 = vld [vmem:[%s10762_s7 + $0x1d8] sm:$0xff]  ;;  %v3638_v28 = vld [vmem:[%s10762_s7 + $0x1a8] sm:$0xff] }
 0x3a2   : > { %v3262_v16 = vpop.f32.mrf.mxu1 }
 0x3a3   : > { %v3347_v59 = vmax.f32 %v3102_v18, %v3262_v16  ;;  %v3643_v18 = vld [vmem:[%s10762_s7 + $0x1d0] sm:$0xff]  ;;  %v3637_v16 = vld [vmem:[%s10762_s7 + $0x1a0] sm:$0xff] }
 0x3a4   : > { %v3266_v20 = vpop.f32.mrf.mxu1 }
 0x3a5   : > { %3495 = vmatprep.mubr.f32.mxu1 %v3347_v59  ;;  %v9747_v27 = vmax.f32 %v3106_v24, %v3266_v20  ;;  %v3642_v24 = vld [vmem:[%s10762_s7 + $0x1c8] sm:$0xff]  ;;  %v3635_v20 = vld [vmem:[%s10762_s7 + $0x190] sm:$0xff] }
 0x3a6   : > { %v3268_v22 = vpop.f32.mrf.mxu1  ;;  %3496 = vmatmul.mubr.f32.vlgmr.msra.gmra.mxu1 %v9730_v15 }
 0x3a7   : > { %v9742_v53 = vmax.f32 %v3108_v3, %v3268_v22  ;;  %3759 = vmatpush1.msra.mxu1 %v3655_v11  ;;  %v3641_v3 = vld [vmem:[%s10762_s7 + $0x1c0] sm:$0xff]  ;;  %v3634_v11 = vld [vmem:[%s10762_s7 + $0x188] sm:$0xff]  ;;  %v3632_v22 = vld [vmem:[%s10762_s7 + $0x178] sm:$0xff] }
 0x3a8   : > { %v6274_v13 = vpop.f32.mrf.mxu1  ;;  %3760 = vmatprep.subr.mxu1 %v3654_v21  ;;  %v3633_v21 = vld [vmem:[%s10762_s7 + $0x180] sm:$0xff] }
 0x3a9   : > { %3501 = vmatprep.mubr.f32.mxu1 %v9742_v53  ;;  %3761 = vmatpush1.msra.mxu1 %v3653_v37  ;;  %v3351_v0 = vmax.f32 %v6265_v56, %v6274_v13  ;;  %v3640_v56 = vld [vmem:[%s10762_s7 + $0x1b8] sm:$0xff]  ;;  %v3631_v37 = vld [vmem:[%s10762_s7 + $0x170] sm:$0xff]  ;;  %v3629_v13 = vld [vmem:[%s10762_s7 + $0x160] sm:$0xff] }
 0x3aa   : > { %v3337_v12 = vpop.f32.mrf.mxu1  ;;  %3502 = vmatmul.mubr.f32.gmra.mxu1 %v9747_v27  ;;  %3762 = vmatprep.subr.mxu1 %v3652_v63  ;;  %v3630_v63 = vld [vmem:[%s10762_s7 + $0x168] sm:$0xff] }
 0x3ab   : > { %v3348_v17 = vmax.f32 %v3177_v29, %v3337_v12  ;;  %3763 = vmatpush1.msra.mxu1 %v3651_v38  ;;  %3798 = vmatprep.mubr.f32.mxu1 %v6524_v25  ;;  %v3639_v29 = vld [vmem:[%s10762_s7 + $0x1b0] sm:$0xff]  ;;  %v3628_v38 = vld [vmem:[%s10762_s7 + $0x158] sm:$0xff]  ;;  %v3626_v12 = vld [vmem:[%s10762_s7 + $0x148] sm:$0xff] }
 0x3ac   : > { %3764 = vmatprep.subr.mxu1 %v3650_v33  ;;  %v3627_v33 = vld [vmem:[%s10762_s7 + $0x150] sm:$0xff] }
 0x3ad   : > { %5863 = vmatmul.mubr.msk.f32.vlgmr.msra.gmra.mxu0 %vm3424_vm6, %v3348_v17  ;;  %3765 = vmatpush1.msra.mxu1 %v3649_v5  ;;  %v3625_v5 = vld [vmem:[%s10762_s7 + $0x140] sm:$0xff] }
 0x3ae   : > { %3658 = vmatpush1.msra.mxu0 %v3615_v31  ;;  %5865 = vmatmul.mubr.msk.f32.vlgmr.msra.gmra.mxu1 %vm3424_vm6, %v3348_v17  ;;  %v3624_v17 = vld [vmem:[%s10762_s7 + $0x138] sm:$0xff]  ;;  %v3623_v31 = vld [vmem:[%s10762_s7 + $0x130] sm:$0xff] }
 0x3af   : > { %3659 = vmatprep.subr.mxu0 %v3614_v40  ;;  %3578 = vmatprep.mubr.f32.mxu0 %v6524_v25  ;;  %v3622_v40 = vld [vmem:[%s10762_s7 + $0x128] sm:$0xff] }
 0x3b0   : > { %3660 = vmatpush1.msra.mxu0 %v3613_v41  ;;  %3804 = vmatprep.mubr.f32.mxu1 %v6524_v25  ;;  %v3621_v41 = vld [vmem:[%s10762_s7 + $0x120] sm:$0xff] }
 0x3b1   : > { %3661 = vmatprep.subr.mxu0 %v3612_v49  ;;  %5864 = vmatmul.mubr.msk.f32.gmra.mxu0 %vm3424_vm6, %v3351_v0  ;;  %v3620_v49 = vld [vmem:[%s10762_s7 + $0x118] sm:$0xff] }
 0x3b2   : > { %3662 = vmatpush1.msra.mxu0 %v3611_v23  ;;  %3721 = vmatprep.mubr.f32.mxu0 %v3347_v59  ;;  %v3636_v59 = vld [vmem:[%s10762_s7 + $0x198] sm:$0xff]  ;;  %v3618_v23 = vld [vmem:[%s10762_s7 + $0x108] sm:$0xff] }
 0x3b3   : > { %3663 = vmatprep.subr.mxu0 %v3610_v26  ;;  %5866 = vmatmul.mubr.msk.f32.gmra.mxu1 %vm3424_vm6, %v3351_v0  ;;  %v3619_v0 = vld [vmem:[%s10762_s7 + $0x110] sm:$0xff]  ;;  %v3617_v26 = vld [vmem:[%s10762_s7 + $0x100] sm:$0xff] }
 0x3b4   : > { %3664 = vmatpush1.msra.mxu0 %v3609_v50  ;;  %v3846_v50 = vld [vmem:[%s10763_s8 + $0xf8] sm:$0xff] }
 0x3b5   : > { %3665 = vmatprep.subr.mxu0 %v3608_v19  ;;  %v3845_v19 = vld [vmem:[%s10763_s8 + $0xf0] sm:$0xff] }
 0x3b6   : > { %3666 = vmatpush1.msra.mxu0 %v3607_v52  ;;  %v3844_v52 = vld [vmem:[%s10763_s8 + $0xe8] sm:$0xff] }
 0x3b7   : > { %3667 = vmatprep.subr.mxu0 %v3606_v6  ;;  %v3841_v6 = vld [vmem:[%s10763_s8 + $0xd0] sm:$0xff] }
 0x3b8   : > { %3668 = vmatpush1.msra.mxu0 %v3605_v51  ;;  %v5897_v51 = vld [vmem:[%s10763_s8 + $0x230] sm:$0xff] }
 0x3b9   : > { %3669 = vmatprep.subr.mxu0 %v3604_v10  ;;  %v5896_v10 = vld [vmem:[%s10763_s8 + $0x228] sm:$0xff] }
 0x3ba   : > { %3670 = vmatpush1.msra.mxu0 %v3603_v9  ;;  %v3840_v9 = vld [vmem:[%s10763_s8 + $0xc8] sm:$0xff] }
 0x3bb   : > { %3671 = vmatprep.subr.mxu0 %v3602_v36  ;;  %v5895_v36 = vld [vmem:[%s10763_s8 + $0x220] sm:$0xff] }
 0x3bc   : > { %3672 = vmatpush1.msra.mxu0 %v3601_v44  ;;  %v3839_v44 = vld [vmem:[%s10763_s8 + $0xc0] sm:$0xff] }
 0x3bd   : > { %3673 = vmatprep.subr.mxu0 %v3600_v55  ;;  %v5894_v55 = vld [vmem:[%s10763_s8 + $0x218] sm:$0xff] }
 0x3be   : > { %3674 = vmatpush1.msra.mxu0 %v3599_v2  ;;  %v5893_v2 = vld [vmem:[%s10763_s8 + $0x210] sm:$0xff] }
 0x3bf   : > { %3675 = vmatprep.subr.mxu0 %v3598_v30  ;;  %v3838_v30 = vld [vmem:[%s10763_s8 + $0xb8] sm:$0xff] }
 0x3c0   : > { %3676 = vmatpush1.msra.mxu0 %v3597_v7  ;;  %v5892_v7 = vld [vmem:[%s10763_s8 + $0x208] sm:$0xff] }
 0x3c1   : > { %3677 = vmatprep.subr.mxu0 %v3596_v60  ;;  %v3837_v60 = vld [vmem:[%s10763_s8 + $0xb0] sm:$0xff] }
 0x3c2   : > { %3678 = vmatpush1.msra.mxu0 %v3595_v42  ;;  %v5891_v42 = vld [vmem:[%s10763_s8 + $0x200] sm:$0xff] }
 0x3c3   : > { %3679 = vmatprep.subr.mxu0 %v3594_v8  ;;  %v3836_v8 = vld [vmem:[%s10763_s8 + $0xa8] sm:$0xff] }
 0x3c4   : > { %3680 = vmatpush1.msra.mxu0 %v3593_v47  ;;  %v5890_v47 = vld [vmem:[%s10763_s8 + $0x1f8] sm:$0xff] }
 0x3c5   : > { %3681 = vmatprep.subr.mxu0 %v3592_v45  ;;  %v3835_v45 = vld [vmem:[%s10763_s8 + $0xa0] sm:$0xff] }
 0x3c6   : > { %3682 = vmatpush1.msra.mxu0 %v3591_v43  ;;  %v5889_v43 = vld [vmem:[%s10763_s8 + $0x1f0] sm:$0xff] }
 0x3c7   : > { %3683 = vmatprep.subr.mxu0 %v3590_v4  ;;  %v3834_v4 = vld [vmem:[%s10763_s8 + $0x98] sm:$0xff] }
 0x3c8   : > { %3684 = vmatpush1.msra.mxu0 %v3589_v58  ;;  %v5888_v58 = vld [vmem:[%s10763_s8 + $0x1e8] sm:$0xff] }
 0x3c9   : > { %3685 = vmatprep.subr.mxu0 %v3588_v48  ;;  %v3833_v48 = vld [vmem:[%s10763_s8 + $0x90] sm:$0xff] }
 0x3ca   : > { %3686 = vmatpush1.msra.mxu0 %v3587_v34  ;;  %v5887_v34 = vld [vmem:[%s10763_s8 + $0x1e0] sm:$0xff] }
 0x3cb   : > { %3687 = vmatprep.subr.mxu0 %v3586_v46  ;;  %v3832_v46 = vld [vmem:[%s10763_s8 + $0x88] sm:$0xff] }
 0x3cc   : > { %3688 = vmatpush1.msra.mxu0 %v3585_v14  ;;  %v5886_v14 = vld [vmem:[%s10763_s8 + $0x1d8] sm:$0xff] }
 0x3cd   : > { %3689 = vmatprep.subr.mxu0 %v3648_v62  ;;  %v3831_v62 = vld [vmem:[%s10763_s8 + $0x80] sm:$0xff] }
 0x3ce   : > { %3690 = vmatpush2.msra.mxu0 %v3647_v35  ;;  %v5885_v35 = vld [vmem:[%s10763_s8 + $0x1d0] sm:$0xff] }
 0x3cf   : > { %3691 = vmatprep.subr.mxu0 %v3646_v54  ;;  %v3830_v54 = vld [vmem:[%s10763_s8 + $0x78] sm:$0xff] }
 0x3d0   : > { %3692 = vmatpush2.msra.mxu0 %v3645_v61  ;;  %v5884_v61 = vld [vmem:[%s10763_s8 + $0x1c8] sm:$0xff] }
 0x3d1   : > { %3693 = vmatprep.subr.mxu0 %v3644_v39  ;;  %v3829_v39 = vld [vmem:[%s10763_s8 + $0x70] sm:$0xff] }
 0x3d2   : > { %3694 = vmatpush2.msra.mxu0 %v3643_v18  ;;  %v5883_v18 = vld [vmem:[%s10763_s8 + $0x1c0] sm:$0xff] }
 0x3d3   : > { %3695 = vmatprep.subr.mxu0 %v3642_v24  ;;  %v3828_v24 = vld [vmem:[%s10763_s8 + $0x68] sm:$0xff] }
 0x3d4   : > { %3696 = vmatpush2.msra.mxu0 %v3641_v3  ;;  %v5882_v3 = vld [vmem:[%s10763_s8 + $0x1b8] sm:$0xff] }
 0x3d5   : > { %3697 = vmatprep.subr.mxu0 %v3640_v56  ;;  %v3827_v56 = vld [vmem:[%s10763_s8 + $0x60] sm:$0xff] }
 0x3d6   : > { %3698 = vmatpush2.msra.mxu0 %v3639_v29  ;;  %v5881_v29 = vld [vmem:[%s10763_s8 + $0x1b0] sm:$0xff] }
 0x3d7   : > { %3699 = vmatprep.subr.mxu0 %v3638_v28  ;;  %v3826_v28 = vld [vmem:[%s10763_s8 + $0x58] sm:$0xff] }
 0x3d8   : > { %3700 = vmatpush2.msra.mxu0 %v3637_v16  ;;  %v5880_v16 = vld [vmem:[%s10763_s8 + $0x1a8] sm:$0xff] }
 0x3d9   : > { %3701 = vmatprep.subr.mxu0 %v3636_v59  ;;  %v3825_v59 = vld [vmem:[%s10763_s8 + $0x50] sm:$0xff] }
 0x3da   : > { %3702 = vmatpush2.msra.mxu0 %v3635_v20  ;;  %v5879_v20 = vld [vmem:[%s10763_s8 + $0x1a0] sm:$0xff] }
 0x3db   : > { %3703 = vmatprep.subr.mxu0 %v3634_v11  ;;  %v3824_v11 = vld [vmem:[%s10763_s8 + $0x48] sm:$0xff] }
 0x3dc   : > { %3704 = vmatpush2.msra.mxu0 %v3633_v21  ;;  %v5878_v21 = vld [vmem:[%s10763_s8 + $0x198] sm:$0xff] }
 0x3dd   : > { %3705 = vmatprep.subr.mxu0 %v3632_v22  ;;  %v3823_v22 = vld [vmem:[%s10763_s8 + $0x40] sm:$0xff] }
 0x3de   : > { %3706 = vmatpush2.msra.mxu0 %v3631_v37  ;;  %v5877_v37 = vld [vmem:[%s10763_s8 + $0x190] sm:$0xff] }
 0x3df   : > { %3707 = vmatprep.subr.mxu0 %v3630_v63  ;;  %v3822_v63 = vld [vmem:[%s10763_s8 + $0x38] sm:$0xff] }
 0x3e0   : > { %3708 = vmatpush2.msra.mxu0 %v3629_v13  ;;  %v5876_v13 = vld [vmem:[%s10763_s8 + $0x188] sm:$0xff] }
 0x3e1   : > { %3709 = vmatprep.subr.mxu0 %v3628_v38  ;;  %v3821_v38 = vld [vmem:[%s10763_s8 + $0x30] sm:$0xff] }
 0x3e2   : > { %3710 = vmatpush2.msra.mxu0 %v3627_v33  ;;  %v5875_v33 = vld [vmem:[%s10763_s8 + $0x180] sm:$0xff] }
 0x3e3   : > { %3711 = vmatprep.subr.mxu0 %v3626_v12  ;;  %v3820_v12 = vld [vmem:[%s10763_s8 + $0x28] sm:$0xff] }
 0x3e4   : > { %3712 = vmatpush2.msra.mxu0 %v3625_v5  ;;  %v5874_v5 = vld [vmem:[%s10763_s8 + $0x178] sm:$0xff] }
 0x3e5   : > { %3713 = vmatprep.subr.mxu0 %v3624_v17  ;;  %v3819_v17 = vld [vmem:[%s10763_s8 + $0x20] sm:$0xff] }
 0x3e6   : > { %3714 = vmatpush2.msra.mxu0 %v3623_v31  ;;  %v3818_v31 = vld [vmem:[%s10763_s8 + $0x18] sm:$0xff] }
 0x3e7   : > { %3715 = vmatprep.subr.mxu0 %v3622_v40  ;;  %v3817_v40 = vld [vmem:[%s10763_s8 + $0x10] sm:$0xff] }
 0x3e8   : > { %3716 = vmatpush2.msra.mxu0 %v3621_v41  ;;  %v3816_v41 = vld [vmem:[%s10763_s8 + $0x8] sm:$0xff] }
 0x3e9   : > { %3717 = vmatprep.subr.mxu0 %v3620_v49  ;;  %v3815_v49 = vld [vmem:[%s10763_s8] sm:$0xff] }
 0x3ea   : > { %3718 = vmatpush2.msra.mxu0 %v3619_v0  ;;  %v5873_v0 = vld [vmem:[%s10763_s8 + $0x170] sm:$0xff] }
 0x3eb   : > { %3719 = vmatprep.subr.mxu0 %v3618_v23  ;;  %v3854_v23 = vld [vmem:[%s10763_s8 + $0x138] sm:$0xf] }
 0x3ec   : > { %3720 = vmatpush2.msra.mxu0 %v3617_v26  ;;  %v5872_v26 = vld [vmem:[%s10763_s8 + $0x168] sm:$0xff] }
 0x3ed   : > { %3722 = vmatmul.mubr.f32.vlgmr.msra.gmra.mxu0 %v9730_v15  ;;  %4007 = vmatprep.subr.mxu0 %v3846_v50  ;;  %v3843_v15 = vld [vmem:[%s10763_s8 + $0xe0] sm:$0xff]  ;;  %v3853_v50 = vld [vmem:[%s10763_s8 + $0x130] sm:$0xf] }
 0x3ee   : > { %3727 = vmatprep.mubr.f32.mxu0 %v9742_v53  ;;  %4008 = vmatpush1.msra.mxu0 %v3845_v19  ;;  %v3842_v53 = vld [vmem:[%s10763_s8 + $0xd8] sm:$0xff]  ;;  %v5871_v19 = vld [vmem:[%s10763_s8 + $0x160] sm:$0xff] }
 0x3ef   : > { %4009 = vmatprep.subr.mxu0 %v3844_v52  ;;  %v3852_v52 = vld [vmem:[%s10763_s8 + $0x128] sm:$0xff] }
 0x3f0   : > { %4010 = vmatpush1.msra.mxu0 %v3843_v15  ;;  %v5870_v15 = vld [vmem:[%s10763_s8 + $0x158] sm:$0xff] }
 0x3f1   : > { %3728 = vmatmul.mubr.f32.gmra.mxu0 %v9747_v27  ;;  %v5898_v27 = vld [vmem:[%s10763_s8 + $0x238] sm:$0xff]  ;;  %4011 = vmatprep.subr.mxu0 %v3842_v53  ;;  %v3851_v53 = vld [vmem:[%s10763_s8 + $0x120] sm:$0xff] }
 0x3f2   : > { %3920 = vmatprep.subr.mxu1 %v5898_v27  ;;  %4012 = vmatpush1.msra.mxu0 %v3841_v6  ;;  %v5869_v27 = vld [vmem:[%s10763_s8 + $0x150] sm:$0xff]  ;;  %v3850_v6 = vld [vmem:[%s10763_s8 + $0x118] sm:$0xff] }
 0x3f3   : > { %3921 = vmatpush1.msra.mxu1 %v5897_v51  ;;  %4013 = vmatprep.subr.mxu0 %v3840_v9  ;;  %v5868_v51 = vld [vmem:[%s10763_s8 + $0x148] sm:$0xff]  ;;  %v5867_v9 = vld [vmem:[%s10763_s8 + $0x140] sm:$0xff] }
 0x3f4   : > { %3922 = vmatprep.subr.mxu1 %v5896_v10  ;;  %4014 = vmatpush1.msra.mxu0 %v3839_v44  ;;  %v3849_v10 = vld [vmem:[%s10763_s8 + $0x110] sm:$0xff]  ;;  %v5906_v44 = vld [vmem:[%s10763_s8 + $0x278] sm:$0xf] }
 0x3f5   : > { %3923 = vmatpush1.msra.mxu1 %v5895_v36  ;;  %4015 = vmatprep.subr.mxu0 %v3838_v30  ;;  %v3848_v36 = vld [vmem:[%s10763_s8 + $0x108] sm:$0xff] }
 0x3f6   : > { %3924 = vmatprep.subr.mxu1 %v5894_v55  ;;  %4016 = vmatpush1.msra.mxu0 %v3837_v60  ;;  %v3847_v55 = vld [vmem:[%s10763_s8 + $0x100] sm:$0xff]  ;;  %v5904_v30 = vld [vmem:[%s10763_s8 + $0x268] sm:$0xff]  ;;  %v5902_v60 = vld [vmem:[%s10763_s8 + $0x258] sm:$0xff] }
 0x3f7   : > { %3925 = vmatpush1.msra.mxu1 %v5893_v2  ;;  %4017 = vmatprep.subr.mxu0 %v3836_v8  ;;  %v5905_v2 = vld [vmem:[%s10763_s8 + $0x270] sm:$0xf]  ;;  %v5900_v8 = vld [vmem:[%s10763_s8 + $0x248] sm:$0xff] }
 0x3f8   : > { %3926 = vmatprep.subr.mxu1 %v5892_v7  ;;  %4018 = vmatpush1.msra.mxu0 %v3835_v45  ;;  %v5903_v7 = vld [vmem:[%s10763_s8 + $0x260] sm:$0xff] }
 0x3f9   : > { %3927 = vmatpush1.msra.mxu1 %v5891_v42  ;;  %4019 = vmatprep.subr.mxu0 %v3834_v4  ;;  %v5901_v42 = vld [vmem:[%s10763_s8 + $0x250] sm:$0xff] }
 0x3fa   : > { %3928 = vmatprep.subr.mxu1 %v5890_v47  ;;  %4020 = vmatpush1.msra.mxu0 %v3833_v48  ;;  %v5899_v47 = vld [vmem:[%s10763_s8 + $0x240] sm:$0xff] }
 0x3fb   : > { %3929 = vmatpush1.msra.mxu1 %v5889_v43  ;;  %4021 = vmatprep.subr.mxu0 %v3832_v46 }
 0x3fc   : > { %3930 = vmatprep.subr.mxu1 %v5888_v58  ;;  %4022 = vmatpush1.msra.mxu0 %v3831_v62 }
 0x3fd   : > { %3931 = vmatpush1.msra.mxu1 %v5887_v34  ;;  %4023 = vmatprep.subr.mxu0 %v3830_v54 }
 0x3fe   : > { %3932 = vmatprep.subr.mxu1 %v5886_v14  ;;  %4024 = vmatpush1.msra.mxu0 %v3829_v39 }
 0x3ff   : > { %3933 = vmatpush1.msra.mxu1 %v5885_v35  ;;  %4025 = vmatprep.subr.mxu0 %v3828_v24 }
 0x400   : > { %3934 = vmatprep.subr.mxu1 %v5884_v61  ;;  %4026 = vmatpush1.msra.mxu0 %v3827_v56 }
 0x401   : > { %3935 = vmatpush1.msra.mxu1 %v5883_v18  ;;  %4027 = vmatprep.subr.mxu0 %v3826_v28 }
 0x402   : > { %3936 = vmatprep.subr.mxu1 %v5882_v3  ;;  %4028 = vmatpush1.msra.mxu0 %v3825_v59 }
 0x403   : > { %3937 = vmatpush1.msra.mxu1 %v5881_v29  ;;  %4029 = vmatprep.subr.mxu0 %v3824_v11 }
 0x404   : > { %3938 = vmatprep.subr.mxu1 %v5880_v16  ;;  %4030 = vmatpush1.msra.mxu0 %v3823_v22 }
 0x405   : > { %3939 = vmatpush1.msra.mxu1 %v5879_v20  ;;  %4031 = vmatprep.subr.mxu0 %v3822_v63 }
 0x406   : > { %3940 = vmatprep.subr.mxu1 %v5878_v21  ;;  %4032 = vmatpush1.msra.mxu0 %v3821_v38 }
 0x407   : > { %3941 = vmatpush1.msra.mxu1 %v5877_v37  ;;  %4033 = vmatprep.subr.mxu0 %v3820_v12 }
 0x408   : > { %3942 = vmatprep.subr.mxu1 %v5876_v13  ;;  %4034 = vmatpush1.msra.mxu0 %v3819_v17 }
 0x409   : > { %3943 = vmatpush1.msra.mxu1 %v5875_v33  ;;  %4035 = vmatprep.subr.mxu0 %v3818_v31 }
 0x40a   : > { %3944 = vmatprep.subr.mxu1 %v5874_v5  ;;  %4036 = vmatpush1.msra.mxu0 %v3817_v40  ;;  %v4378_v40 = vld [vmem:[%s10769_s14 + $0x78] sm:$0xff] }
 0x40b   : > { %4037 = vmatprep.subr.mxu0 %v3816_v41  ;;  %3945 = vmatpush1.msra.mxu1 %v5873_v0  ;;  %v4377_v41 = vld [vmem:[%s10769_s14 + $0x70] sm:$0xff]  ;;  %v4375_v0 = vld [vmem:[%s10769_s14 + $0x60] sm:$0xff] }
 0x40c   : > { %4038 = vmatpush1.msra.mxu0 %v3815_v49  ;;  %3946 = vmatprep.subr.mxu1 %v5872_v26  ;;  %v4376_v49 = vld [vmem:[%s10769_s14 + $0x68] sm:$0xff]  ;;  %v4373_v26 = vld [vmem:[%s10769_s14 + $0x50] sm:$0xff] }
 0x40d   : > { %5911 = vmatprep.subr.msk.mxu0 %vm3913_vm7, %v3854_v23  ;;  %3947 = vmatpush1.msra.mxu1 %v5871_v19  ;;  %v4374_v23 = vld [vmem:[%s10769_s14 + $0x58] sm:$0xff]  ;;  %v4371_v19 = vld [vmem:[%s10769_s14 + $0x40] sm:$0xff] }
 0x40e   : > { %5912 = vmatpush2.msk.msra.mxu0 %vm3913_vm7, %v3853_v50  ;;  %3948 = vmatprep.subr.mxu1 %v5870_v15  ;;  %v4372_v50 = vld [vmem:[%s10769_s14 + $0x48] sm:$0xff]  ;;  %v4369_v15 = vld [vmem:[%s10769_s14 + $0x30] sm:$0xff] }
 0x40f   : > { %4065 = vmatprep.subr.mxu0 %v3852_v52  ;;  %3949 = vmatpush1.msra.mxu1 %v5869_v27  ;;  %v4370_v52 = vld [vmem:[%s10769_s14 + $0x38] sm:$0xff]  ;;  %v4367_v27 = vld [vmem:[%s10769_s14 + $0x20] sm:$0xff] }
 0x410   : > { %4066 = vmatpush2.msra.mxu0 %v3851_v53  ;;  %3950 = vmatprep.subr.mxu1 %v5868_v51  ;;  %v4368_v53 = vld [vmem:[%s10769_s14 + $0x28] sm:$0xff] }
 0x411   : > { %4067 = vmatprep.subr.mxu0 %v3850_v6  ;;  %3951 = vmatpush1.msra.mxu1 %v5867_v9  ;;  %v4366_v6 = vld [vmem:[%s10769_s14 + $0x18] sm:$0xff] }
 0x412   : > { %4068 = vmatpush2.msra.mxu0 %v3849_v10  ;;  %5907 = vmatprep.subr.msk.mxu1 %vm3913_vm7, %v5906_v44 }
 0x413   : > { %4069 = vmatprep.subr.mxu0 %v3848_v36  ;;  %5908 = vmatpush2.msk.msra.mxu1 %vm3913_vm7, %v5905_v2  ;;  %v4084_v36 = vld [vmem:[%s10764_s9] sm:$0x3] }
 0x414   : > { %4070 = vmatpush2.msra.mxu0 %v3847_v55  ;;  %3978 = vmatprep.subr.mxu1 %v5904_v30  ;;  %v4093_v30 = vrot.slane %v4084_v36, %v2980_v57  ;;  %v4101_v57 = vld [vmem:[%s10765_s10 + $0x8] sm:$0xff] }
 0x415   : > { %4381 = vmatprep.subr.mxu0 %v6524_v25  ;;  %3979 = vmatpush2.msra.mxu1 %v5903_v7 }
 0x416   : > { %3980 = vmatprep.subr.mxu1 %v5902_v60  ;;  %v4089_v60 = vrot.slane %v4084_v36, %v2976_v1  ;;  %v4100_v1 = vld [vmem:[%s10765_s10] sm:$0xff] }
 0x417   : > { %3981 = vmatpush2.msra.mxu1 %v5901_v42  ;;  %v4460_v36 = vld [vmem:[%s10770_s15 + $0x40] sm:$0xff] }
 0x418   : > { %3982 = vmatprep.subr.mxu1 %v5900_v8 }
 0x419   : > { %3983 = vmatpush2.msra.mxu1 %v5899_v47 }
 0x466   : > { %v3497_v45 = vpop.f32.mrf.mxu1 }
 0x468   : > { %v3499_v43 = vpop.f32.mrf.mxu1 }
 0x46a   : > { %v3503_v4 = vpop.f32.mrf.mxu1 }
 0x46c   : > { %v3505_v48 = vpop.f32.mrf.mxu1 }
 0x46d   : > { %v3574_v58 = vpop.f32.mrf.mxu0 }
 0x46e   : > { %v3800_v46 = vpop.f32.mrf.mxu1  ;;  %v3575_v56 = vadd.f32 %v3574_v58, %v3497_v45  ;;  %v4102_v58 = vld [vmem:[%s10765_s10 + $0x10] sm:$0xf] }
 0x46f   : > { %v3576_v34 = vpop.f32.mrf.mxu0 }
 0x470   : > { %v3802_v62 = vpop.f32.mrf.mxu1  ;;  %v3577_v24 = vadd.f32 %v3576_v34, %v3499_v43 }
 0x471   : > { %v3580_v14 = vpop.f32.mrf.mxu0 }
 0x472   : > { %v3581_v28 = vadd.f32 %v3580_v14, %v3503_v4 }
 0x473   : > { %v3582_v35 = vpop.f32.mrf.mxu0  ;;  %v3806_v61 = vpop.f32.mrf.mxu1 }
 0x474   : > { %v3583_v22 = vadd.f32 %v3582_v35, %v3505_v48 }
 0x475   : > { %v3808_v20 = vpop.f32.mrf.mxu1 }
 0x4ad   : > { %v3723_v54 = vpop.f32.mrf.mxu0 }
 0x4ae   : > { %v3801_v39 = vadd.f32 %v3800_v46, %v3723_v54 }
 0x4af   : > { %v3725_v18 = vpop.f32.mrf.mxu0 }
 0x4b0   : > { %v3803_v3 = vadd.f32 %v3802_v62, %v3725_v18  ;;  %v3811_v11 = vmax.f32 %v3575_v56, %v3801_v39  ;;  %v4194_v56 = vld [vmem:[%s10767_s12] sm:$0x7f] }
 0x4b1   : > { %v3729_v29 = vpop.f32.mrf.mxu0 }
 0x4b2   : > { %v3812_v16 = vmax.f32 %v3577_v24, %v3803_v3  ;;  %v3807_v59 = vadd.f32 %v3806_v61, %v3729_v29  ;;  %v3900_v5 = vrot.slane %v3811_v11, 1  ;;  %v4112_v24 = vld [vmem:[%s10766_s11] sm:$0x7f]  ;;  %v4286_v29 = vld [vmem:[%s10768_s13 + $0x78] sm:$0xff] }
 0x4b3   : > { %v3731_v21 = vpop.f32.mrf.mxu0 }
 0x4b4   : > { %v3813_v37 = vmax.f32 %v3581_v28, %v3807_v59  ;;  %v3809_v63 = vadd.f32 %v3808_v20, %v3731_v21  ;;  %5913 = vmatprep.mubr.msk.f32.mxu0 %vm3908_vm8, %v3812_v16  ;;  %v3903_v33 = vrot.slane %v3812_v16, 1  ;;  %v4285_v28 = vld [vmem:[%s10768_s13 + $0x70] sm:$0xff]  ;;  %v4284_v16 = vld [vmem:[%s10768_s13 + $0x68] sm:$0xff]  ;;  %v4283_v59 = vld [vmem:[%s10768_s13 + $0x60] sm:$0xff] }
 0x4b5   : > { %4072 = vmatmul.mubr.f32.vlgmr.msra.gmra.mxu0 %v3811_v11  ;;  %v4282_v20 = vld [vmem:[%s10768_s13 + $0x58] sm:$0xff]  ;;  %v4281_v11 = vld [vmem:[%s10768_s13 + $0x50] sm:$0xff]  ;;  %v4280_v21 = vld [vmem:[%s10768_s13 + $0x48] sm:$0xff] }
 0x4b6   : > { %v3814_v13 = vmax.f32 %v3583_v22, %v3809_v63  ;;  %v3901_v38 = vrot.slane %v3813_v37, 1  ;;  %4382 = vmatpush1.msra.mxu0 %v4378_v40  ;;  %v4279_v22 = vld [vmem:[%s10768_s13 + $0x40] sm:$0xff]  ;;  %v4277_v63 = vld [vmem:[%s10768_s13 + $0x30] sm:$0xff] }
 0x4b7   : > { %4383 = vmatprep.subr.mxu0 %v6524_v25  ;;  %v4271_v40 = vld [vmem:[%s10768_s13] sm:$0xff] }
 0x4b8   : > { %v3904_v12 = vrot.slane %v3814_v13, 1  ;;  %5914 = vmatprep.mubr.msk.f32.mxu0 %vm3908_vm8, %v3814_v13  ;;  %v3902_v31 = vsel %vm1079_vm1, %v3900_v5, %v3901_v38  ;;  %4384 = vmatpush1.msra.mxu0 %v4377_v41  ;;  %v4276_v13 = vld [vmem:[%s10768_s13 + $0x28] sm:$0xff]  ;;  %v4365_v5 = vld [vmem:[%s10769_s14 + $0x10] sm:$0xff]  ;;  %v4363_v41 = vld [vmem:[%s10769_s14] sm:$0xff] }
 0x4b9   : > { %4078 = vmatmul.mubr.f32.gmra.mxu0 %v3813_v37  ;;  %4385 = vmatprep.subr.mxu0 %v6524_v25  ;;  %v4278_v37 = vld [vmem:[%s10768_s13 + $0x38] sm:$0xff] }
 0x4ba   : > { %v3905_v17 = vsel %vm1079_vm1, %v3903_v33, %v3904_v12  ;;  %4386 = vmatpush1.msra.mxu0 %v4376_v49  ;;  %v4274_v33 = vld [vmem:[%s10768_s13 + $0x18] sm:$0xff]  ;;  %v4288_v49 = vld [vmem:[%s10768_s13 + $0x88] sm:$0xff] }
 0x4bb   : > { %5909 = vmatprep.mubr.msk.f32.mxu1 %vm3908_vm8, %v3905_v17  ;;  %4387 = vmatprep.subr.mxu0 %v6524_v25  ;;  %v4272_v17 = vld [vmem:[%s10768_s13 + $0x8] sm:$0xff] }
 0x4bc   : > { %3985 = vmatmul.mubr.f32.vlgmr.msra.gmra.mxu1 %v3902_v31  ;;  %4388 = vmatpush1.msra.mxu0 %v4375_v0  ;;  %v4364_v31 = vld [vmem:[%s10769_s14 + $0x8] sm:$0xff] }
 0x4bd   : > { %5910 = vmatprep.mubr.msk.f32.mxu1 %vm3908_vm8, %v3904_v12  ;;  %4389 = vmatprep.subr.mxu0 %v6524_v25  ;;  %v4273_v12 = vld [vmem:[%s10768_s13 + $0x10] sm:$0xff]  ;;  %v4380_v0 = vld [vmem:[%s10769_s14 + $0x88] sm:$0xff] }
 0x4be   : > { %4390 = vmatpush1.msra.mxu0 %v4374_v23  ;;  %v4287_v23 = vld [vmem:[%s10768_s13 + $0x80] sm:$0xff] }
 0x4bf   : > { %4391 = vmatprep.subr.mxu0 %v6524_v25 }
 0x4c0   : > { %3991 = vmatmul.mubr.f32.gmra.mxu1 %v3901_v38  ;;  %4392 = vmatpush1.msra.mxu0 %v4373_v26  ;;  %v4275_v38 = vld [vmem:[%s10768_s13 + $0x20] sm:$0xff] }
 0x4c1   : > { %4187 = vmatprep.mubr.f32.mxu1 %v6524_v25  ;;  %4393 = vmatprep.subr.mxu0 %v6524_v25  ;;  %v4379_v26 = vld [vmem:[%s10769_s14 + $0x80] sm:$0xff] }
 0x4c2   : > { %4394 = vmatpush1.msra.mxu0 %v4372_v50 }
 0x4c3   : > { %4395 = vmatprep.subr.mxu0 %v6524_v25 }
 0x4c4   : > { %4396 = vmatpush1.msra.mxu0 %v4371_v19 }
 0x4c5   : > { %4397 = vmatprep.subr.mxu0 %v6524_v25 }
 0x4c6   : > { %4398 = vmatpush1.msra.mxu0 %v4370_v52 }
 0x4c7   : > { %4399 = vmatprep.subr.mxu0 %v6524_v25 }
 0x4c8   : > { %4400 = vmatpush1.msra.mxu0 %v4369_v15 }
 0x4c9   : > { %4401 = vmatprep.subr.mxu0 %v6524_v25 }
 0x4ca   : > { %4402 = vmatpush1.msra.mxu0 %v4368_v53 }
 0x4cb   : > { %4403 = vmatprep.subr.mxu0 %v6524_v25 }
 0x4cc   : > { %4404 = vmatpush1.msra.mxu0 %v4367_v27 }
 0x4cd   : > { %4405 = vmatprep.subr.mxu0 %v6524_v25 }
 0x4ce   : > { %4406 = vmatpush1.msra.mxu0 %v4366_v6  ;;  %v4462_v6 = vld [vmem:[%s10770_s15 + $0x50] sm:$0xf] }
 0x4cf   : > { %4407 = vmatprep.subr.mxu0 %v6524_v25 }
 0x4d0   : > { %4408 = vmatpush1.msra.mxu0 %v4365_v5  ;;  %v5938_v5 = vld [vmem:[%s10771_s16] ss:$0 sm:$0xff] }
 0x4d1   : > { %4409 = vmatprep.subr.mxu0 %v6524_v25 }
 0x4d2   : > { %4410 = vmatpush1.msra.mxu0 %v4364_v31 }
 0x4d3   : > { %4411 = vmatprep.subr.mxu0 %v6524_v25 }
 0x4d4   : > { %4412 = vmatpush1.msra.mxu0 %v4363_v41 }
 0x4d5   : > { %4441 = vmatprep.subr.mxu0 %v6524_v25 }
 0x4d6   : > { %4442 = vmatpush2.msra.mxu0 %v4380_v0 }
 0x4d7   : > { %4443 = vmatprep.subr.mxu0 %v6524_v25 }
 0x4d8   : > { %4444 = vmatpush2.msra.mxu0 %v4379_v26 }
 0x4d9   : > { %6300 = vmatprep.subr.mxu0 %v6524_v25 }
 0x575   : > { %v4073_v51 = vpop.f32.mrf.mxu0 }
 0x577   : > { %v4075_v10 = vpop.f32.mrf.mxu0 }
 0x579   : > { %v4079_v44 = vpop.f32.mrf.mxu0 }
 0x57b   : > { %v4081_v47 = vpop.f32.mrf.mxu0 }
 0x57c   : > { %v3986_v9 = vpop.f32.mrf.mxu1 }
 0x57d   : > { %v4074_v7 = vadd.f32 %v4073_v51, %v3986_v9  ;;  %v5933_v51 = vld [vmem:[%s10770_s15 + $0xa8] sm:$0xf]  ;;  %v5932_v9 = vld [vmem:[%s10770_s15 + $0xa0] sm:$0xff] }
 0x57e   : > { %v3988_v55 = vpop.f32.mrf.mxu1 }
 0x57f   : > { %v4076_v2 = vadd.f32 %v4075_v10, %v3988_v55  ;;  %v4096_v34 = vadd.f32 %v4089_v60, %v4074_v7  ;;  %v4461_v10 = vld [vmem:[%s10770_s15 + $0x48] sm:$0xff]  ;;  %v4459_v55 = vld [vmem:[%s10770_s15 + $0x38] sm:$0xff] }
 0x580   : > { %v3992_v42 = vpop.f32.mrf.mxu1  ;;  %v5929_v7 = vld [vmem:[%s10770_s15 + $0x88] sm:$0xff] }
 0x581   : > { %v4080_v8 = vadd.f32 %v4079_v44, %v3992_v42  ;;  %v4097_v43 = vadd.f32 %v4093_v30, %v4076_v2  ;;  %v4104_v54 = vmul.f32 %v4100_v1, %v4096_v34  ;;  %v5931_v44 = vld [vmem:[%s10770_s15 + $0x98] sm:$0xff]  ;;  %v5930_v2 = vld [vmem:[%s10770_s15 + $0x90] sm:$0xff]  ;;  %v5928_v42 = vld [vmem:[%s10770_s15 + $0x80] sm:$0xff] }
 0x582   : > { %v3994_v45 = vpop.f32.mrf.mxu1  ;;  %v5924_v34 = vld [vmem:[%s10770_s15 + $0x60] sm:$0xff] }
 0x583   : > { %v4098_v4 = vadd.f32 %v4089_v60, %v4080_v8  ;;  %v4082_v48 = vadd.f32 %v4081_v47, %v3994_v45  ;;  %v4105_v62 = vmul.f32 %v4101_v57, %v4097_v43  ;;  %v4457_v60 = vld [vmem:[%s10770_s15 + $0x28] sm:$0xff]  ;;  %v4456_v8 = vld [vmem:[%s10770_s15 + $0x20] sm:$0xff]  ;;  %v5927_v47 = vld [vmem:[%s10770_s15 + $0x78] sm:$0xff] }
 0x584   : > { %v4455_v45 = vld [vmem:[%s10770_s15 + $0x18] sm:$0xff]  ;;  %v5926_v43 = vld [vmem:[%s10770_s15 + $0x70] sm:$0xff]  ;;  %v4452_v57 = vld [vmem:[%s10770_s15] sm:$0xff] }
 0x585   : > { %v4099_v46 = vadd.f32 %v4093_v30, %v4082_v48  ;;  %v4106_v14 = vmul.f32 %v4102_v58, %v4098_v4  ;;  %v4458_v30 = vld [vmem:[%s10770_s15 + $0x30] sm:$0xff]  ;;  %v5925_v58 = vld [vmem:[%s10770_s15 + $0x68] sm:$0xff] }
 0x586   : > { %v4454_v4 = vld [vmem:[%s10770_s15 + $0x10] sm:$0xff]  ;;  %v4453_v48 = vld [vmem:[%s10770_s15 + $0x8] sm:$0xff] }
 0x587   : > { %v4107_v35 = vmul.f32 %v4103_v32, %v4099_v46  ;;  %v5923_v32 = vld [vmem:[%s10770_s15 + $0x58] sm:$0xff] }
 0x589   : > { %6490 = vtanh.f32 %v4107_v35 }
 0x58a   : > { %6492 = vtanh.f32 %v4106_v14 }
 0x58b   : > { %6494 = vtanh.f32 %v4105_v62 }
 0x58c   : > { %6496 = vtanh.f32 %v4104_v54 }
 0x596   : > { %v6491_v61 = vpop.eup %6490 }
 0x597   : > { %v6493_v39 = vpop.eup %6492  ;;  %5915 = vmatprep.subr.msk.mxu1 %vm3913_vm7, %v6491_v61 }
 0x598   : > { %v6495_v18 = vpop.eup %6494  ;;  %5916 = vmatpush1.msk.msra.mxu1 %vm3913_vm7, %v6493_v39 }
 0x599   : > { %v6497_v3 = vpop.eup %6496  ;;  %4153 = vmatprep.subr.mxu1 %v6495_v18 }
 0x59a   : > { %4154 = vmatpush1.msra.mxu1 %v6497_v3 }
 0x59b   : > { %5917 = vmatmul.mubr.msk.f32.vlgmr.msra.gmra.mxu1 %vm4113_vm9, %v4112_v24  ;;  %5918 = vmatprep.subr.msk.mxu1 %vm3913_vm7, %v6491_v61  ;;  %v4648_v61 = vld [vmem:[%s10773_s18 + $0x40] sm:$0xff]  ;;  %v4646_v24 = vld [vmem:[%s10773_s18 + $0x30] sm:$0xff] }
 0x59c   : > { %5919 = vmatpush1.msk.msra.mxu1 %vm3913_vm7, %v6493_v39  ;;  %4262 = vmatprep.mubr.f32.mxu1 %v6524_v25  ;;  %v4647_v39 = vld [vmem:[%s10773_s18 + $0x38] sm:$0xff] }
 0x59d   : > { %4228 = vmatprep.subr.mxu1 %v6495_v18  ;;  %v5948_v18 = vld [vmem:[%s10773_s18 + $0x88] sm:$0xff] }
 0x59e   : > { %4229 = vmatpush1.msra.mxu1 %v6497_v3  ;;  %v5947_v3 = vld [vmem:[%s10773_s18 + $0x80] sm:$0xff] }
 0x59f   : > { %5920 = vmatmul.mubr.msk.f32.vlgmr.msra.gmra.mxu1 %vm4113_vm9, %v4194_v56  ;;  %4293 = vmatprep.subr.mxu1 %v6524_v25  ;;  %v4645_v56 = vld [vmem:[%s10773_s18 + $0x28] sm:$0xff] }
 0x5a0   : > { %4294 = vmatpush1.msra.mxu1 %v4286_v29  ;;  %v5946_v29 = vld [vmem:[%s10773_s18 + $0x78] sm:$0xff] }
 0x5a1   : > { %4295 = vmatprep.subr.mxu1 %v6524_v25 }
 0x5a2   : > { %4296 = vmatpush1.msra.mxu1 %v4285_v28  ;;  %v4644_v28 = vld [vmem:[%s10773_s18 + $0x20] sm:$0xff] }
 0x5a3   : > { %4297 = vmatprep.subr.mxu1 %v6524_v25 }
 0x5a4   : > { %4298 = vmatpush1.msra.mxu1 %v4284_v16  ;;  %v5945_v16 = vld [vmem:[%s10773_s18 + $0x70] sm:$0xff] }
 0x5a5   : > { %4299 = vmatprep.subr.mxu1 %v6524_v25 }
 0x5a6   : > { %4300 = vmatpush1.msra.mxu1 %v4283_v59  ;;  %v4643_v59 = vld [vmem:[%s10773_s18 + $0x18] sm:$0xff] }
 0x5a7   : > { %4301 = vmatprep.subr.mxu1 %v6524_v25 }
 0x5a8   : > { %4302 = vmatpush1.msra.mxu1 %v4282_v20  ;;  %v5944_v20 = vld [vmem:[%s10773_s18 + $0x68] sm:$0xff] }
 0x5a9   : > { %4303 = vmatprep.subr.mxu1 %v6524_v25 }
 0x5aa   : > { %4304 = vmatpush1.msra.mxu1 %v4281_v11  ;;  %v4642_v11 = vld [vmem:[%s10773_s18 + $0x10] sm:$0xff] }
 0x5ab   : > { %4305 = vmatprep.subr.mxu1 %v6524_v25 }
 0x5ac   : > { %4306 = vmatpush1.msra.mxu1 %v4280_v21  ;;  %v5943_v21 = vld [vmem:[%s10773_s18 + $0x60] sm:$0xff] }
 0x5ad   : > { %4307 = vmatprep.subr.mxu1 %v6524_v25 }
 0x5ae   : > { %4308 = vmatpush1.msra.mxu1 %v4279_v22  ;;  %v4641_v22 = vld [vmem:[%s10773_s18 + $0x8] sm:$0xff] }
 0x5af   : > { %4309 = vmatprep.subr.mxu1 %v6524_v25 }
 0x5b0   : > { %4310 = vmatpush1.msra.mxu1 %v4278_v37  ;;  %v5942_v37 = vld [vmem:[%s10773_s18 + $0x58] sm:$0xff] }
 0x5b1   : > { %4311 = vmatprep.subr.mxu1 %v6524_v25 }
 0x5b2   : > { %4312 = vmatpush1.msra.mxu1 %v4277_v63  ;;  %v4640_v63 = vld [vmem:[%s10773_s18] sm:$0xff] }
 0x5b3   : > { %4313 = vmatprep.subr.mxu1 %v6524_v25 }
 0x5b4   : > { %4314 = vmatpush1.msra.mxu1 %v4276_v13  ;;  %v5941_v13 = vld [vmem:[%s10773_s18 + $0x50] sm:$0xff] }
 0x5b5   : > { %4315 = vmatprep.subr.mxu1 %v6524_v25 }
 0x5b6   : > { %4316 = vmatpush1.msra.mxu1 %v4275_v38  ;;  %v5940_v38 = vld [vmem:[%s10773_s18 + $0x48] sm:$0xff] }
 0x5b7   : > { %4317 = vmatprep.subr.mxu1 %v6524_v25 }
 0x5b8   : > { %4318 = vmatpush1.msra.mxu1 %v4274_v33 }
 0x5b9   : > { %4319 = vmatprep.subr.mxu1 %v6524_v25 }
 0x5ba   : > { %4320 = vmatpush1.msra.mxu1 %v4273_v12 }
 0x5bb   : > { %4321 = vmatprep.subr.mxu1 %v6524_v25 }
 0x5bc   : > { %4322 = vmatpush1.msra.mxu1 %v4272_v17 }
 0x5bd   : > { %4323 = vmatprep.subr.mxu1 %v6524_v25 }
 0x5be   : > { %4324 = vmatpush1.msra.mxu1 %v4271_v40  ;;  %v4636_v40 = vld [vmem:[%s10772_s17] sm:$0x3f] }
 0x5bf   : > { %4353 = vmatprep.subr.mxu1 %v6524_v25 }
 0x5c0   : > { %4354 = vmatpush2.msra.mxu1 %v4288_v49 }
 0x5c1   : > { %4355 = vmatprep.subr.mxu1 %v6524_v25 }
 0x5c2   : > { %4356 = vmatpush2.msra.mxu1 %v4287_v23  ;;  %v5958_v23 = vld [vmem:[%s10773_s18 + $0xd0] sm:$0xff] }
 0x5c3   : > { %6275 = vmatprep.subr.mxu1 %v6524_v25 }
 0x65b   : > { %v4189_v50 = vpop.f32.mrf.mxu1 }
 0x65d   : > { %v4191_v19 = vpop.f32.mrf.mxu1 }
 0x65f   : > { %v4264_v52 = vpop.f32.mrf.mxu1 }
 0x660   : > { %v4269_v27 = vmax.f32 %v4189_v50, %v4264_v52  ;;  %v5968_v52 = vld [vmem:[%s10773_s18 + $0x118] sm:$0xff] }
 0x661   : > { %v4266_v15 = vpop.f32.mrf.mxu1 }
 0x662   : > { %v4270_v53 = vmax.f32 %v4191_v19, %v4266_v15  ;;  %v5957_v19 = vld [vmem:[%s10773_s18 + $0xc8] sm:$0xff]  ;;  %v5956_v15 = vld [vmem:[%s10773_s18 + $0xc0] sm:$0xff] }
 0x664   : > { %5921 = vmatprep.mubr.msk.f32.mxu1 %vm4289_vm10, %v4270_v53  ;;  %5922 = vmatprep.mubr.msk.f32.mxu0 %vm4289_vm10, %v4270_v53  ;;  %v5967_v53 = vld [vmem:[%s10773_s18 + $0x110] sm:$0xff] }
 0x665   : > { %4358 = vmatmul.mubr.f32.vlgmr.msra.gmra.mxu1 %v4269_v27  ;;  %4446 = vmatmul.mubr.f32.vlgmr.msra.gmra.mxu0 %v4269_v27  ;;  %v5955_v27 = vld [vmem:[%s10773_s18 + $0xb8] sm:$0xff] }
 0x666   : > { %6301 = vmatpush3.msk.msra.mxu0 %vm3913_vm7, %v4462_v6  ;;  %6276 = vmatpush3.msk.msra.mxu1 %vm3913_vm7, %v5933_v51  ;;  %v5966_v6 = vld [vmem:[%s10773_s18 + $0x108] sm:$0xff]  ;;  %v5954_v51 = vld [vmem:[%s10773_s18 + $0xb0] sm:$0xff] }
 0x667   : > { %6302 = vmatprep.subr.mxu0 %v6524_v25  ;;  %6277 = vmatprep.subr.mxu1 %v6524_v25 }
 0x668   : > { %6303 = vmatpush3.msra.mxu0 %v4461_v10  ;;  %6278 = vmatpush3.msra.mxu1 %v5932_v9  ;;  %v5965_v10 = vld [vmem:[%s10773_s18 + $0x100] sm:$0xff]  ;;  %v5953_v9 = vld [vmem:[%s10773_s18 + $0xa8] sm:$0xff] }
 0x669   : > { %6304 = vmatprep.subr.mxu0 %v6524_v25  ;;  %6279 = vmatprep.subr.mxu1 %v6524_v25 }
 0x66a   : > { %6305 = vmatpush3.msra.mxu0 %v4460_v36  ;;  %6280 = vmatpush3.msra.mxu1 %v5931_v44  ;;  %v5964_v36 = vld [vmem:[%s10773_s18 + $0xf8] sm:$0xff]  ;;  %v5952_v44 = vld [vmem:[%s10773_s18 + $0xa0] sm:$0xff] }
 0x66b   : > { %6306 = vmatprep.subr.mxu0 %v6524_v25  ;;  %6281 = vmatprep.subr.mxu1 %v6524_v25 }
 0x66c   : > { %6307 = vmatpush3.msra.mxu0 %v4459_v55  ;;  %6282 = vmatpush3.msra.mxu1 %v5930_v2  ;;  %v5963_v55 = vld [vmem:[%s10773_s18 + $0xf0] sm:$0xff]  ;;  %v5951_v2 = vld [vmem:[%s10773_s18 + $0x98] sm:$0xff] }
 0x66d   : > { %6308 = vmatprep.subr.mxu0 %v6524_v25  ;;  %6283 = vmatprep.subr.mxu1 %v6524_v25 }
 0x66e   : > { %6309 = vmatpush3.msra.mxu0 %v4458_v30  ;;  %6284 = vmatpush3.msra.mxu1 %v5929_v7  ;;  %v5962_v30 = vld [vmem:[%s10773_s18 + $0xe8] sm:$0xff]  ;;  %v5950_v7 = vld [vmem:[%s10773_s18 + $0x90] sm:$0xff] }
 0x66f   : > { %6310 = vmatprep.subr.mxu0 %v6524_v25  ;;  %6285 = vmatprep.subr.mxu1 %v6524_v25 }
 0x670   : > { %6311 = vmatpush3.msra.mxu0 %v4457_v60  ;;  %6286 = vmatpush3.msra.mxu1 %v5928_v42  ;;  %v5961_v60 = vld [vmem:[%s10773_s18 + $0xe0] sm:$0xff] }
 0x671   : > { %6312 = vmatprep.subr.mxu0 %v6524_v25  ;;  %6287 = vmatprep.subr.mxu1 %v6524_v25 }
 0x672   : > { %6313 = vmatpush3.msra.mxu0 %v4456_v8  ;;  %6288 = vmatpush3.msra.mxu1 %v5927_v47  ;;  %v5960_v8 = vld [vmem:[%s10773_s18 + $0xd8] sm:$0xff]  ;;  %v5978_v47 = vld [vmem:[%s10773_s18 + $0x160] sm:$0xff] }
 0x673   : > { %6314 = vmatprep.subr.mxu0 %v6524_v25  ;;  %6289 = vmatprep.subr.mxu1 %v6524_v25 }
 0x674   : > { %6315 = vmatpush3.msra.mxu0 %v4455_v45  ;;  %6290 = vmatpush3.msra.mxu1 %v5926_v43  ;;  %v5977_v43 = vld [vmem:[%s10773_s18 + $0x158] sm:$0xff] }
 0x675   : > { %6316 = vmatprep.subr.mxu0 %v6524_v25  ;;  %6291 = vmatprep.subr.mxu1 %v6524_v25 }
 0x676   : > { %6317 = vmatpush3.msra.mxu0 %v4454_v4  ;;  %6292 = vmatpush3.msra.mxu1 %v5925_v58  ;;  %v5988_v4 = vld [vmem:[%s10773_s18 + $0x1a8] sm:$0xff]  ;;  %v5976_v58 = vld [vmem:[%s10773_s18 + $0x150] sm:$0xff] }
 0x677   : > { %6318 = vmatprep.subr.mxu0 %v6524_v25  ;;  %6293 = vmatprep.subr.mxu1 %v6524_v25 }
 0x678   : > { %6319 = vmatpush3.msra.mxu0 %v4453_v48  ;;  %6294 = vmatpush3.msra.mxu1 %v5924_v34  ;;  %v5987_v48 = vld [vmem:[%s10773_s18 + $0x1a0] sm:$0xff]  ;;  %v5975_v34 = vld [vmem:[%s10773_s18 + $0x148] sm:$0xff] }
 0x679   : > { %6320 = vmatprep.subr.mxu0 %v6524_v25  ;;  %6322 = vmatprep.mubr.msk.f32.mxu0 %vm6525_vm11, %v6524_v25 }
 0x67a   : > { %6321 = vmatpush3.msra.mxu0 %v4452_v57  ;;  %6295 = vmatprep.subr.mxu1 %v6524_v25  ;;  %v5986_v57 = vld [vmem:[%s10773_s18 + $0x198] sm:$0xff] }
 0x67b   : > { %6296 = vmatpush3.msra.mxu1 %v5923_v32  ;;  %6297 = vmatprep.mubr.msk.f32.mxu1 %vm6525_vm11, %v6524_v25  ;;  %v5974_v32 = vld [vmem:[%s10773_s18 + $0x140] sm:$0xff] }
 0x67c   : > { %6325 = vmatprep.subr.mxu1 %v6524_v25  ;;  %6346 = vmatprep.subr.mxu0 %v6524_v25 }
 0x725   : > { %v4359_v1 = vpop.f32.mrf.mxu1  ;;  %v4447_v46 = vpop.f32.mrf.mxu0 }
 0x726   : > { %v4451_v14 = vmax.f32 %v4359_v1, %v4447_v46  ;;  %v5985_v1 = vld [vmem:[%s10773_s18 + $0x190] sm:$0xff]  ;;  %v5973_v46 = vld [vmem:[%s10773_s18 + $0x138] sm:$0xff] }
 0x727   : > { %v4361_v62 = vpop.f32.mrf.mxu1  ;;  %v4449_v35 = vpop.f32.mrf.mxu0 }
 0x728   : > { %v4476_v54 = vrot.slane %v4451_v14, 1  ;;  %6323 = vmatmul.mubr.msk.f32.vlgmr.msra.gmra.mxu0 %vm4477_vm12, %v4451_v14  ;;  %v5984_v14 = vld [vmem:[%s10773_s18 + $0x188] sm:$0xff]  ;;  %v5972_v62 = vld [vmem:[%s10773_s18 + $0x130] sm:$0xff]  ;;  %v5983_v35 = vld [vmem:[%s10773_s18 + $0x180] sm:$0xff] }
 0x729   : > { %6364 = vmatprep.mubr.msk.f32.mxu0 %vm6525_vm11, %v6524_v25  ;;  %6347 = vmatpush3.msra.mxu0 %v5948_v18  ;;  %v5981_v18 = vld [vmem:[%s10773_s18 + $0x170] sm:$0xff] }
 0x72a   : > { %6298 = vmatmul.mubr.msk.f32.vlgmr.msra.gmra.mxu1 %vm4477_vm12, %v4476_v54  ;;  %6348 = vmatprep.subr.mxu0 %v6524_v25  ;;  %v5971_v54 = vld [vmem:[%s10773_s18 + $0x128] sm:$0xff] }
 0x72b   : > { %6343 = vmatprep.mubr.msk.f32.mxu1 %vm6525_vm11, %v6524_v25  ;;  %6326 = vmatpush3.msra.mxu1 %v4648_v61  ;;  %v5982_v61 = vld [vmem:[%s10773_s18 + $0x178] sm:$0xff] }
 0x72c   : > { %6327 = vmatprep.subr.mxu1 %v6524_v25  ;;  %6349 = vmatpush3.msra.mxu0 %v5947_v3  ;;  %v5980_v3 = vld [vmem:[%s10773_s18 + $0x168] sm:$0xff] }
 0x72d   : > { %6328 = vmatpush3.msra.mxu1 %v4647_v39  ;;  %6350 = vmatprep.subr.mxu0 %v6524_v25  ;;  %v5970_v39 = vld [vmem:[%s10773_s18 + $0x120] sm:$0xff] }
 0x72e   : > { %6329 = vmatprep.subr.mxu1 %v6524_v25  ;;  %6351 = vmatpush3.msra.mxu0 %v5946_v29  ;;  %v5148_v29 = vld [vmem:[%s10775_s20 + $0x18] sm:$0xff] }
 0x72f   : > { %6330 = vmatpush3.msra.mxu1 %v4646_v24  ;;  %6352 = vmatprep.subr.mxu0 %v6524_v25 }
 0x730   : > { %6331 = vmatprep.subr.mxu1 %v6524_v25  ;;  %6353 = vmatpush3.msra.mxu0 %v5945_v16  ;;  %v5146_v16 = vld [vmem:[%s10775_s20 + $0x8] sm:$0xff] }
 0x731   : > { %6332 = vmatpush3.msra.mxu1 %v4645_v56  ;;  %6354 = vmatprep.subr.mxu0 %v6524_v25 }
 0x732   : > { %6333 = vmatprep.subr.mxu1 %v6524_v25  ;;  %6355 = vmatpush3.msra.mxu0 %v5944_v20 }
 0x733   : > { %6334 = vmatpush3.msra.mxu1 %v4644_v28  ;;  %6356 = vmatprep.subr.mxu0 %v6524_v25  ;;  %v5147_v28 = vld [vmem:[%s10775_s20 + $0x10] sm:$0xff] }
 0x734   : > { %6335 = vmatprep.subr.mxu1 %v6524_v25  ;;  %6357 = vmatpush3.msra.mxu0 %v5943_v21 }
 0x735   : > { %6336 = vmatpush3.msra.mxu1 %v4643_v59  ;;  %6358 = vmatprep.subr.mxu0 %v6524_v25  ;;  %v5145_v59 = vld [vmem:[%s10775_s20] sm:$0xff] }
 0x736   : > { %6337 = vmatprep.subr.mxu1 %v6524_v25  ;;  %6359 = vmatpush3.msra.mxu0 %v5942_v37 }
 0x737   : > { %6338 = vmatpush3.msra.mxu1 %v4642_v11  ;;  %6360 = vmatprep.subr.mxu0 %v6524_v25 }
 0x738   : > { %6339 = vmatprep.subr.mxu1 %v6524_v25  ;;  %6361 = vmatpush3.msra.mxu0 %v5941_v13 }
 0x739   : > { %6340 = vmatpush3.msra.mxu1 %v4641_v22  ;;  %6362 = vmatprep.subr.mxu0 %v6524_v25 }
 0x73a   : > { %6341 = vmatprep.subr.mxu1 %v6524_v25  ;;  %6363 = vmatpush3.msra.mxu0 %v5940_v38 }
 0x73b   : > { %6342 = vmatpush3.msra.mxu1 %v4640_v63  ;;  %6388 = vmatprep.subr.mxu0 %v6524_v25 }
 0x73c   : > { %6367 = vmatprep.subr.mxu1 %v6524_v25 }
 0x7e8   : > { %v4624_v33 = vpop.f32.mrf.mxu0 }
 0x7ea   : > { %v4549_v12 = vpop.f32.mrf.mxu1  ;;  %v6324_v17 = vpop.f32.mrf.mxu0 }
 0x7eb   : > { %v4625_v31 = vadd.f32 %v4624_v33, %v4549_v12  ;;  %v4639_v33 = vld [vmem:[%s10774_s19] sm:$0x1] }
 0x7ec   : > { %v6299_v41 = vpop.f32.mrf.mxu1 }
 0x7ed   : > { %v4635_v49 = vadd.f32 %v5938_v5, %v4625_v31 }
 0x7ef   : > { %v4637_v0 = vmul.f32 %v4636_v40, %v4635_v49 }
 0x7f1   : > { %6498 = vtanh.f32 %v4637_v0 }
 0x7fe   : > { %v10565_v26 = vpop.eup %6498 }
 0x7ff   : > { %6344 = vmatmul.mubr.msk.f32.vlgmr.msra.gmra.mxu1 %vm4649_vm13, %v10565_v26  ;;  %v4734_v50 = vrot.slane %v10565_v26, 1  ;;  %v4818_v42 = vrot.slane %v10565_v26, 2  ;;  %v4902_v45 = vrot.slane %v10565_v26, 3  ;;  %v4986_v24 = vrot.slane %v10565_v26, 4 }
 0x800   : > { %6368 = vmatpush3.msra.mxu1 %v5958_v23  ;;  %6385 = vmatprep.mubr.msk.f32.mxu1 %vm6525_vm11, %v6524_v25  ;;  %v5070_v56 = vrot.slane %v10565_v26, 5 }
 0x801   : > { %6369 = vmatprep.subr.mxu1 %v6524_v25  ;;  %6365 = vmatmul.mubr.msk.f32.vlgmr.msra.gmra.mxu0 %vm4649_vm13, %v4734_v50  ;;  %v5149_v50 = vld [vmem:[#allocation2] sm:$0x1] }
 0x802   : > { %6370 = vmatpush3.msra.mxu1 %v5957_v19  ;;  %6389 = vmatpush3.msra.mxu0 %v5968_v52 }
 0x803   : > { %6371 = vmatprep.subr.mxu1 %v6524_v25  ;;  %6390 = vmatprep.subr.mxu0 %v6524_v25 }
 0x804   : > { %6372 = vmatpush3.msra.mxu1 %v5956_v15  ;;  %6391 = vmatpush3.msra.mxu0 %v5967_v53 }
 0x805   : > { %6373 = vmatprep.subr.mxu1 %v6524_v25  ;;  %6392 = vmatprep.subr.mxu0 %v6524_v25 }
 0x806   : > { %6374 = vmatpush3.msra.mxu1 %v5955_v27  ;;  %6393 = vmatpush3.msra.mxu0 %v5966_v6 }
 0x807   : > { %6375 = vmatprep.subr.mxu1 %v6524_v25  ;;  %6394 = vmatprep.subr.mxu0 %v6524_v25 }
 0x808   : > { %6376 = vmatpush3.msra.mxu1 %v5954_v51  ;;  %6395 = vmatpush3.msra.mxu0 %v5965_v10 }
 0x809   : > { %6377 = vmatprep.subr.mxu1 %v6524_v25  ;;  %6396 = vmatprep.subr.mxu0 %v6524_v25 }
 0x80a   : > { %6378 = vmatpush3.msra.mxu1 %v5953_v9  ;;  %6397 = vmatpush3.msra.mxu0 %v5964_v36 }
 0x80b   : > { %6379 = vmatprep.subr.mxu1 %v6524_v25  ;;  %6398 = vmatprep.subr.mxu0 %v6524_v25 }
 0x80c   : > { %6380 = vmatpush3.msra.mxu1 %v5952_v44  ;;  %6399 = vmatpush3.msra.mxu0 %v5963_v55 }
 0x80d   : > { %6381 = vmatprep.subr.mxu1 %v6524_v25  ;;  %6400 = vmatprep.subr.mxu0 %v6524_v25 }
 0x80e   : > { %6382 = vmatpush3.msra.mxu1 %v5951_v2  ;;  %6401 = vmatpush3.msra.mxu0 %v5962_v30 }
 0x80f   : > { %6383 = vmatprep.subr.mxu1 %v6524_v25  ;;  %6402 = vmatprep.subr.mxu0 %v6524_v25 }
 0x810   : > { %6384 = vmatpush3.msra.mxu1 %v5950_v7  ;;  %6403 = vmatpush3.msra.mxu0 %v5961_v60 }
 0x811   : > { %6386 = vmatmul.mubr.msk.f32.vlgmr.msra.gmra.mxu1 %vm4649_vm13, %v4818_v42  ;;  %6404 = vmatprep.subr.mxu0 %v6524_v25 }
 0x812   : > { %6409 = vmatprep.subr.mxu1 %v6524_v25  ;;  %6405 = vmatpush3.msra.mxu0 %v5960_v8 }
 0x813   : > { %6406 = vmatprep.mubr.msk.f32.mxu0 %vm6525_vm11, %v6524_v25  ;;  %6410 = vmatpush3.msra.mxu1 %v5978_v47 }
 0x814   : > { %6407 = vmatmul.mubr.msk.f32.vlgmr.msra.gmra.mxu0 %vm4649_vm13, %v4902_v45  ;;  %6411 = vmatprep.subr.mxu1 %v6524_v25 }
 0x815   : > { %6430 = vmatprep.subr.mxu0 %v6524_v25  ;;  %6412 = vmatpush3.msra.mxu1 %v5977_v43 }
 0x816   : > { %6431 = vmatpush3.msra.mxu0 %v5988_v4  ;;  %6413 = vmatprep.subr.mxu1 %v6524_v25 }
 0x817   : > { %6432 = vmatprep.subr.mxu0 %v6524_v25  ;;  %6414 = vmatpush3.msra.mxu1 %v5976_v58 }
 0x818   : > { %6433 = vmatpush3.msra.mxu0 %v5987_v48  ;;  %6415 = vmatprep.subr.mxu1 %v6524_v25 }
 0x819   : > { %6434 = vmatprep.subr.mxu0 %v6524_v25  ;;  %6416 = vmatpush3.msra.mxu1 %v5975_v34 }
 0x81a   : > { %6435 = vmatpush3.msra.mxu0 %v5986_v57  ;;  %6417 = vmatprep.subr.mxu1 %v6524_v25 }
 0x81b   : > { %6436 = vmatprep.subr.mxu0 %v6524_v25  ;;  %6418 = vmatpush3.msra.mxu1 %v5974_v32 }
 0x81c   : > { %6437 = vmatpush3.msra.mxu0 %v5985_v1  ;;  %6419 = vmatprep.subr.mxu1 %v6524_v25 }
 0x81d   : > { %6438 = vmatprep.subr.mxu0 %v6524_v25  ;;  %6420 = vmatpush3.msra.mxu1 %v5973_v46 }
 0x81e   : > { %6439 = vmatpush3.msra.mxu0 %v5984_v14  ;;  %6421 = vmatprep.subr.mxu1 %v6524_v25 }
 0x81f   : > { %6440 = vmatprep.subr.mxu0 %v6524_v25  ;;  %6422 = vmatpush3.msra.mxu1 %v5972_v62 }
 0x820   : > { %6441 = vmatpush3.msra.mxu0 %v5983_v35  ;;  %6423 = vmatprep.subr.mxu1 %v6524_v25 }
 0x821   : > { %6442 = vmatprep.subr.mxu0 %v6524_v25  ;;  %6424 = vmatpush3.msra.mxu1 %v5971_v54 }
 0x822   : > { %6443 = vmatpush3.msra.mxu0 %v5982_v61  ;;  %6425 = vmatprep.subr.mxu1 %v6524_v25 }
 0x823   : > { %6444 = vmatprep.subr.mxu0 %v6524_v25  ;;  %6426 = vmatpush3.msra.mxu1 %v5970_v39 }
 0x824   : > { %6427 = vmatprep.mubr.msk.f32.mxu1 %vm6525_vm11, %v6524_v25  ;;  %6445 = vmatpush3.msra.mxu0 %v5981_v18 }
 0x825   : > { %6428 = vmatmul.mubr.msk.f32.vlgmr.msra.gmra.mxu1 %vm4649_vm13, %v4986_v24  ;;  %6446 = vmatprep.subr.mxu0 %v6524_v25 }
 0x826   : > { %6447 = vmatpush3.msra.mxu0 %v5980_v3  ;;  %6448 = vmatprep.mubr.msk.f32.mxu0 %vm6525_vm11, %v6524_v25 }
 0x827   : > { %6449 = vmatmul.mubr.msk.f32.vlgmr.msra.gmra.mxu0 %vm4649_vm13, %v5070_v56  ;;  %6451 = vmatprep.subr.mxu1 %v6524_v25 }
 0x828   : > { %6459 = vmatprep.mubr.msk.f32.mxu1 %vm6525_vm11, %v6524_v25  ;;  %6452 = vmatpush3.msra.mxu1 %v5148_v29 }
 0x829   : > { %6453 = vmatprep.subr.mxu1 %v6524_v25 }
 0x82a   : > { %6454 = vmatpush3.msra.mxu1 %v5147_v28 }
 0x82b   : > { %6455 = vmatprep.subr.mxu1 %v6524_v25 }
 0x82c   : > { %6456 = vmatpush3.msra.mxu1 %v5146_v16 }
 0x82d   : > { %6457 = vmatprep.subr.mxu1 %v6524_v25 }
 0x82e   : > { %6458 = vmatpush3.msra.mxu1 %v5145_v59 }
 0x8bf   : > { %v4719_v20 = vpop.f32.mrf.mxu1 }
 0x8c0   : > { %v4723_v12 = vadd.f32 %v4719_v20, %v4639_v33 }
 0x8c1   : > { %v6345_v11 = vpop.f32.mrf.mxu1  ;;  %v4803_v21 = vpop.f32.mrf.mxu0 }
 0x8c2   : > { %v4807_v5 = vadd.f32 %v4803_v21, %v4723_v12 }
 0x8c3   : > { %v6366_v22 = vpop.f32.mrf.mxu0 }
 0x8d1   : > { %v4887_v37 = vpop.f32.mrf.mxu1 }
 0x8d2   : > { %v4891_v17 = vadd.f32 %v4887_v37, %v4807_v5 }
 0x8d3   : > { %v6387_v63 = vpop.f32.mrf.mxu1 }
 0x8d4   : > { %v4971_v13 = vpop.f32.mrf.mxu0 }
 0x8d5   : > { %v4975_v31 = vadd.f32 %v4971_v13, %v4891_v17 }
 0x8d6   : > { %v6408_v38 = vpop.f32.mrf.mxu0 }
 0x8e5   : > { %v5055_v40 = vpop.f32.mrf.mxu1 }
 0x8e6   : > { %v5059_v25 = vadd.f32 %v5055_v40, %v4975_v31 }
 0x8e7   : > { %v6429_v41 = vpop.f32.mrf.mxu1  ;;  %v5139_v49 = vpop.f32.mrf.mxu0 }
 0x8e8   : > { %v5143_v0 = vadd.f32 %v5139_v49, %v5059_v25 }
 0x8e9   : > { %v6450_v23 = vpop.f32.mrf.mxu0 }
 0x8ea   : > { %6500 = vtanh.f32 %v5143_v0 }
 0x8f7   : > { %v6501_v26 = vpop.eup %6500 }
 0x8f8   : > { %6460 = vmatmul.mubr.msk.f32.vlgmr.msra.gmra.mxu1 %vm3424_vm6, %v6501_v26 }
 0x9b8   : > { %v5219_v19 = vpop.f32.mrf.mxu1 }
 0x9b9   : > { %v5220_v52 = vadd.f32 %v5219_v19, %v5149_v50 }
 0x9ba   : > { %v6461_v15 = vpop.f32.mrf.mxu1 }
 0x9bb   : > { %5224 = vst.msk [vmem:[%s681_s0] sm:$0x1] %vm5223_vm14, %v5220_v52 }
 0x9bc PF: > { %s34_s29 = sadd.s32 1, %s6522_s29  }
 0x9bd   : > { %p31_p4 = scmp.ge.s32.totalorder %s34_s29, 4  }
 0x9bf   :  { %33 = sbr.rel (!%p31_p4) target bundleno = 8 (0x8), region = 148 }

</bundles_post_ra>
